<compile_context>
chip_gen: v7x
topology: tpu7x:2x2x1
jax: 0.10.0
libtpu: 0.0.40
codegen_flags: <defaults>
</compile_context>

<pallas_src>
import functools

import jax
import jax.numpy as jnp
from jax.experimental import pallas as pl
from jax.experimental.pallas import tpu as pltpu


def _round_up(x, m):
    return (x + m - 1) // m * m


def _basic_block_kernel(xp_ref, w1_ref, b1_ref, w2_ref, b2_ref, wd_ref, bd_ref,
                        mask_ref, o_ref, xwin_ref, mid_ref, *,
                        K, Wp, TR, MH, G0, M0, scaling_factor):
    """Grid = (batch, row_block). Flattened-spatial rows x 128-lane channels.

    xp_ref  : (1, R_big, C) bf16  flattened zero-padded input slab (G0 margins)
    w1_ref  : (K*K, C, C)  bf16   conv1 taps     w2_ref: conv2 taps
    wd_ref  : (C, C)       bf16   1x1 downsample weight
    b*_ref  : (1, C)       f32    biases
    mask_ref: (R_big, 1)   bf16   1.0 on interior (real image) rows, 0.0 else
    o_ref   : (1, TR, C)   f32    output row tile (lane-dense, unmasked store)
    xwin_ref: (TR+2*G0, C) f32    staged input window for this row block
    mid_ref : (TR+2*MH, C) f32    conv1 output (incl. halo) for this row block
    """
    p = K // 2
    C = o_ref.shape[2]
    RH = TR + 2 * MH          # conv1 rows produced (output rows + conv2 halo)
    RW = TR + 2 * G0          # staged input window rows

    rb = pl.program_id(1)
    base = pl.multiple_of(rb * TR, TR)    # first output row of this block

    # One aligned, lane-dense bf16 load of the row window; stage to f32 VMEM.
    # All subsequent tap reads are static slices of this scratch.
    xwin_ref[...] = xp_ref[0, pl.ds(base, RW), :].astype(jnp.float32)

    taps = [(kh, kw) for kh in range(K) for kw in range(K)]

    # ---- conv1 (KxK, stride 1) + bias + ReLU over TR rows plus MH halo ------
    acc1 = jnp.zeros((RH, C), jnp.float32)
    for t, (kh, kw) in enumerate(taps):
        delta = (kh - p) * Wp + (kw - p)
        patch = xwin_ref[pl.ds(G0 - MH + delta, RH), :].astype(jnp.bfloat16)
        acc1 += jnp.dot(patch, w1_ref[t], preferred_element_type=jnp.float32)
    act1 = jnp.maximum(acc1 + b1_ref[...], 0.0)
    # Zero padding-frame / junk rows so they act as conv2's zero halo.
    act1 = act1 * mask_ref[pl.ds(M0 + base - MH, RH), :].astype(jnp.float32)
    mid_ref[...] = act1

    # ---- residual (1x1 downsample) initializes the conv2 accumulator --------
    xin = xwin_ref[pl.ds(G0, TR), :].astype(jnp.bfloat16)
    res = jnp.dot(xin, wd_ref[...], preferred_element_type=jnp.float32) + bd_ref[...]
    if scaling_factor != 1.0:     # static: skip the multiply when scale == 1
        res = res * scaling_factor
    acc2 = res + b2_ref[...]

    # ---- conv2 (KxK, stride 1), fused with residual + bias ------------------
    for t, (kh, kw) in enumerate(taps):
        delta = (kh - p) * Wp + (kw - p)
        patch = mid_ref[pl.ds(MH + delta, TR), :].astype(jnp.bfloat16)
        acc2 += jnp.dot(patch, w2_ref[t], preferred_element_type=jnp.float32)

    # ---- last ReLU + lane-dense, aligned, unmasked store --------------------
    o_ref[...] = jnp.maximum(acc2, 0.0).reshape(1, TR, C)


def basic_block_forward(x_nchw, params, *, kernel_size=3, scaling_factor=1.0,
                        row_tile=128):
    """Wrapper: NCHW in/out. params = (w1, b1, w2, b2, wd, bd), conv weights HWIO."""
    w1, b1, w2, b2, wd, bd = params
    N, Cin, H, W = x_nchw.shape
    Cout = w1.shape[-1]
    K = kernel_size
    p = K // 2
    assert row_tile % 16 == 0

    Hp = H + 2 * p
    Wp = _round_up(W + 2 * p, 8)          # padded row stride: kh shifts 8-aligned
    R = Hp * Wp                           # flattened padded spatial positions
    TR = min(row_tile, _round_up(R, 16))  # output rows per grid step
    NB = pl.cdiv(R, TR)
    R_pad = NB * TR
    M = p * Wp + p                        # max |tap row shift| in flattened coords
    MH = _round_up(M, 8)                  # conv1->conv2 halo rows
    G0 = _round_up(MH + M, 16)            # staged-window margin (16: bf16 aligned)
    M0 = G0                               # leading zero margin of the slab
    R_big = R_pad + 2 * G0
    C = _round_up(max(Cin, Cout), 128)    # lane-dense channel tile

    # ---- layout prep (XLA, outside the kernel) ------------------------------
    x = jnp.transpose(x_nchw, (0, 2, 3, 1)).astype(jnp.float32)          # NHWC
    xpd = jnp.pad(x, ((0, 0), (p, p), (p, Wp - W - p), (0, C - Cin)))
    xflat = xpd.reshape(N, R, C)
    xflat = jnp.pad(xflat, ((0, 0), (M0, R_big - M0 - R), (0, 0)))
    xflat = xflat.astype(jnp.bfloat16)                                   # bf16 slab

    w1p = jnp.pad(w1, ((0, 0), (0, 0), (0, C - Cin), (0, C - Cout)))
    w1p = w1p.reshape(K * K, C, C).astype(jnp.bfloat16)
    w2p = jnp.pad(w2, ((0, 0), (0, 0), (0, C - Cout), (0, C - Cout)))
    w2p = w2p.reshape(K * K, C, C).astype(jnp.bfloat16)
    wdp = jnp.pad(wd, ((0, C - Cin), (0, C - Cout))).astype(jnp.bfloat16)
    b1p = jnp.pad(b1, ((0, 0), (0, C - Cout))).astype(jnp.float32)
    b2p = jnp.pad(b2, ((0, 0), (0, C - Cout))).astype(jnp.float32)
    bdp = jnp.pad(bd, ((0, 0), (0, C - Cout))).astype(jnp.float32)

    # Interior-row mask over the full slab (zeros in margins / padding frame).
    rr = jnp.arange(R_big)
    r_img = rr - M0
    hh, ww = r_img // Wp, r_img % Wp
    interior = ((r_img >= 0) & (r_img < R) &
                (hh >= p) & (hh < p + H) & (ww >= p) & (ww < p + W))
    mask = interior.astype(jnp.bfloat16).reshape(R_big, 1)

    kernel = functools.partial(_basic_block_kernel, K=K, Wp=Wp, TR=TR, MH=MH,
                               G0=G0, M0=M0, scaling_factor=float(scaling_factor))

    out_flat = pl.pallas_call(
        kernel,
        out_shape=jax.ShapeDtypeStruct((N, R_pad, C), jnp.float32),
        grid_spec=pltpu.PrefetchScalarGridSpec(
            num_scalar_prefetch=0,
            grid=(N, NB),   # N*NB independent steps -> pipelined on both v7x TCs
            in_specs=[
                pl.BlockSpec((1, R_big, C), lambda n, rb: (n, 0, 0)),
                pl.BlockSpec((K * K, C, C), lambda n, rb: (0, 0, 0)),
                pl.BlockSpec((1, C), lambda n, rb: (0, 0)),
                pl.BlockSpec((K * K, C, C), lambda n, rb: (0, 0, 0)),
                pl.BlockSpec((1, C), lambda n, rb: (0, 0)),
                pl.BlockSpec((C, C), lambda n, rb: (0, 0)),
                pl.BlockSpec((1, C), lambda n, rb: (0, 0)),
                pl.BlockSpec((R_big, 1), lambda n, rb: (0, 0)),
            ],
            out_specs=pl.BlockSpec((1, TR, C), lambda n, rb: (n, rb, 0)),
            scratch_shapes=[pltpu.VMEM((TR + 2 * G0, C), jnp.float32),
                            pltpu.VMEM((TR + 2 * MH, C), jnp.float32)],
        ),
        compiler_params=pltpu.CompilerParams(
            dimension_semantics=("parallel", "parallel"),
            vmem_limit_bytes=32 * 1024 * 1024,   # working set is a few MB/step
        ),
    )(xflat, w1p, b1p, w2p, b2p, wdp, bdp, mask)

    # Extract interior pixels / real channels, return NCHW.
    out = out_flat[:, :R, :].reshape(N, Hp, Wp, C)[:, p:p + H, p:p + W, :Cout]
    return jnp.transpose(out, (0, 3, 1, 2))


def init_params(key, cin, cout, k):
    """Deterministic synthetic init mirroring the module's init choices."""
    k1, k2, k3, k4, k5, k6 = jax.random.split(key, 6)
    # conv1: kaiming_normal_(a=0) -> std = sqrt(2 / fan_in), fan_in = Cin*K*K
    w1 = jax.random.normal(k1, (k, k, cin, cout), jnp.float32) * jnp.sqrt(2.0 / (cin * k * k))
    b1 = jax.random.uniform(k2, (1, cout), jnp.float32, -1.0, 1.0) / jnp.sqrt(cin * k * k)
    # conv2: init chosen from last_activation_fn=ReLU -> kaiming_normal_(a=0)
    w2 = jax.random.normal(k3, (k, k, cout, cout), jnp.float32) * jnp.sqrt(2.0 / (cout * k * k))
    b2 = jax.random.uniform(k4, (1, cout), jnp.float32, -1.0, 1.0) / jnp.sqrt(cout * k * k)
    # downsample (1x1 conv, no activation) -> xavier_normal_
    wd = jax.random.normal(k5, (cin, cout), jnp.float32) * jnp.sqrt(2.0 / (cin + cout))
    bd = jax.random.uniform(k6, (1, cout), jnp.float32, -1.0, 1.0) / jnp.sqrt(cin)
    return (w1, b1, w2, b2, wd, bd)


def reference_forward(x_nchw, params, scaling_factor=1.0):
    """Pure-JAX reference matching the PyTorch forward pass; operands are
    bf16-rounded to mirror the kernel's bf16-MXU / f32-accumulate precision."""
    w1, b1, w2, b2, wd, bd = params
    k = w1.shape[0]

    def bf(a):
        return a.astype(jnp.bfloat16).astype(jnp.float32)

    def conv2d(x, w, b, pad):
        y = jax.lax.conv_general_dilated(
            bf(x), bf(w), (1, 1), [(pad, pad), (pad, pad)],
            dimension_numbers=('NCHW', 'HWIO', 'NCHW'),
            precision=jax.lax.Precision.HIGHEST)
        return y + b.reshape(1, -1, 1, 1)

    out = jax.nn.relu(conv2d(x_nchw, w1, b1, k // 2))
    out = conv2d(out, w2, b2, k // 2)
    res = conv2d(x_nchw, wd.reshape(1, 1, *wd.shape), bd, 0)
    return jax.nn.relu(out + res * scaling_factor)


if __name__ == "__main__":
    key = jax.random.PRNGKey(0)
    kx, kp = jax.random.split(key)

    N, CIN, COUT, H, W, K = 2, 4, 8, 16, 16, 3
    x = jax.random.normal(kx, (N, CIN, H, W), jnp.float32)   # NCHW like PyTorch
    params = init_params(kp, CIN, COUT, K)

    out = basic_block_forward(x, params, kernel_size=K, scaling_factor=1.0)
    out = jax.block_until_ready(out)

    ref = jax.block_until_ready(reference_forward(x, params, scaling_factor=1.0))
    assert out.shape == (N, COUT, H, W), out.shape
    max_err = float(jnp.max(jnp.abs(out - ref)))
    assert jnp.allclose(out, ref, atol=2e-2, rtol=2e-2), max_err

    print("KERNEL_OK")
</pallas_src>

<mosaic_0001>
module attributes {stable_mosaic.version = 11 : i64} {
  func.func @_basic_block_kernel(%arg0: i32, %arg1: i32, %arg2: memref<1x640x128xbf16, #tpu.memory_space<vmem>>, %arg3: memref<9x128x128xbf16, #tpu.memory_space<vmem>>, %arg4: memref<1x128xf32, #tpu.memory_space<vmem>>, %arg5: memref<9x128x128xbf16, #tpu.memory_space<vmem>>, %arg6: memref<1x128xf32, #tpu.memory_space<vmem>>, %arg7: memref<128x128xbf16, #tpu.memory_space<vmem>>, %arg8: memref<1x128xf32, #tpu.memory_space<vmem>>, %arg9: memref<640x1xbf16, #tpu.memory_space<vmem>>, %arg10: memref<1x128x128xf32, #tpu.memory_space<vmem>>, %arg11: memref<256x128xf32, #tpu.memory_space<vmem>>, %arg12: memref<192x128xf32, #tpu.memory_space<vmem>>) attributes {dimension_semantics = [#tpu.dimension_semantics<parallel>, #tpu.dimension_semantics<parallel>], iteration_bounds = array<i64: 2, 4>, scalar_prefetch = 0 : i64, scratch_operands = 2 : i64, tpu.core_type = #tpu.core_type<tc>, window_params = [{transform_indices = @transform_0, window_bounds = array<i64: 1, 640, 128>}, {pipeline_mode = #tpu.pipeline_mode<synchronous>, transform_indices = @transform_1, window_bounds = array<i64: 9, 128, 128>}, {pipeline_mode = #tpu.pipeline_mode<synchronous>, transform_indices = @transform_2, window_bounds = array<i64: 1, 128>}, {pipeline_mode = #tpu.pipeline_mode<synchronous>, transform_indices = @transform_3, window_bounds = array<i64: 9, 128, 128>}, {pipeline_mode = #tpu.pipeline_mode<synchronous>, transform_indices = @transform_4, window_bounds = array<i64: 1, 128>}, {pipeline_mode = #tpu.pipeline_mode<synchronous>, transform_indices = @transform_5, window_bounds = array<i64: 128, 128>}, {pipeline_mode = #tpu.pipeline_mode<synchronous>, transform_indices = @transform_6, window_bounds = array<i64: 1, 128>}, {pipeline_mode = #tpu.pipeline_mode<synchronous>, transform_indices = @transform_7, window_bounds = array<i64: 640, 1>}, {transform_indices = @transform_8, window_bounds = array<i64: 1, 128, 128>}]} {
    %c128_i32 = arith.constant 128 : i32
    %0 = arith.muli %arg1, %c128_i32 : i32
    %1 = tpu.assume_multiple %0, 128 : i32
    %c0 = arith.constant 0 : index
    %2 = arith.index_cast %1 : i32 to index
    %c0_0 = arith.constant 0 : index
    %3 = vector.load %arg2[%c0, %2, %c0_0] : memref<1x640x128xbf16, #tpu.memory_space<vmem>>, vector<1x256x128xbf16>
    %4 = vector.shape_cast %3 : vector<1x256x128xbf16> to vector<256x128xbf16>
    %5 = arith.extf %4 : vector<256x128xbf16> to vector<256x128xf32>
    %c0_1 = arith.constant 0 : index
    %c0_2 = arith.constant 0 : index
    %6 = vector.load %arg11[%c0_1, %c0_2] : memref<256x128xf32, #tpu.memory_space<vmem>>, vector<256x128xf32>
    tpu.vector_store %arg11[%c0_1, %c0_2], %5 {strides = array<i32>} : memref<256x128xf32, #tpu.memory_space<vmem>>, vector<256x128xf32>,
    %cst = arith.constant 0.000000e+00 : f32
    %7 = vector.broadcast %cst : f32 to vector<192x128xf32>
    %c7 = arith.constant 7 : index
    %c0_3 = arith.constant 0 : index
    %8 = vector.load %arg11[%c7, %c0_3] : memref<256x128xf32, #tpu.memory_space<vmem>>, vector<192x128xf32>
    %9 = arith.truncf %8 : vector<192x128xf32> to vector<192x128xbf16>
    %c0_4 = arith.constant 0 : index
    %c0_5 = arith.constant 0 : index
    %c0_6 = arith.constant 0 : index
    %10 = vector.load %arg3[%c0_4, %c0_5, %c0_6] : memref<9x128x128xbf16, #tpu.memory_space<vmem>>, vector<1x128x128xbf16>
    %11 = vector.shape_cast %10 : vector<1x128x128xbf16> to vector<128x128xbf16>
    %cst_7 = arith.constant dense<0.000000e+00> : vector<192x128xf32>
    %12 = tpu.matmul %9, %11, %cst_7 {dimension_numbers = #tpu.dot_dimension_numbers<[1], [0], [0], [1], [0, 0, 1, 1], [], []>} : vector<192x128xbf16>, vector<128x128xbf16>, vector<192x128xf32> -> vector<192x128xf32>
    %13 = arith.addf %7, %12 : vector<192x128xf32>
    %c8 = arith.constant 8 : index
    %c0_8 = arith.constant 0 : index
    %14 = vector.load %arg11[%c8, %c0_8] : memref<256x128xf32, #tpu.memory_space<vmem>>, vector<192x128xf32>
    %15 = arith.truncf %14 : vector<192x128xf32> to vector<192x128xbf16>
    %c1 = arith.constant 1 : index
    %c0_9 = arith.constant 0 : index
    %c0_10 = arith.constant 0 : index
    %16 = vector.load %arg3[%c1, %c0_9, %c0_10] : memref<9x128x128xbf16, #tpu.memory_space<vmem>>, vector<1x128x128xbf16>
    %17 = vector.shape_cast %16 : vector<1x128x128xbf16> to vector<128x128xbf16>
    %cst_11 = arith.constant dense<0.000000e+00> : vector<192x128xf32>
    %18 = tpu.matmul %15, %17, %cst_11 {dimension_numbers = #tpu.dot_dimension_numbers<[1], [0], [0], [1], [0, 0, 1, 1], [], []>} : vector<192x128xbf16>, vector<128x128xbf16>, vector<192x128xf32> -> vector<192x128xf32>
    %19 = arith.addf %13, %18 : vector<192x128xf32>
    %c9 = arith.constant 9 : index
    %c0_12 = arith.constant 0 : index
    %20 = vector.load %arg11[%c9, %c0_12] : memref<256x128xf32, #tpu.memory_space<vmem>>, vector<192x128xf32>
    %21 = arith.truncf %20 : vector<192x128xf32> to vector<192x128xbf16>
    %c2 = arith.constant 2 : index
    %c0_13 = arith.constant 0 : index
    %c0_14 = arith.constant 0 : index
    %22 = vector.load %arg3[%c2, %c0_13, %c0_14] : memref<9x128x128xbf16, #tpu.memory_space<vmem>>, vector<1x128x128xbf16>
    %23 = vector.shape_cast %22 : vector<1x128x128xbf16> to vector<128x128xbf16>
    %cst_15 = arith.constant dense<0.000000e+00> : vector<192x128xf32>
    %24 = tpu.matmul %21, %23, %cst_15 {dimension_numbers = #tpu.dot_dimension_numbers<[1], [0], [0], [1], [0, 0, 1, 1], [], []>} : vector<192x128xbf16>, vector<128x128xbf16>, vector<192x128xf32> -> vector<192x128xf32>
    %25 = arith.addf %19, %24 : vector<192x128xf32>
    %c31 = arith.constant 31 : index
    %c0_16 = arith.constant 0 : index
    %26 = vector.load %arg11[%c31, %c0_16] : memref<256x128xf32, #tpu.memory_space<vmem>>, vector<192x128xf32>
    %27 = arith.truncf %26 : vector<192x128xf32> to vector<192x128xbf16>
    %c3 = arith.constant 3 : index
    %c0_17 = arith.constant 0 : index
    %c0_18 = arith.constant 0 : index
    %28 = vector.load %arg3[%c3, %c0_17, %c0_18] : memref<9x128x128xbf16, #tpu.memory_space<vmem>>, vector<1x128x128xbf16>
    %29 = vector.shape_cast %28 : vector<1x128x128xbf16> to vector<128x128xbf16>
    %cst_19 = arith.constant dense<0.000000e+00> : vector<192x128xf32>
    %30 = tpu.matmul %27, %29, %cst_19 {dimension_numbers = #tpu.dot_dimension_numbers<[1], [0], [0], [1], [0, 0, 1, 1], [], []>} : vector<192x128xbf16>, vector<128x128xbf16>, vector<192x128xf32> -> vector<192x128xf32>
    %31 = arith.addf %25, %30 : vector<192x128xf32>
    %c32 = arith.constant 32 : index
    %c0_20 = arith.constant 0 : index
    %32 = vector.load %arg11[%c32, %c0_20] : memref<256x128xf32, #tpu.memory_space<vmem>>, vector<192x128xf32>
    %33 = arith.truncf %32 : vector<192x128xf32> to vector<192x128xbf16>
    %c4 = arith.constant 4 : index
    %c0_21 = arith.constant 0 : index
    %c0_22 = arith.constant 0 : index
    %34 = vector.load %arg3[%c4, %c0_21, %c0_22] : memref<9x128x128xbf16, #tpu.memory_space<vmem>>, vector<1x128x128xbf16>
    %35 = vector.shape_cast %34 : vector<1x128x128xbf16> to vector<128x128xbf16>
    %cst_23 = arith.constant dense<0.000000e+00> : vector<192x128xf32>
    %36 = tpu.matmul %33, %35, %cst_23 {dimension_numbers = #tpu.dot_dimension_numbers<[1], [0], [0], [1], [0, 0, 1, 1], [], []>} : vector<192x128xbf16>, vector<128x128xbf16>, vector<192x128xf32> -> vector<192x128xf32>
    %37 = arith.addf %31, %36 : vector<192x128xf32>
    %c33 = arith.constant 33 : index
    %c0_24 = arith.constant 0 : index
    %38 = vector.load %arg11[%c33, %c0_24] : memref<256x128xf32, #tpu.memory_space<vmem>>, vector<192x128xf32>
    %39 = arith.truncf %38 : vector<192x128xf32> to vector<192x128xbf16>
    %c5 = arith.constant 5 : index
    %c0_25 = arith.constant 0 : index
    %c0_26 = arith.constant 0 : index
    %40 = vector.load %arg3[%c5, %c0_25, %c0_26] : memref<9x128x128xbf16, #tpu.memory_space<vmem>>, vector<1x128x128xbf16>
    %41 = vector.shape_cast %40 : vector<1x128x128xbf16> to vector<128x128xbf16>
    %cst_27 = arith.constant dense<0.000000e+00> : vector<192x128xf32>
    %42 = tpu.matmul %39, %41, %cst_27 {dimension_numbers = #tpu.dot_dimension_numbers<[1], [0], [0], [1], [0, 0, 1, 1], [], []>} : vector<192x128xbf16>, vector<128x128xbf16>, vector<192x128xf32> -> vector<192x128xf32>
    %43 = arith.addf %37, %42 : vector<192x128xf32>
    %c55 = arith.constant 55 : index
    %c0_28 = arith.constant 0 : index
    %44 = vector.load %arg11[%c55, %c0_28] : memref<256x128xf32, #tpu.memory_space<vmem>>, vector<192x128xf32>
    %45 = arith.truncf %44 : vector<192x128xf32> to vector<192x128xbf16>
    %c6 = arith.constant 6 : index
    %c0_29 = arith.constant 0 : index
    %c0_30 = arith.constant 0 : index
    %46 = vector.load %arg3[%c6, %c0_29, %c0_30] : memref<9x128x128xbf16, #tpu.memory_space<vmem>>, vector<1x128x128xbf16>
    %47 = vector.shape_cast %46 : vector<1x128x128xbf16> to vector<128x128xbf16>
    %cst_31 = arith.constant dense<0.000000e+00> : vector<192x128xf32>
    %48 = tpu.matmul %45, %47, %cst_31 {dimension_numbers = #tpu.dot_dimension_numbers<[1], [0], [0], [1], [0, 0, 1, 1], [], []>} : vector<192x128xbf16>, vector<128x128xbf16>, vector<192x128xf32> -> vector<192x128xf32>
    %49 = arith.addf %43, %48 : vector<192x128xf32>
    %c56 = arith.constant 56 : index
    %c0_32 = arith.constant 0 : index
    %50 = vector.load %arg11[%c56, %c0_32] : memref<256x128xf32, #tpu.memory_space<vmem>>, vector<192x128xf32>
    %51 = arith.truncf %50 : vector<192x128xf32> to vector<192x128xbf16>
    %c7_33 = arith.constant 7 : index
    %c0_34 = arith.constant 0 : index
    %c0_35 = arith.constant 0 : index
    %52 = vector.load %arg3[%c7_33, %c0_34, %c0_35] : memref<9x128x128xbf16, #tpu.memory_space<vmem>>, vector<1x128x128xbf16>
    %53 = vector.shape_cast %52 : vector<1x128x128xbf16> to vector<128x128xbf16>
    %cst_36 = arith.constant dense<0.000000e+00> : vector<192x128xf32>
    %54 = tpu.matmul %51, %53, %cst_36 {dimension_numbers = #tpu.dot_dimension_numbers<[1], [0], [0], [1], [0, 0, 1, 1], [], []>} : vector<192x128xbf16>, vector<128x128xbf16>, vector<192x128xf32> -> vector<192x128xf32>
    %55 = arith.addf %49, %54 : vector<192x128xf32>
    %c57 = arith.constant 57 : index
    %c0_37 = arith.constant 0 : index
    %56 = vector.load %arg11[%c57, %c0_37] : memref<256x128xf32, #tpu.memory_space<vmem>>, vector<192x128xf32>
    %57 = arith.truncf %56 : vector<192x128xf32> to vector<192x128xbf16>
    %c8_38 = arith.constant 8 : index
    %c0_39 = arith.constant 0 : index
    %c0_40 = arith.constant 0 : index
    %58 = vector.load %arg3[%c8_38, %c0_39, %c0_40] : memref<9x128x128xbf16, #tpu.memory_space<vmem>>, vector<1x128x128xbf16>
    %59 = vector.shape_cast %58 : vector<1x128x128xbf16> to vector<128x128xbf16>
    %cst_41 = arith.constant dense<0.000000e+00> : vector<192x128xf32>
    %60 = tpu.matmul %57, %59, %cst_41 {dimension_numbers = #tpu.dot_dimension_numbers<[1], [0], [0], [1], [0, 0, 1, 1], [], []>} : vector<192x128xbf16>, vector<128x128xbf16>, vector<192x128xf32> -> vector<192x128xf32>
    %61 = arith.addf %55, %60 : vector<192x128xf32>
    %c0_42 = arith.constant 0 : index
    %c0_43 = arith.constant 0 : index
    %62 = vector.load %arg4[%c0_42, %c0_43] : memref<1x128xf32, #tpu.memory_space<vmem>>, vector<1x128xf32>
    %63 = vector.broadcast %62 : vector<1x128xf32> to vector<192x128xf32>
    %64 = arith.addf %61, %63 : vector<192x128xf32>
    %cst_44 = arith.constant 0.000000e+00 : f32
    %65 = vector.broadcast %cst_44 : f32 to vector<192x128xf32>
    %66 = arith.maximumf %64, %65 : vector<192x128xf32>
    %c64_i32 = arith.constant 64 : i32
    %67 = arith.addi %c64_i32, %1 : i32
    %c32_i32 = arith.constant 32 : i32
    %68 = arith.subi %67, %c32_i32 : i32
    %69 = arith.index_cast %68 : i32 to index
    %c0_45 = arith.constant 0 : index
    %70 = vector.load %arg9[%69, %c0_45] : memref<640x1xbf16, #tpu.memory_space<vmem>>, vector<192x1xbf16>
    %71 = arith.extf %70 : vector<192x1xbf16> to vector<192x1xf32>
    %72 = vector.broadcast %71 : vector<192x1xf32> to vector<192x128xf32>
    %73 = arith.mulf %66, %72 : vector<192x128xf32>
    %c0_46 = arith.constant 0 : index
    %c0_47 = arith.constant 0 : index
    %74 = vector.load %arg12[%c0_46, %c0_47] : memref<192x128xf32, #tpu.memory_space<vmem>>, vector<192x128xf32>
    tpu.vector_store %arg12[%c0_46, %c0_47], %73 {strides = array<i32>} : memref<192x128xf32, #tpu.memory_space<vmem>>, vector<192x128xf32>,
    %c64 = arith.constant 64 : index
    %c0_48 = arith.constant 0 : index
    %75 = vector.load %arg11[%c64, %c0_48] : memref<256x128xf32, #tpu.memory_space<vmem>>, vector<128x128xf32>
    %76 = arith.truncf %75 : vector<128x128xf32> to vector<128x128xbf16>
    %c0_49 = arith.constant 0 : index
    %c0_50 = arith.constant 0 : index
    %77 = vector.load %arg7[%c0_49, %c0_50] : memref<128x128xbf16, #tpu.memory_space<vmem>>, vector<128x128xbf16>
    %cst_51 = arith.constant dense<0.000000e+00> : vector<128x128xf32>
    %78 = tpu.matmul %76, %77, %cst_51 {dimension_numbers = #tpu.dot_dimension_numbers<[1], [0], [0], [1], [0, 0, 1, 1], [], []>} : vector<128x128xbf16>, vector<128x128xbf16>, vector<128x128xf32> -> vector<128x128xf32>
    %c0_52 = arith.constant 0 : index
    %c0_53 = arith.constant 0 : index
    %79 = vector.load %arg8[%c0_52, %c0_53] : memref<1x128xf32, #tpu.memory_space<vmem>>, vector<1x128xf32>
    %80 = vector.broadcast %79 : vector<1x128xf32> to vector<128x128xf32>
    %81 = arith.addf %78, %80 : vector<128x128xf32>
    %c0_54 = arith.constant 0 : index
    %c0_55 = arith.constant 0 : index
    %82 = vector.load %arg6[%c0_54, %c0_55] : memref<1x128xf32, #tpu.memory_space<vmem>>, vector<1x128xf32>
    %83 = vector.broadcast %82 : vector<1x128xf32> to vector<128x128xf32>
    %84 = arith.addf %81, %83 : vector<128x128xf32>
    %c7_56 = arith.constant 7 : index
    %c0_57 = arith.constant 0 : index
    %85 = vector.load %arg12[%c7_56, %c0_57] : memref<192x128xf32, #tpu.memory_space<vmem>>, vector<128x128xf32>
    %86 = arith.truncf %85 : vector<128x128xf32> to vector<128x128xbf16>
    %c0_58 = arith.constant 0 : index
    %c0_59 = arith.constant 0 : index
    %c0_60 = arith.constant 0 : index
    %87 = vector.load %arg5[%c0_58, %c0_59, %c0_60] : memref<9x128x128xbf16, #tpu.memory_space<vmem>>, vector<1x128x128xbf16>
    %88 = vector.shape_cast %87 : vector<1x128x128xbf16> to vector<128x128xbf16>
    %cst_61 = arith.constant dense<0.000000e+00> : vector<128x128xf32>
    %89 = tpu.matmul %86, %88, %cst_61 {dimension_numbers = #tpu.dot_dimension_numbers<[1], [0], [0], [1], [0, 0, 1, 1], [], []>} : vector<128x128xbf16>, vector<128x128xbf16>, vector<128x128xf32> -> vector<128x128xf32>
    %90 = arith.addf %84, %89 : vector<128x128xf32>
    %c8_62 = arith.constant 8 : index
    %c0_63 = arith.constant 0 : index
    %91 = vector.load %arg12[%c8_62, %c0_63] : memref<192x128xf32, #tpu.memory_space<vmem>>, vector<128x128xf32>
    %92 = arith.truncf %91 : vector<128x128xf32> to vector<128x128xbf16>
    %c1_64 = arith.constant 1 : index
    %c0_65 = arith.constant 0 : index
    %c0_66 = arith.constant 0 : index
    %93 = vector.load %arg5[%c1_64, %c0_65, %c0_66] : memref<9x128x128xbf16, #tpu.memory_space<vmem>>, vector<1x128x128xbf16>
    %94 = vector.shape_cast %93 : vector<1x128x128xbf16> to vector<128x128xbf16>
    %cst_67 = arith.constant dense<0.000000e+00> : vector<128x128xf32>
    %95 = tpu.matmul %92, %94, %cst_67 {dimension_numbers = #tpu.dot_dimension_numbers<[1], [0], [0], [1], [0, 0, 1, 1], [], []>} : vector<128x128xbf16>, vector<128x128xbf16>, vector<128x128xf32> -> vector<128x128xf32>
    %96 = arith.addf %90, %95 : vector<128x128xf32>
    %c9_68 = arith.constant 9 : index
    %c0_69 = arith.constant 0 : index
    %97 = vector.load %arg12[%c9_68, %c0_69] : memref<192x128xf32, #tpu.memory_space<vmem>>, vector<128x128xf32>
    %98 = arith.truncf %97 : vector<128x128xf32> to vector<128x128xbf16>
    %c2_70 = arith.constant 2 : index
    %c0_71 = arith.constant 0 : index
    %c0_72 = arith.constant 0 : index
    %99 = vector.load %arg5[%c2_70, %c0_71, %c0_72] : memref<9x128x128xbf16, #tpu.memory_space<vmem>>, vector<1x128x128xbf16>
    %100 = vector.shape_cast %99 : vector<1x128x128xbf16> to vector<128x128xbf16>
    %cst_73 = arith.constant dense<0.000000e+00> : vector<128x128xf32>
    %101 = tpu.matmul %98, %100, %cst_73 {dimension_numbers = #tpu.dot_dimension_numbers<[1], [0], [0], [1], [0, 0, 1, 1], [], []>} : vector<128x128xbf16>, vector<128x128xbf16>, vector<128x128xf32> -> vector<128x128xf32>
    %102 = arith.addf %96, %101 : vector<128x128xf32>
    %c31_74 = arith.constant 31 : index
    %c0_75 = arith.constant 0 : index
    %103 = vector.load %arg12[%c31_74, %c0_75] : memref<192x128xf32, #tpu.memory_space<vmem>>, vector<128x128xf32>
    %104 = arith.truncf %103 : vector<128x128xf32> to vector<128x128xbf16>
    %c3_76 = arith.constant 3 : index
    %c0_77 = arith.constant 0 : index
    %c0_78 = arith.constant 0 : index
    %105 = vector.load %arg5[%c3_76, %c0_77, %c0_78] : memref<9x128x128xbf16, #tpu.memory_space<vmem>>, vector<1x128x128xbf16>
    %106 = vector.shape_cast %105 : vector<1x128x128xbf16> to vector<128x128xbf16>
    %cst_79 = arith.constant dense<0.000000e+00> : vector<128x128xf32>
    %107 = tpu.matmul %104, %106, %cst_79 {dimension_numbers = #tpu.dot_dimension_numbers<[1], [0], [0], [1], [0, 0, 1, 1], [], []>} : vector<128x128xbf16>, vector<128x128xbf16>, vector<128x128xf32> -> vector<128x128xf32>
    %108 = arith.addf %102, %107 : vector<128x128xf32>
    %c32_80 = arith.constant 32 : index
    %c0_81 = arith.constant 0 : index
    %109 = vector.load %arg12[%c32_80, %c0_81] : memref<192x128xf32, #tpu.memory_space<vmem>>, vector<128x128xf32>
    %110 = arith.truncf %109 : vector<128x128xf32> to vector<128x128xbf16>
    %c4_82 = arith.constant 4 : index
    %c0_83 = arith.constant 0 : index
    %c0_84 = arith.constant 0 : index
    %111 = vector.load %arg5[%c4_82, %c0_83, %c0_84] : memref<9x128x128xbf16, #tpu.memory_space<vmem>>, vector<1x128x128xbf16>
    %112 = vector.shape_cast %111 : vector<1x128x128xbf16> to vector<128x128xbf16>
    %cst_85 = arith.constant dense<0.000000e+00> : vector<128x128xf32>
    %113 = tpu.matmul %110, %112, %cst_85 {dimension_numbers = #tpu.dot_dimension_numbers<[1], [0], [0], [1], [0, 0, 1, 1], [], []>} : vector<128x128xbf16>, vector<128x128xbf16>, vector<128x128xf32> -> vector<128x128xf32>
    %114 = arith.addf %108, %113 : vector<128x128xf32>
    %c33_86 = arith.constant 33 : index
    %c0_87 = arith.constant 0 : index
    %115 = vector.load %arg12[%c33_86, %c0_87] : memref<192x128xf32, #tpu.memory_space<vmem>>, vector<128x128xf32>
    %116 = arith.truncf %115 : vector<128x128xf32> to vector<128x128xbf16>
    %c5_88 = arith.constant 5 : index
    %c0_89 = arith.constant 0 : index
    %c0_90 = arith.constant 0 : index
    %117 = vector.load %arg5[%c5_88, %c0_89, %c0_90] : memref<9x128x128xbf16, #tpu.memory_space<vmem>>, vector<1x128x128xbf16>
    %118 = vector.shape_cast %117 : vector<1x128x128xbf16> to vector<128x128xbf16>
    %cst_91 = arith.constant dense<0.000000e+00> : vector<128x128xf32>
    %119 = tpu.matmul %116, %118, %cst_91 {dimension_numbers = #tpu.dot_dimension_numbers<[1], [0], [0], [1], [0, 0, 1, 1], [], []>} : vector<128x128xbf16>, vector<128x128xbf16>, vector<128x128xf32> -> vector<128x128xf32>
    %120 = arith.addf %114, %119 : vector<128x128xf32>
    %c55_92 = arith.constant 55 : index
    %c0_93 = arith.constant 0 : index
    %121 = vector.load %arg12[%c55_92, %c0_93] : memref<192x128xf32, #tpu.memory_space<vmem>>, vector<128x128xf32>
    %122 = arith.truncf %121 : vector<128x128xf32> to vector<128x128xbf16>
    %c6_94 = arith.constant 6 : index
    %c0_95 = arith.constant 0 : index
    %c0_96 = arith.constant 0 : index
    %123 = vector.load %arg5[%c6_94, %c0_95, %c0_96] : memref<9x128x128xbf16, #tpu.memory_space<vmem>>, vector<1x128x128xbf16>
    %124 = vector.shape_cast %123 : vector<1x128x128xbf16> to vector<128x128xbf16>
    %cst_97 = arith.constant dense<0.000000e+00> : vector<128x128xf32>
    %125 = tpu.matmul %122, %124, %cst_97 {dimension_numbers = #tpu.dot_dimension_numbers<[1], [0], [0], [1], [0, 0, 1, 1], [], []>} : vector<128x128xbf16>, vector<128x128xbf16>, vector<128x128xf32> -> vector<128x128xf32>
    %126 = arith.addf %120, %125 : vector<128x128xf32>
    %c56_98 = arith.constant 56 : index
    %c0_99 = arith.constant 0 : index
    %127 = vector.load %arg12[%c56_98, %c0_99] : memref<192x128xf32, #tpu.memory_space<vmem>>, vector<128x128xf32>
    %128 = arith.truncf %127 : vector<128x128xf32> to vector<128x128xbf16>
    %c7_100 = arith.constant 7 : index
    %c0_101 = arith.constant 0 : index
    %c0_102 = arith.constant 0 : index
    %129 = vector.load %arg5[%c7_100, %c0_101, %c0_102] : memref<9x128x128xbf16, #tpu.memory_space<vmem>>, vector<1x128x128xbf16>
    %130 = vector.shape_cast %129 : vector<1x128x128xbf16> to vector<128x128xbf16>
    %cst_103 = arith.constant dense<0.000000e+00> : vector<128x128xf32>
    %131 = tpu.matmul %128, %130, %cst_103 {dimension_numbers = #tpu.dot_dimension_numbers<[1], [0], [0], [1], [0, 0, 1, 1], [], []>} : vector<128x128xbf16>, vector<128x128xbf16>, vector<128x128xf32> -> vector<128x128xf32>
    %132 = arith.addf %126, %131 : vector<128x128xf32>
    %c57_104 = arith.constant 57 : index
    %c0_105 = arith.constant 0 : index
    %133 = vector.load %arg12[%c57_104, %c0_105] : memref<192x128xf32, #tpu.memory_space<vmem>>, vector<128x128xf32>
    %134 = arith.truncf %133 : vector<128x128xf32> to vector<128x128xbf16>
    %c8_106 = arith.constant 8 : index
    %c0_107 = arith.constant 0 : index
    %c0_108 = arith.constant 0 : index
    %135 = vector.load %arg5[%c8_106, %c0_107, %c0_108] : memref<9x128x128xbf16, #tpu.memory_space<vmem>>, vector<1x128x128xbf16>
    %136 = vector.shape_cast %135 : vector<1x128x128xbf16> to vector<128x128xbf16>
    %cst_109 = arith.constant dense<0.000000e+00> : vector<128x128xf32>
    %137 = tpu.matmul %134, %136, %cst_109 {dimension_numbers = #tpu.dot_dimension_numbers<[1], [0], [0], [1], [0, 0, 1, 1], [], []>} : vector<128x128xbf16>, vector<128x128xbf16>, vector<128x128xf32> -> vector<128x128xf32>
    %138 = arith.addf %132, %137 : vector<128x128xf32>
    %cst_110 = arith.constant 0.000000e+00 : f32
    %139 = vector.broadcast %cst_110 : f32 to vector<128x128xf32>
    %140 = arith.maximumf %138, %139 : vector<128x128xf32>
    %141 = vector.shape_cast %140 : vector<128x128xf32> to vector<1x128x128xf32>
    %c0_111 = arith.constant 0 : index
    %c0_112 = arith.constant 0 : index
    %c0_113 = arith.constant 0 : index
    %142 = vector.load %arg10[%c0_111, %c0_112, %c0_113] : memref<1x128x128xf32, #tpu.memory_space<vmem>>, vector<1x128x128xf32>
    tpu.vector_store %arg10[%c0_111, %c0_112, %c0_113], %141 {strides = array<i32>} : memref<1x128x128xf32, #tpu.memory_space<vmem>>, vector<1x128x128xf32>,
    return
  }
  func.func @transform_0(%arg0: i32, %arg1: i32) -> (i32, i32, i32) {
    %c0_i32 = arith.constant 0 : i32
    %c0_i32_0 = arith.constant 0 : i32
    %c0_i32_1 = arith.constant 0 : i32
    return %arg0, %c0_i32, %c0_i32_0 : i32, i32, i32
  }
  func.func @transform_1(%arg0: i32, %arg1: i32) -> (i32, i32, i32) {
    %c0_i32 = arith.constant 0 : i32
    %c0_i32_0 = arith.constant 0 : i32
    %c0_i32_1 = arith.constant 0 : i32
    %c0_i32_2 = arith.constant 0 : i32
    return %c0_i32, %c0_i32_0, %c0_i32_1 : i32, i32, i32
  }
  func.func @transform_2(%arg0: i32, %arg1: i32) -> (i32, i32) {
    %c0_i32 = arith.constant 0 : i32
    %c0_i32_0 = arith.constant 0 : i32
    %c0_i32_1 = arith.constant 0 : i32
    return %c0_i32, %c0_i32_0 : i32, i32
  }
  func.func @transform_3(%arg0: i32, %arg1: i32) -> (i32, i32, i32) {
    %c0_i32 = arith.constant 0 : i32
    %c0_i32_0 = arith.constant 0 : i32
    %c0_i32_1 = arith.constant 0 : i32
    %c0_i32_2 = arith.constant 0 : i32
    return %c0_i32, %c0_i32_0, %c0_i32_1 : i32, i32, i32
  }
  func.func @transform_4(%arg0: i32, %arg1: i32) -> (i32, i32) {
    %c0_i32 = arith.constant 0 : i32
    %c0_i32_0 = arith.constant 0 : i32
    %c0_i32_1 = arith.constant 0 : i32
    return %c0_i32, %c0_i32_0 : i32, i32
  }
  func.func @transform_5(%arg0: i32, %arg1: i32) -> (i32, i32) {
    %c0_i32 = arith.constant 0 : i32
    %c0_i32_0 = arith.constant 0 : i32
    %c0_i32_1 = arith.constant 0 : i32
    return %c0_i32, %c0_i32_0 : i32, i32
  }
  func.func @transform_6(%arg0: i32, %arg1: i32) -> (i32, i32) {
    %c0_i32 = arith.constant 0 : i32
    %c0_i32_0 = arith.constant 0 : i32
    %c0_i32_1 = arith.constant 0 : i32
    return %c0_i32, %c0_i32_0 : i32, i32
  }
  func.func @transform_7(%arg0: i32, %arg1: i32) -> (i32, i32) {
    %c0_i32 = arith.constant 0 : i32
    %c0_i32_0 = arith.constant 0 : i32
    %c0_i32_1 = arith.constant 0 : i32
    return %c0_i32, %c0_i32_0 : i32, i32
  }
  func.func @transform_8(%arg0: i32, %arg1: i32) -> (i32, i32, i32) {
    %c0_i32 = arith.constant 0 : i32
    %c0_i32_0 = arith.constant 0 : i32
    return %arg0, %arg1, %c0_i32 : i32, i32, i32
  }
}

</mosaic_0001>

<bundles_post_ra>
// kernel: tpu_custom_call.1
= control target key start
LH: loop header
LB: loop body
LE: loop exit
PB: predicated region body
PF: predicated region fallthrough
CT: control target
= control target key end

     0   :  { %s8745_s0 = inlined_call_operand.hbm [shape: bf16[2,640,128], index: 0, kind: input, shape index: {}]   ;;  %s8746_s1 = inlined_call_operand.hbm [shape: bf16[9,128,128], index: 1, kind: input, shape index: {}]   ;;  %s8747_s2 = inlined_call_operand.vmem [shape: f32[1,128], index: 2, kind: input, shape index: {}]   ;;  %s8748_s3 = inlined_call_operand.hbm [shape: bf16[9,128,128], index: 3, kind: input, shape index: {}]   ;;  %s8749_s4 = inlined_call_operand.vmem [shape: f32[1,128], index: 4, kind: input, shape index: {}]   ;;  %s8750_s5 = inlined_call_operand.vmem [shape: bf16[128,128], index: 5, kind: input, shape index: {}]   ;;  %s8751_s6 = inlined_call_operand.vmem [shape: f32[1,128], index: 6, kind: input, shape index: {}]   ;;  %s8752_s7 = inlined_call_operand.vmem [shape: bf16[640,1], index: 7, kind: input, shape index: {}]   ;;  %s8753_s8 = inlined_call_operand.hbm [shape: f32[2,512,128], index: 8, kind: output, shape index: {}]  }
   0x1   :  { %8770 = sst [smem:[#allocation22_spill]] %s8746_s1 }
   0x2   :  { %8771 = sst [smem:[#allocation23_spill]] %s8748_s3 }
   0x3   :  { %8772 = sst [smem:[#allocation24_spill]] %s8749_s4 }
   0x4   :  { %8773 = sst [smem:[#allocation25_spill]] %s8751_s6 }
   0x5   :  { %8774 = sst [smem:[#allocation26_spill]] %s8753_s8 }
   0x6   :  { %13 = vsyncpa [#allocation5], 0 }
   0x7   :  { %15 = vsyncpa [#allocation5 + $0x1], 0 }
   0x8   :  { %16 = vsyncpa [#allocation8], 0 }
   0x9   :  { %17 = vsyncpa [#allocation6], 0 }
   0xa   :  { %19 = vsyncpa [#allocation6 + $0x1], 0  ;;  %s7492_s27 = smov 0   ;;  %s7494_s28 = smov 0  }
   0xb   :  { %s7496_s29 = smov 0   ;;  %s7498_s30 = smov 0  }
   0xc   :  { %s7500_s9 = smov 0   ;;  %s7502_s10 = smov 0  }
   0xd   :  { %s7504_s11 = smov 0   ;;  %s7506_s12 = smov 0  }
   0xe   :  { %s7508_s13 = smov 0   ;;  %s7510_s14 = smov 0  }
   0xf   :  { %s7512_s15 = smov 0  }
  0x10 LB: > { %8775 = sst [smem:[#allocation14_spill]] %s7396_s27  ;;  %s5173_s16 = sadd.s32 4294967295, %s7436_s15   ;;  %s7436_s15 = sphi %s7512_s15, %s25_s15   ;;  %s7432_s14 = sphi %s7510_s14, %s8854_s14   ;;  %s7428_s13 = sphi %s7508_s13, %s8846_s13   ;;  %s7424_s12 = sphi %s7506_s12, %s8853_s12   ;;  %s7420_s11 = sphi %s7504_s11, %s8845_s11   ;;  %s7416_s10 = sphi %s7502_s10, %s8852_s10   ;;  %s7412_s9 = sphi %s7500_s9, %s8851_s9   ;;  %s7408_s30 = sphi %s7498_s30, %s8850_s30   ;;  %s7404_s29 = sphi %s7496_s29, %s8849_s29   ;;  %s7400_s28 = sphi %s7494_s28, %s8848_s28   ;;  %s7396_s27 = sphi %s7492_s27, %s8847_s27  }
  0x11   : > { %8776 = sst [smem:[#allocation15_spill]] %s7424_s12  ;;  %s5174_s17 = sadd.s32 4294967294, %s7436_s15  }
  0x12   : > { %8777 = sst [smem:[#allocation16_spill]] %s7428_s13  ;;  %p57_p0 = scmp.ne.s32.totalorder %s7412_s9, %s7408_s30 }
  0x13   : > { %p7548_p1 = scmp.eq.s32.totalorder %s5173_s16, 0  ;;  %p229_p2 = scmp.ne.s32.totalorder %s7404_s29, %s7400_s28 }
  0x14   : > { %p230_p4 = scmp.eq.s32.totalorder %s5173_s16, 7  ;;  %p235_p5 = scmp.ne.s32.totalorder %s7400_s28, %s7396_s27 }
  0x15   : > { %s8778_s18 = scalar_select %p7548_p1, 1, 0 }
  0x16   : > { %p7557_p3 = por %p7548_p1, %p57_p0  ;;  %p236_p6 = scmp.eq.s32.totalorder %s5174_s17, 7 }
  0x17   : > { %p7563_p7 = por %p230_p4, %p229_p2  ;;  %p5175_p8 = scmp.ge.s32.totalorder %s7436_s15, 1 }
  0x18   : > { %s8779_s20 = scalar_select %p7557_p3, 1, 0 }
  0x19   : > { %s8780_s21 = scalar_select %p7563_p7, 1, 0 }
  0x1a   : > { %p7568_p9 = por %p236_p6, %p235_p5  ;;  %p243_p10 = scmp.lt.s32.totalorder %s7436_s15, 9 }
  0x1b   : > { %8781 = sst [smem:[#allocation17_spill]] %s8780_s21  ;;  %s7438_s24 = smov [#allocation7]  }
  0x1c   : > { %s8782_s22 = scalar_select %p7568_p9, 1, 0 }
  0x1d   : > { %p7573_p11 = pnand %p5175_p8, %p243_p10  ;;  %s255_s25 = sshll.u32 %s7438_s24, 4  ;;  %s256_s25 = int_to_ptr.vmem [resolvable:$true] %s255_s25 }
  0x1e   : > { %8783 = sst [smem:[#allocation18_spill]] %s8782_s22  ;;  %s7439_s30 = smov [#allocation9]  }
  0x1f   : > { %s8784_s23 = scalar_select %p7573_p11, 1, 0 }
  0x20   : > { %p6889_p12 = pneg %p7573_p11  ;;  %s271_s16 = sshll.u32 %s7439_s30, 4  ;;  %s7585_s16 = int_to_ptr.vmem [resolvable:$true] %s271_s16 }
  0x21   : > { %s8786_s1 = sld [smem:[#allocation22_spill]] }
  0x22   : > { %p7581_p13 = pnand %p6889_p12, %p7548_p1 }
  0x24   : > { %p7226_p2 = pneg %p7581_p13 }
  0x27   : > { %s7224_s22 = scalar_lea.hbm %s8786_s1, 9216 }
  0x28   : > { %p7225_p0 = scmp.ne.s32.totalorder %s8786_s1, %s7224_s22  ;;  %p7231_p6 = scmp.lt.u32.totalorder %s7224_s22, %s8786_s1 }
  0x2a   : > { %p7227_p4 = pnand %p7226_p2, %p7225_p0 }
  0x2c   : > { %p7228_p5 = pneg %p7227_p4 }
  0x2e   : > { %p7233_p8 = pnand %p7231_p6, %p7228_p5 }
  0x30   : > { %7236 = shalt.err (!%p7233_p8)
}
  0x31   : > { %s7237_s30 = scalar_lea.vmem %s256_s25, 9216  ;;  %p7245_p7 = scmp.lt.s32.totalorder %s256_s25, %s256_s25 }
  0x32   : > { %p7238_p10 = scmp.ne.s32.totalorder %s256_s25, %s7237_s30  ;;  %p7246_p1 = scmp.lt.s32.totalorder %s7237_s30, %s7237_s30 }
  0x34   : > { %p7240_p12 = pnand %p7238_p10, %p7226_p2  ;;  %p7247_p3 = por %p7246_p1, %p7245_p7 }
  0x36   : > { %p7241_p9 = pneg %p7240_p12 }
  0x38   : > { %p7248_p11 = pnand %p7247_p3, %p7241_p9 }
  0x3a   : > { %7251 = shalt.err (!%p7248_p11)
}
  0x3b   : > { %s8764_s27 = smov 64   ;;  %s8765_s19 = smov 4  }
  0x3c   : > { %6892 = dma.hbm_to_vmem [thread:$0]  (!%p7581_p13), %s8786_s1, 9216, %s256_s25, [#allocation8], %s8764_s27, %s8764_s27, %s8765_s19  }
  0x3d   : > { %s8787_s3 = sld [smem:[#allocation23_spill]] }
  0x43   : > { %s7252_s24 = scalar_lea.hbm %s8787_s3, 9216 }
  0x44   : > { %p7253_p1 = scmp.ne.s32.totalorder %s8787_s3, %s7252_s24  ;;  %p7259_p9 = scmp.lt.u32.totalorder %s7252_s24, %s8787_s3 }
  0x46   : > { %p7255_p3 = pnand %p7253_p1, %p7226_p2 }
  0x48   : > { %p7256_p7 = pneg %p7255_p3 }
  0x4a   : > { %p7261_p11 = pnand %p7259_p9, %p7256_p7 }
  0x4c   : > { %7264 = shalt.err (!%p7261_p11)
}
  0x4d   : > { %s7265_s25 = scalar_lea.vmem %s7585_s16, 9216  ;;  %p7273_p6 = scmp.lt.s32.totalorder %s7585_s16, %s7585_s16 }
  0x4e   : > { %p7266_p0 = scmp.ne.s32.totalorder %s7585_s16, %s7265_s25  ;;  %p7274_p8 = scmp.lt.s32.totalorder %s7265_s25, %s7265_s25 }
  0x50   : > { %p7268_p4 = pnand %p7266_p0, %p7226_p2  ;;  %p7275_p10 = por %p7274_p8, %p7273_p6 }
  0x52   : > { %p7269_p5 = pneg %p7268_p4 }
  0x54   : > { %p7276_p12 = pnand %p7275_p10, %p7269_p5 }
  0x56   : > { %7279 = shalt.err (!%p7276_p12)
}
  0x57   : > { %6895 = dma.hbm_to_vmem [thread:$0]  (!%p7581_p13), %s8787_s3, 9216, %s7585_s16, [#allocation8], %s8764_s27, %s8764_s27, %s8765_s19  }
  0x58   : > { %s34_s12 = sadd.s32 1, %s7428_s13  ;;  %s37_s26 = sadd.s32 1, %s7432_s14 }
  0x59   : > { %p35_p2 = scmp.ge.s32.totalorder %s34_s12, 4  ;;  %s44_s8 = sadd.s32 1, %s7416_s10 }
  0x5a   : > { %p51_p1 = scmp.ne.s32.totalorder %s7416_s10, %s7412_s9  ;;  %p52_p3 = scmp.eq.s32.totalorder %s7436_s15, 0 }
  0x5b   : > { %s8856_s12 = smov (%p35_p2, %s34_s12), 0  ;;  %s8858_s26 = smov (!%p35_p2, %s37_s26), %s7432_s14 }
  0x5c   : > { %8788 = sst [smem:[#allocation19_spill]] %s8856_s12  ;;  %p7649_p7 = por %p52_p3, %p51_p1 }
  0x5d   : > { %s215_s22 = ssub.s32 %s7428_s13, %s8856_s12  ;;  %p39_p13 = scmp.ge.s32.totalorder %s8858_s26, 2 }
  0x5e   : > { %p6906_p9 = scmp.lt.s32.totalorder %s7436_s15, 8  ;;  %s297_s16 = sand.u32 1, %s7416_s10  }
  0x5f   : > { %s6875_s17 = smul.u32 5120, %s7432_s14  ;;  %s8860_s26 = smov (%p39_p13, %s8858_s26), 0 }
  0x60   : > { %s6874_s24 = smul.u32 320, %s297_s16  ;;  %s41_s30 = ssub.s32 %s7432_s14, %s8860_s26 }
  0x61   : > { %s7665_s6 = scalar_lea.hbm %s8745_s0, %s6875_s17  ;;  %p42_p11 = scmp.eq.s32.totalorder %s41_s30, 0 }
  0x62   : > { %s216_s27 = sor.u32 %s215_s22, %s41_s30  ;;  %s8790_s1 = sadd.s32 1, %s7404_s29 }
  0x63   : > { %p217_p0 = scmp.eq.s32.totalorder %s216_s27, 0  ;;  %s301_s12 = scalar_lea.vmem [#allocation4], %s6874_s24 }
  0x64   : > { %s7668_s19 = scalar_select %p42_p11, %s7416_s10, %s44_s8  }
  0x65   : > { %s7673_s3 = scalar_select %p217_p0, %s7404_s29, %s8790_s1  }
  0x66   : > { %s308_s13 = sshll.u32 %s301_s12, 4  ;;  %p7679_p4 = pnand %p6906_p9, %p7649_p7  ;;  %s7683_s13 = int_to_ptr.vmem [resolvable:$true] %s308_s13 }
  0x67   : > { %s7685_s22 = scalar_lea.sflag [#allocation5], %s297_s16  ;;  %s7280_s27 = scalar_lea.hbm %s7665_s6, 5120 }
  0x68   : > { %p7281_p5 = scmp.ne.s32.totalorder %s7665_s6, %s7280_s27  ;;  %p7282_p6 = pneg %p7679_p4 }
  0x69   : > { %s7285_s8 = scalar_lea.hbm %s8745_s0, 10240  ;;  %p7286_p12 = scmp.lt.u32.totalorder %s7665_s6, %s8745_s0 }
  0x6a   : > { %p7283_p8 = pnand %p7282_p6, %p7281_p5  ;;  %p7287_p2 = scmp.lt.u32.totalorder %s7285_s8, %s7280_s27 }
  0x6b   : > { %p7289_p3 = scmp.lt.u32.totalorder %s7280_s27, %s7665_s6 }
  0x6c   : > { %p7284_p10 = pneg %p7283_p8  ;;  %p7288_p1 = por %p7287_p2, %p7286_p12 }
  0x6e   : > { %p7290_p7 = por %p7289_p3, %p7288_p1 }
  0x70   : > { %p7291_p13 = pnand %p7290_p7, %p7284_p10 }
  0x72   : > { %7294 = shalt.err (!%p7291_p13)
}
  0x73   : > { %s7295_s16 = scalar_lea.vmem %s7683_s13, 5120  ;;  %s7442_s24 = smov [#allocation4]  }
  0x74   : > { %p7296_p9 = scmp.ne.s32.totalorder %s7683_s13, %s7295_s16  ;;  %s7300_s30 = sshll.u32 %s7442_s24, 4  ;;  %s7301_s30 = int_to_ptr.vmem [resolvable:$false] %s7300_s30 }
  0x75   : > { %s7302_s4 = scalar_lea.vmem %s7301_s30, 10240  ;;  %p7303_p5 = scmp.lt.s32.totalorder %s7683_s13, %s7301_s30 }
  0x76   : > { %p7298_p11 = pnand %p7296_p9, %p7282_p6  ;;  %p7304_p8 = scmp.lt.s32.totalorder %s7302_s4, %s7295_s16 }
  0x78   : > { %p7299_p0 = pneg %p7298_p11  ;;  %p7305_p12 = por %p7304_p8, %p7303_p5 }
  0x7a   : > { %p7306_p2 = pnand %p7305_p12, %p7299_p0 }
  0x7c   : > { %7309 = shalt.err (!%p7306_p2)
}
  0x7d   : > { %s8792_s27 = smov 4   ;;  %s8793_s1 = smov 64  }
  0x7e   : > { %6899 = dma.hbm_to_vmem [thread:$0]  (!%p7679_p4), %s7665_s6, 5120, %s7683_s13, %s7685_s22, %s8793_s1, %s8793_s1, %s8792_s27  }
  0x7f   : > { %p8794_p6 = scmp.ne.s32.totalorder %s8784_s23, 0 }
  0x81   : > { %320 = sbr.rel (%p8794_p6) target bundleno = 1266 (0x4f2), region = 52 }
  0x88   : > { %s322_s12 = sand.u32 1, %s7412_s9   ;;  %p8795_p10 = scmp.ne.s32.totalorder %s8779_s20, 0 }
  0x89   : > { %s6876_s8 = smul.u32 320, %s322_s12  ;;  %s323_s21 = scalar_lea.sflag [#allocation5], %s322_s12 }
  0x8b   : > { %s326_s17 = scalar_lea.vmem [#allocation4], %s6876_s8 }
  0x8c   : > { %7383 = dma.done.wait (%p8795_p10), %s323_s21, 5120  }
  0x8d   : > { %7385 = vsyncadd (%p8795_p10), %s323_s21, 4294962176  ;;  %p8796_p1 = scmp.ne.s32.totalorder %s8778_s18, 0 }
  0x8f   : > { %7387 = dma.done.wait (%p8796_p1), [#allocation8], 18432  }
  0x90   : > { %7389 = vsyncadd (%p8796_p1), [#allocation8], 4294948864  ;;  %s5184_s13 = sshll.u32 %s7420_s11, 7  ;;  %v7057_v0 = vld [vmem:[#allocation7] sm:$0xff]   ;;  %v7058_v1 = vld [vmem:[#allocation7 + $0x8] sm:$0xff]   ;;  %s5343_s25 = sshll.u32 %s7420_s11, 4 }
  0x91   : > { %s370_s23 = sshra.s32 %s5184_s13, 3  ;;  %5866 = vmatprep.subr.bf16.mxu0 %v7057_v0  ;;  %v7059_v2 = vld [vmem:[#allocation7 + $0x10] sm:$0xff]   ;;  %v7060_v3 = vld [vmem:[#allocation7 + $0x18] sm:$0xff]   ;;  %v7061_v15 = vld [vmem:[#allocation7 + $0x20] sm:$0xff]   ;;  %s2762_s18 = sadd.s32 32, %s5184_s13 }
  0x92   : > { %s5185_s6 = sshll.u32 %s370_s23, 2  ;;  %5867 = vmatpush3.bf16.msra.mxu0 %v7057_v0  ;;  %v7062_v32 = vld [vmem:[#allocation7 + $0x28] sm:$0xff]   ;;  %v7063_v44 = vld [vmem:[#allocation7 + $0x30] sm:$0xff]   ;;  %v7064_v63 = vld [vmem:[#allocation7 + $0x38] sm:$0xff]   ;;  %s2763_s16 = sshra.s32 %s2762_s18, 3 }
  0x93   : > { %5868 = vmatprep.subr.bf16.mxu0 %v7058_v1  ;;  %s7730_s20 = scalar_lea.vmem %s326_s17, %s5185_s6 [#allocation4]  ;;  %s5259_s4 = sshll.u32 %s2763_s16, 2 }
  0x94   : > { %v5349_v4 = vld [vmem:[%s7730_s20] sm:$0xff]   ;;  %v5460_v5 = vld [vmem:[%s7730_s20 + $0x8] sm:$0xff]   ;;  %v5461_v6 = vld [vmem:[%s7730_s20 + $0x10] sm:$0xff]   ;;  %s8104_s12 = scalar_lea.vmem %s8752_s7, %s5259_s4  ;;  %s8836_s17 = sld [smem:[#allocation24_spill]] }
  0x95   : > { %v5350_v7 = vunpack.c.l.bf16 %v5349_v4  ;;  %v5351_v8 = vunpack.c.h.bf16 %v5349_v4  ;;  %v5354_v9 = vunpack.c.l.bf16 %v5460_v5  ;;  %v5355_v10 = vunpack.c.h.bf16 %v5460_v5  ;;  %v5462_v13 = vld [vmem:[%s7730_s20 + $0x18] sm:$0xff]   ;;  %v5463_v14 = vld [vmem:[%s7730_s20 + $0x20] sm:$0xff]   ;;  %v5464_v20 = vld [vmem:[%s7730_s20 + $0x28] sm:$0xff]   ;;  %s364_s13 = sand.u32 1, %s7400_s28   ;;  %s8837_s18 = sld [smem:[#allocation15_spill]] }
  0x96   : > { %5869 = vmatpush3.bf16.msra.mxu0 %v7058_v1  ;;  %v5358_v11 = vunpack.c.l.bf16 %v5461_v6  ;;  %v5359_v12 = vunpack.c.h.bf16 %v5461_v6  ;;  %v5362_v16 = vunpack.c.l.bf16 %v5462_v13  ;;  %v5363_v17 = vunpack.c.h.bf16 %v5462_v13  ;;  %v5465_v23 = vld [vmem:[%s7730_s20 + $0x30] sm:$0xff]   ;;  %v5466_v26 = vld [vmem:[%s7730_s20 + $0x38] sm:$0xff]   ;;  %v5467_v27 = vld [vmem:[%s7730_s20 + $0x40] sm:$0xff]   ;;  %s5183_s23 = sshll.u32 %s364_s13, 7  ;;  %s8838_s30 = sld [smem:[#allocation17_spill]] }
  0x97   : > { %5870 = vmatprep.subr.bf16.mxu0 %v7059_v2  ;;  %438 = vst [vmem:[#allocation2] sm:$0xff] %v5350_v7  ;;  %439 = vst [vmem:[#allocation2 + $0x8] sm:$0xff] %v5351_v8  ;;  %v5366_v18 = vunpack.c.l.bf16 %v5463_v14  ;;  %v5367_v19 = vunpack.c.h.bf16 %v5463_v14  ;;  %v5370_v21 = vunpack.c.l.bf16 %v5464_v20  ;;  %v5371_v22 = vunpack.c.h.bf16 %v5464_v20  ;;  %v5468_v33 = vld [vmem:[%s7730_s20 + $0x48] sm:$0xff]   ;;  %v5469_v34 = vld [vmem:[%s7730_s20 + $0x50] sm:$0xff]   ;;  %s8642_s6 = scalar_lea.vmem [#allocation10], %s5183_s23  ;;  %s8839_s27 = sld [smem:[#allocation26_spill]] }
  0x98   : > { %440 = vst [vmem:[#allocation2 + $0x10] sm:$0xff] %v5354_v9  ;;  %441 = vst [vmem:[#allocation2 + $0x18] sm:$0xff] %v5355_v10  ;;  %v5374_v24 = vunpack.c.l.bf16 %v5465_v23  ;;  %v5375_v25 = vunpack.c.h.bf16 %v5465_v23  ;;  %v5378_v28 = vunpack.c.l.bf16 %v5466_v26  ;;  %v5379_v29 = vunpack.c.h.bf16 %v5466_v26  ;;  %v5470_v45 = vld [vmem:[%s7730_s20 + $0x58] sm:$0xff]   ;;  %v5471_v46 = vld [vmem:[%s7730_s20 + $0x60] sm:$0xff]   ;;  %s5063_s24 = sshll.u32 %s8642_s6, 4  ;;  %s8684_s8 = scalar_lea.sflag [#allocation6], %s364_s13  ;;  %s8677_s24 = int_to_ptr.vmem [resolvable:$true] %s5063_s24 }
  0x99   : > { %442 = vst [vmem:[#allocation2 + $0x20] sm:$0xff] %v5358_v11  ;;  %443 = vst [vmem:[#allocation2 + $0x28] sm:$0xff] %v5359_v12  ;;  %v5382_v30 = vunpack.c.l.bf16 %v5467_v27  ;;  %v5383_v31 = vunpack.c.h.bf16 %v5467_v27  ;;  %v5386_v37 = vunpack.c.l.bf16 %v5468_v33  ;;  %v5387_v38 = vunpack.c.h.bf16 %v5468_v33  ;;  %v7065_v6 = vld [vmem:[#allocation7 + $0x80] sm:$0xff]   ;;  %v7066_v20 = vld [vmem:[#allocation7 + $0x88] sm:$0xff]   ;;  %s7310_s21 = scalar_lea.vmem %s8677_s24, 2048 }
  0x9a   : > { %5871 = vmatpush3.bf16.msra.mxu0 %v7059_v2  ;;  %444 = vst [vmem:[#allocation2 + $0x30] sm:$0xff] %v5362_v16  ;;  %445 = vst [vmem:[#allocation2 + $0x38] sm:$0xff] %v5363_v17  ;;  %v5390_v39 = vunpack.c.l.bf16 %v5469_v34  ;;  %v5391_v40 = vunpack.c.h.bf16 %v5469_v34  ;;  %v5394_v51 = vunpack.c.l.bf16 %v5470_v45  ;;  %v5395_v52 = vunpack.c.h.bf16 %v5470_v45  ;;  %p7311_p4 = scmp.ne.s32.totalorder %s8677_s24, %s7310_s21 }
  0x9b   : > { %5872 = vmatprep.subr.bf16.mxu0 %v7060_v3  ;;  %446 = vst [vmem:[#allocation2 + $0x40] sm:$0xff] %v5366_v18  ;;  %447 = vst [vmem:[#allocation2 + $0x48] sm:$0xff] %v5367_v19  ;;  %v5398_v53 = vunpack.c.l.bf16 %v5471_v46  ;;  %v5399_v54 = vunpack.c.h.bf16 %v5471_v46  ;;  %s5344_s22 = sshll.u32 %s8837_s18, 6 }
  0x9c   : > { %448 = vst [vmem:[#allocation2 + $0x50] sm:$0xff] %v5370_v21  ;;  %449 = vst [vmem:[#allocation2 + $0x58] sm:$0xff] %v5371_v22  ;;  %v7067_v21 = vld [vmem:[#allocation7 + $0x90] sm:$0xff]   ;;  %s5060_s16 = sadd.s32 %s5344_s22, %s5343_s25  ;;  %p8841_p3 = scmp.ne.s32.totalorder %s8838_s30, 0 }
  0x9d   : > { %450 = vst [vmem:[#allocation2 + $0x60] sm:$0xff] %v5374_v24  ;;  %451 = vst [vmem:[#allocation2 + $0x68] sm:$0xff] %v5375_v25  ;;  %v7068_v24 = vld [vmem:[#allocation7 + $0x98] sm:$0xff]   ;;  %v7069_v25 = vld [vmem:[#allocation7 + $0xa0] sm:$0xff]   ;;  %s5345_s11 = sshll.u32 %s5060_s16, 7  ;;  %s8840_s1 = smov %s8839_s27 }
  0x9e   : > { %5873 = vmatpush3.bf16.msra.mxu0 %v7060_v3  ;;  %452 = vst [vmem:[#allocation2 + $0x70] sm:$0xff] %v5378_v28  ;;  %453 = vst [vmem:[#allocation2 + $0x78] sm:$0xff] %v5379_v29  ;;  %v470_v35 = vld [vmem:[#allocation2 + $0x7] sm:$0xff]  ;;  %p7312_p7 = pnand %p7311_p4, %p8841_p3 }
  0x9f   : > { %5874 = vmatprep.subr.bf16.mxu0 %v7061_v15  ;;  %454 = vst [vmem:[#allocation2 + $0x80] sm:$0xff] %v5382_v30  ;;  %455 = vst [vmem:[#allocation2 + $0x88] sm:$0xff] %v5383_v31  ;;  %v471_v36 = vld [vmem:[#allocation2 + $0xf] sm:$0xff]  ;;  %v472_v8 = vld [vmem:[#allocation2 + $0x17] sm:$0xff] }
  0xa0   : > { %v494_v41 = vpack.c.bf16 %v471_v36, %v470_v35  ;;  %v7743_v42 = vld [vmem:[#allocation2 + $0x1f] sm:$0xff]  ;;  %v7745_v43 = vld [vmem:[#allocation2 + $0x27] sm:$0xff]  ;;  %456 = vst [vmem:[#allocation2 + $0x90] sm:$0xff] %v5386_v37  ;;  %457 = vst [vmem:[#allocation2 + $0x98] sm:$0xff] %v5387_v38  ;;  %p7313_p13 = pneg %p7312_p7 }
  0xa1   : > { %458 = vst [vmem:[#allocation2 + $0xa0] sm:$0xff] %v5390_v39  ;;  %459 = vst [vmem:[#allocation2 + $0xa8] sm:$0xff] %v5391_v40  ;;  %v1207_v47 = vpack.c.bf16 %v7745_v43, %v7743_v42  ;;  %v7751_v48 = vld [vmem:[#allocation2 + $0x2f] sm:$0xff]  ;;  %v7753_v49 = vld [vmem:[#allocation2 + $0x37] sm:$0xff] }
  0xa2   : > { %5875 = vmatpush3.bf16.msra.mxu0 %v7061_v15  ;;  %5882 = vmatprep.mubr.bf16.mxu0 %v494_v41  ;;  %v7755_v50 = vld [vmem:[#allocation2 + $0x3f] sm:$0xff]  ;;  %v7757_v55 = vld [vmem:[#allocation2 + $0x47] sm:$0xff]  ;;  %v1208_v58 = vpack.c.bf16 %v7753_v49, %v7751_v48  ;;  %460 = vst [vmem:[#allocation2 + $0xb0] sm:$0xff] %v5394_v51  ;;  %461 = vst [vmem:[#allocation2 + $0xb8] sm:$0xff] %v5395_v52  ;;  %v495_v15 = vpack.c.bf16 %v7743_v42, %v472_v8 }
  0xa3   : > { %5876 = vmatprep.subr.bf16.mxu0 %v7062_v32  ;;  %v7759_v56 = vld [vmem:[#allocation2 + $0x4f] sm:$0xff]  ;;  %v7761_v57 = vld [vmem:[#allocation2 + $0x57] sm:$0xff]  ;;  %462 = vst [vmem:[#allocation2 + $0xc0] sm:$0xff] %v5398_v53  ;;  %463 = vst [vmem:[#allocation2 + $0xc8] sm:$0xff] %v5399_v54  ;;  %v1209_v61 = vpack.c.bf16 %v7757_v55, %v7755_v50  ;;  %v496_v18 = vpack.c.bf16 %v7751_v48, %v7745_v43  ;;  %v7810_v22 = vpack.c.bf16 %v7755_v50, %v7753_v49 }
  0xa4   : > { %v7765_v59 = vld [vmem:[#allocation2 + $0x5f] sm:$0xff]  ;;  %v7767_v60 = vld [vmem:[#allocation2 + $0x67] sm:$0xff]  ;;  %v1210_v62 = vpack.c.bf16 %v7761_v57, %v7759_v56  ;;  %v7814_v23 = vpack.c.bf16 %v7759_v56, %v7757_v55  ;;  %v7071_v30 = vld [vmem:[#allocation7 + $0xb0] sm:$0xff]  }
  0xa5   : > { %v7773_v0 = vld [vmem:[#allocation2 + $0x6f] sm:$0xff]  ;;  %v7775_v1 = vld [vmem:[#allocation2 + $0x77] sm:$0xff]  ;;  %v1211_v2 = vpack.c.bf16 %v7767_v60, %v7765_v59  ;;  %v7820_v26 = vpack.c.bf16 %v7765_v59, %v7761_v57  ;;  %v7073_v36 = vld [vmem:[#allocation7 + $0xc0] sm:$0xff]  }
  0xa6   : > { %5877 = vmatpush3.bf16.msra.mxu0 %v7062_v32  ;;  %v7779_v3 = vld [vmem:[#allocation2 + $0x7f] sm:$0xff]  ;;  %v7781_v4 = vld [vmem:[#allocation2 + $0x87] sm:$0xff]  ;;  %v7824_v27 = vpack.c.bf16 %v7773_v0, %v7767_v60  ;;  %v930_v40 = vld [vmem:[#allocation2 + $0x11] sm:$0xff] }
  0xa7   : > { %5878 = vmatprep.subr.bf16.mxu0 %v7063_v44  ;;  %v7787_v9 = vld [vmem:[#allocation2 + $0x8f] sm:$0xff]  ;;  %v7789_v10 = vld [vmem:[#allocation2 + $0x97] sm:$0xff]  ;;  %v7831_v33 = vpack.c.bf16 %v7779_v3, %v7775_v1  ;;  %v7856_v51 = vld [vmem:[#allocation2 + $0x21] sm:$0xff]  ;;  %v8798_v48 = vpack.c.bf16 %v7781_v4, %v7779_v3 }
  0xa8   : > { %v7791_v11 = vld [vmem:[#allocation2 + $0x9f] sm:$0xff]  ;;  %v7793_v12 = vld [vmem:[#allocation2 + $0xa7] sm:$0xff]  ;;  %v7835_v34 = vpack.c.bf16 %v7787_v9, %v7781_v4  ;;  %v7860_v53 = vld [vmem:[#allocation2 + $0x31] sm:$0xff]  ;;  %v8799_v55 = vpack.c.bf16 %v7789_v10, %v7787_v9 }
  0xa9   : > { %v7800_v16 = vld [vmem:[#allocation2 + $0xaf] sm:$0xff]  ;;  %v7802_v17 = vld [vmem:[#allocation2 + $0xb7] sm:$0xff]  ;;  %v7841_v37 = vpack.c.bf16 %v7791_v11, %v7789_v10  ;;  %v7085_v42 = vld [vmem:[#allocation7 + $0x120] sm:$0xff]   ;;  %v8800_v56 = vpack.c.bf16 %v7793_v12, %v7791_v11 }
  0xaa   : > { %5879 = vmatpush3.bf16.msra.mxu0 %v7063_v44  ;;  %v7070_v28 = vld [vmem:[#allocation7 + $0xa8] sm:$0xff]   ;;  %v7072_v35 = vld [vmem:[#allocation7 + $0xb8] sm:$0xff]   ;;  %v7845_v38 = vpack.c.bf16 %v7800_v16, %v7793_v12  ;;  %v7087_v49 = vld [vmem:[#allocation7 + $0x130] sm:$0xff]   ;;  %v8801_v60 = vpack.c.bf16 %v7802_v17, %v7800_v16 }
  0xab   : > { %5880 = vmatprep.subr.bf16.mxu0 %v7064_v63  ;;  %v5472_v29 = vld [vmem:[%s7730_s20 + $0x68] sm:$0xff]   ;;  %v7849_v41 = vld [vmem:[#allocation2 + $0xbf] sm:$0xff]  ;;  %v7095_v11 = vld [vmem:[#allocation7 + $0x150] sm:$0xff]  }
  0xac   : > { %v5402_v31 = vunpack.c.l.bf16 %v5472_v29  ;;  %v5403_v32 = vunpack.c.h.bf16 %v5472_v29  ;;  %v929_v39 = vld [vmem:[#allocation2 + $0x9] sm:$0xff]  ;;  %v7853_v44 = vpack.c.bf16 %v7849_v41, %v7802_v17  ;;  %v931_v46 = vld [vmem:[#allocation2 + $0x19] sm:$0xff] }
  0xad   : > { %v953_v45 = vpack.c.bf16 %v930_v40, %v929_v39  ;;  %v7858_v52 = vld [vmem:[#allocation2 + $0x29] sm:$0xff]  ;;  %v954_v54 = vpack.c.bf16 %v7856_v51, %v931_v46  ;;  %v7865_v8 = vld [vmem:[#allocation2 + $0x39] sm:$0xff] }
  0xae   : > { %5881 = vmatpush3.bf16.msra.mxu0 %v7064_v63  ;;  %464 = vst [vmem:[#allocation2 + $0xd0] sm:$0xff] %v5402_v31  ;;  %465 = vst [vmem:[#allocation2 + $0xd8] sm:$0xff] %v5403_v32  ;;  %v7074_v63 = vld [vmem:[#allocation7 + $0xc8] sm:$0xff]   ;;  %v7877_v29 = vld [vmem:[#allocation2 + $0x59] sm:$0xff] }
  0xaf   : > { %5906 = vmatprep.subr.bf16.mxu0 %v7065_v6  ;;  %v7881_v31 = vld [vmem:[#allocation2 + $0x69] sm:$0xff]  ;;  %v7883_v32 = vld [vmem:[#allocation2 + $0x71] sm:$0xff]  ;;  %v7917_v13 = vld [vmem:[#allocation2 + $0xb9] sm:$0xff] }
  0xb0   : > { %v959_v46 = vpack.c.bf16 %v7883_v32, %v7881_v31  ;;  %v7909_v19 = vld [vmem:[#allocation2 + $0xa9] sm:$0xff]  ;;  %v7088_v50 = vld [vmem:[#allocation7 + $0x138] sm:$0xff]   ;;  %v7093_v9 = vld [vmem:[%s7730_s20 + $0x20] sm:$0xff] }
  0xb1   : > { %5883 = vmatmul.mubr.bf16.vlgmr.msra.gmra.mrb[0].mxu0 %v495_v15  ;;  %v7867_v15 = vld [vmem:[#allocation2 + $0x41] sm:$0xff]  ;;  %v7090_v3 = vld [vmem:[%s7730_s20 + $0x18] sm:$0xff]  ;;  %v7096_v16 = vld [vmem:[%s7730_s20 + $0x30] sm:$0xff] }
  0xb2   : > { %5907 = vmatpush3.bf16.msra.mxu0 %v7065_v6  ;;  %5886 = vmatprep.mubr.bf16.mxu0 %v496_v18  ;;  %v955_v6 = vpack.c.bf16 %v7860_v53, %v7858_v52  ;;  %v7075_v18 = vld [vmem:[#allocation7 + $0xd0] sm:$0xff]   ;;  %v7086_v43 = vld [vmem:[#allocation7 + $0x128] sm:$0xff]   ;;  %v7098_v17 = vld [vmem:[#allocation7 + $0x158] sm:$0xff]  }
  0xb3   : > { %5908 = vmatprep.subr.bf16.mxu0 %v7066_v20  ;;  %v7951_v57 = vld [vmem:[#allocation2 + $0xc7] sm:$0xff] }
  0xb4   : > { %v1217_v59 = vpack.c.bf16 %v7951_v57, %v7849_v41  ;;  %v7092_v10 = vld [vmem:[#allocation7 + $0x148] sm:$0xff]   ;;  %v7101_v41 = vld [vmem:[#allocation7 + $0x160] sm:$0xff]  }
  0xb5   : > { %v7094_v12 = vld [vmem:[%s7730_s20 + $0x28] sm:$0xff] }
  0xb6   : > { %5909 = vmatpush3.bf16.msra.mxu0 %v7066_v20  ;;  %v7869_v20 = vld [vmem:[#allocation2 + $0x49] sm:$0xff] }
  0xb7   : > { %5910 = vmatprep.subr.bf16.mxu0 %v7067_v21 }
  0xb9   : > { %5887 = vmatmul.mubr.bf16.gmra.mrb[4].mxu0 %v7810_v22 }
  0xba   : > { %5911 = vmatpush3.bf16.msra.mxu0 %v7067_v21  ;;  %5890 = vmatprep.mubr.bf16.mxu0 %v7814_v23  ;;  %v7871_v21 = vld [vmem:[#allocation2 + $0x51] sm:$0xff] }
  0xbb   : > { %5912 = vmatprep.subr.bf16.mxu0 %v7068_v24 }
  0xbe   : > { %5913 = vmatpush3.bf16.msra.mxu0 %v7068_v24  ;;  %v956_v24 = vpack.c.bf16 %v7867_v15, %v7865_v8 }
  0xbf   : > { %5914 = vmatprep.subr.bf16.mxu0 %v7069_v25 }
  0xc1   : > { %5891 = vmatmul.mubr.bf16.gmra.mrb[8].mxu0 %v7820_v26 }
  0xc2   : > { %5894 = vmatprep.mubr.bf16.mxu0 %v7824_v27  ;;  %5915 = vmatpush3.bf16.msra.mxu0 %v7069_v25  ;;  %v7076_v25 = vld [vmem:[#allocation7 + $0xd8] sm:$0xff]  }
  0xc3   : > { %5916 = vmatprep.subr.bf16.mxu0 %v7070_v28 }
  0xc6   : > { %5917 = vmatpush3.bf16.msra.mxu0 %v7070_v28  ;;  %v957_v28 = vpack.c.bf16 %v7871_v21, %v7869_v20 }
  0xc7   : > { %5918 = vmatprep.subr.bf16.mxu0 %v7071_v30 }
  0xc9   : > { %5895 = vmatmul.mubr.bf16.gmra.mrb[12].mxu0 %v7831_v33 }
  0xca   : > { %5898 = vmatprep.mubr.bf16.mxu0 %v7835_v34  ;;  %5919 = vmatpush3.bf16.msra.mxu0 %v7071_v30  ;;  %v7879_v30 = vld [vmem:[#allocation2 + $0x61] sm:$0xff] }
  0xcb   : > { %5920 = vmatprep.subr.bf16.mxu0 %v7072_v35  ;;  %v958_v40 = vpack.c.bf16 %v7879_v30, %v7877_v29 }
  0xce   : > { %5921 = vmatpush3.bf16.msra.mxu0 %v7072_v35  ;;  %v7077_v35 = vld [vmem:[#allocation7 + $0xe0] sm:$0xff]  }
  0xcf   : > { %5946 = vmatprep.subr.bf16.mxu0 %v7073_v36 }
  0xd1   : > { %5899 = vmatmul.mubr.bf16.gmra.mrb[16].mxu0 %v7841_v37 }
  0xd2   : > { %5902 = vmatprep.mubr.bf16.mxu0 %v7845_v38 }
  0xd9   : > { %5903 = vmatmul.mubr.bf16.gmra.mrb[20].mxu0 %v7853_v44 }
  0xda   : > { %5922 = vmatprep.mubr.bf16.mxu0 %v953_v45  ;;  %v7078_v45 = vld [vmem:[#allocation7 + $0xe8] sm:$0xff]  }
  0xe1   : > { %5923 = vmatmul.mubr.bf16.vlgmr.msra.gmra.mrb[0].mxu0 %v954_v54  ;;  %v7893_v54 = vld [vmem:[#allocation2 + $0x79] sm:$0xff] }
  0xe2   : > { %5947 = vmatpush3.bf16.msra.mxu0 %v7073_v36  ;;  %5926 = vmatprep.mubr.bf16.mxu0 %v955_v6  ;;  %v7897_v6 = vld [vmem:[#allocation2 + $0x89] sm:$0xff]  ;;  %v7905_v36 = vld [vmem:[#allocation2 + $0x99] sm:$0xff] }
  0xe3   : > { %5948 = vmatprep.subr.bf16.mxu0 %v7074_v63 }
  0xe6   : > { %5949 = vmatpush3.bf16.msra.mxu0 %v7074_v63  ;;  %v7895_v63 = vld [vmem:[#allocation2 + $0x81] sm:$0xff] }
  0xe7   : > { %5950 = vmatprep.subr.bf16.mxu0 %v7075_v18 }
  0xe9   : > { %5927 = vmatmul.mubr.bf16.gmra.mrb[4].mxu0 %v956_v24  ;;  %v7079_v24 = vld [vmem:[#allocation7 + $0xf0] sm:$0xff]  }
  0xea   : > { %5951 = vmatpush3.bf16.msra.mxu0 %v7075_v18  ;;  %5930 = vmatprep.mubr.bf16.mxu0 %v957_v28  ;;  %v7899_v18 = vld [vmem:[#allocation2 + $0x91] sm:$0xff] }
  0xeb   : > { %5952 = vmatprep.subr.bf16.mxu0 %v7076_v25  ;;  %v7080_v28 = vld [vmem:[#allocation7 + $0xf8] sm:$0xff]   ;;  %v961_v39 = vpack.c.bf16 %v7899_v18, %v7897_v6 }
  0xee   : > { %5953 = vmatpush3.bf16.msra.mxu0 %v7076_v25  ;;  %v960_v25 = vpack.c.bf16 %v7895_v63, %v7893_v54 }
  0xef   : > { %5954 = vmatprep.subr.bf16.mxu0 %v7077_v35 }
  0xf1   : > { %5931 = vmatmul.mubr.bf16.gmra.mrb[8].mxu0 %v958_v40  ;;  %v7907_v40 = vld [vmem:[#allocation2 + $0xa1] sm:$0xff] }
  0xf2   : > { %5934 = vmatprep.mubr.bf16.mxu0 %v959_v46  ;;  %5955 = vmatpush3.bf16.msra.mxu0 %v7077_v35  ;;  %v7911_v46 = vld [vmem:[#allocation2 + $0xb1] sm:$0xff]  ;;  %v7081_v35 = vld [vmem:[#allocation7 + $0x100] sm:$0xff]   ;;  %v962_v14 = vpack.c.bf16 %v7907_v40, %v7905_v36 }
  0xf3   : > { %5956 = vmatprep.subr.bf16.mxu0 %v7078_v45 }
  0xf6   : > { %5957 = vmatpush3.bf16.msra.mxu0 %v7078_v45  ;;  %v963_v45 = vpack.c.bf16 %v7911_v46, %v7909_v19 }
  0xf7   : > { %5958 = vmatprep.subr.bf16.mxu0 %v7079_v24 }
  0xf9   : > { %5935 = vmatmul.mubr.bf16.gmra.mrb[12].mxu0 %v960_v25  ;;  %v7919_v25 = vld [vmem:[#allocation2 + $0xc1] sm:$0xff] }
  0xfa   : > { %5938 = vmatprep.mubr.bf16.mxu0 %v961_v39  ;;  %5959 = vmatpush3.bf16.msra.mxu0 %v7079_v24  ;;  %v964_v7 = vpack.c.bf16 %v7919_v25, %v7917_v13  ;;  %v5473_v39 = vld [vmem:[%s7730_s20 + $0x70] sm:$0xff]   ;;  %v7082_v24 = vld [vmem:[#allocation7 + $0x108] sm:$0xff]  }
  0xfb   : > { %5960 = vmatprep.subr.bf16.mxu0 %v7080_v28  ;;  %v5406_v5 = vunpack.c.l.bf16 %v5473_v39  ;;  %v5407_v4 = vunpack.c.h.bf16 %v5473_v39  ;;  %v7105_v39 = vld [vmem:[#allocation7 + $0x170] sm:$0xff]  }
  0xfd   : > { %466 = vst [vmem:[#allocation2 + $0xe0] sm:$0xff] %v5406_v5  ;;  %467 = vst [vmem:[#allocation2 + $0xe8] sm:$0xff] %v5407_v4  ;;  %v7139_v4 = vld [vmem:[#allocation7 + $0x70] sm:$0xff]  }
  0xfe   : > { %5961 = vmatpush3.bf16.msra.mxu0 %v7080_v28  ;;  %v7097_v28 = vld [vmem:[%s7730_s20 + $0x38] sm:$0xff] }
  0xff   : > { %5986 = vmatprep.subr.bf16.mxu0 %v7081_v35 }
 0x101   : > { %5939 = vmatmul.mubr.bf16.gmra.mrb[16].mxu0 %v962_v14  ;;  %v7083_v14 = vld [vmem:[#allocation7 + $0x110] sm:$0xff]  }
 0x102   : > { %5942 = vmatprep.mubr.bf16.mxu0 %v963_v45  ;;  %v7102_v45 = vld [vmem:[#allocation7 + $0x168] sm:$0xff]  }
 0x109   : > { %5943 = vmatmul.mubr.bf16.gmra.mrb[20].mxu0 %v964_v7  ;;  %v7084_v7 = vld [vmem:[#allocation7 + $0x118] sm:$0xff]  }
 0x10a   : > { %5962 = vmatprep.mubr.bf16.mxu0 %v1207_v47  ;;  %v8797_v47 = vpack.c.bf16 %v7775_v1, %v7773_v0  ;;  %v7089_v1 = vld [vmem:[%s7730_s20 + $0x10] sm:$0xff] }
 0x111   : > { %5963 = vmatmul.mubr.bf16.vlgmr.msra.gmra.mrb[0].mxu0 %v1208_v58  ;;  %v7091_v58 = vld [vmem:[#allocation7 + $0x140] sm:$0xff]  }
 0x112   : > { %5987 = vmatpush3.bf16.msra.mxu0 %v7081_v35  ;;  %5966 = vmatprep.mubr.bf16.mxu0 %v1209_v61  ;;  %v7958_v61 = vld [vmem:[#allocation2 + $0xcf] sm:$0xff]  ;;  %v7099_v35 = vld [vmem:[%s7730_s20 + $0x40] sm:$0xff] }
 0x113   : > { %5988 = vmatprep.subr.bf16.mxu0 %v7082_v24 }
 0x116   : > { %5989 = vmatpush3.bf16.msra.mxu0 %v7082_v24  ;;  %v7100_v24 = vld [vmem:[%s7730_s20 + $0x48] sm:$0xff] }
 0x117   : > { %5990 = vmatprep.subr.bf16.mxu0 %v7083_v14 }
 0x119   : > { %5967 = vmatmul.mubr.bf16.gmra.mrb[4].mxu0 %v1210_v62  ;;  %v7960_v62 = vld [vmem:[#allocation2 + $0xd7] sm:$0xff] }
 0x11a   : > { %5991 = vmatpush3.bf16.msra.mxu0 %v7083_v14  ;;  %5970 = vmatprep.mubr.bf16.mxu0 %v1211_v2  ;;  %v1218_v0 = vpack.c.bf16 %v7960_v62, %v7958_v61  ;;  %v7966_v2 = vld [vmem:[%s7730_s20 + $0x78] sm:$0xff]   ;;  %v7103_v14 = vld [vmem:[%s7730_s20 + $0x50] sm:$0xff] }
 0x11b   : > { %5992 = vmatprep.subr.bf16.mxu0 %v7084_v7  ;;  %v5410_v5 = vunpack.c.l.bf16 %v7966_v2 }
 0x11d   : > { %468 = vst [vmem:[#allocation2 + $0xf0] sm:$0xff] %v5410_v5  ;;  %v7111_v5 = vld [vmem:[#allocation7 + $0x190] sm:$0xff]  }
 0x11e   : > { %5993 = vmatpush3.bf16.msra.mxu0 %v7084_v7  ;;  %v7108_v7 = vld [vmem:[#allocation7 + $0x178] sm:$0xff]  }
 0x11f   : > { %5994 = vmatprep.subr.bf16.mxu0 %v7085_v42 }
 0x121   : > { %5971 = vmatmul.mubr.bf16.gmra.mrb[8].mxu0 %v8797_v47  ;;  %v7104_v47 = vld [vmem:[%s7730_s20 + $0x58] sm:$0xff] }
 0x122   : > { %5974 = vmatprep.mubr.bf16.mxu0 %v8798_v48  ;;  %5995 = vmatpush3.bf16.msra.mxu0 %v7085_v42  ;;  %v7128_v42 = vld [vmem:[#allocation7 + $0x40] sm:$0xff]  }
 0x123   : > { %5996 = vmatprep.subr.bf16.mxu0 %v7086_v43  ;;  %5826 = vmatprep.subr.bf16.mxu1 %v7128_v42  ;;  %v7106_v48 = vld [vmem:[%s7730_s20 + $0x60] sm:$0xff] }
 0x124   : > { %5827 = vmatpush3.bf16.msra.mxu1 %v7128_v42  ;;  %v8023_v42 = vld [vmem:[#allocation2 + $0x70] sm:$0xff] }
 0x126   : > { %5997 = vmatpush3.bf16.msra.mxu0 %v7086_v43  ;;  %v7109_v43 = vld [vmem:[#allocation7 + $0x180] sm:$0xff]  }
 0x127   : > { %5998 = vmatprep.subr.bf16.mxu0 %v7087_v49 }
 0x129   : > { %5975 = vmatmul.mubr.bf16.gmra.mrb[12].mxu0 %v8799_v55  ;;  %v7107_v55 = vld [vmem:[%s7730_s20 + $0x68] sm:$0xff] }
 0x12a   : > { %5978 = vmatprep.mubr.bf16.mxu0 %v8800_v56  ;;  %5999 = vmatpush3.bf16.msra.mxu0 %v7087_v49  ;;  %v7129_v49 = vld [vmem:[#allocation7 + $0x48] sm:$0xff]   ;;  %v7133_v56 = vld [vmem:[#allocation7 + $0x58] sm:$0xff]  }
 0x12b   : > { %6000 = vmatprep.subr.bf16.mxu0 %v7088_v50  ;;  %5828 = vmatprep.subr.bf16.mxu1 %v7129_v49 }
 0x12c   : > { %5829 = vmatpush3.bf16.msra.mxu1 %v7129_v49 }
 0x12e   : > { %6001 = vmatpush3.bf16.msra.mxu0 %v7088_v50  ;;  %v7131_v50 = vld [vmem:[#allocation7 + $0x50] sm:$0xff]  }
 0x12f   : > { %6026 = vmatprep.subr.bf16.mxu0 %v7091_v58  ;;  %5830 = vmatprep.subr.bf16.mxu1 %v7131_v50 }
 0x130   : > { %5831 = vmatpush3.bf16.msra.mxu1 %v7131_v50  ;;  %v8039_v50 = vld [vmem:[#allocation2 + $0xd1] sm:$0xff] }
 0x131   : > { %5979 = vmatmul.mubr.bf16.gmra.mrb[16].mxu0 %v8801_v60  ;;  %5832 = vmatprep.subr.bf16.mxu1 %v7133_v56  ;;  %v1717_v60 = vpack.c.bf16 %v7869_v20, %v7867_v15  ;;  %v7112_v15 = vld [vmem:[#allocation7 + $0x198] sm:$0xff]   ;;  %v523_v20 = vld [vmem:[#allocation2 + $0x10] sm:$0xff] }
 0x132   : > { %5982 = vmatprep.mubr.bf16.mxu0 %v1217_v59  ;;  %v8802_v59 = vpack.c.bf16 %v7858_v52, %v7856_v51  ;;  %v1718_v51 = vpack.c.bf16 %v7877_v29, %v7871_v21  ;;  %v1719_v52 = vpack.c.bf16 %v7881_v31, %v7879_v30  ;;  %v1720_v29 = vpack.c.bf16 %v7893_v54, %v7883_v32  ;;  %v7114_v31 = vld [vmem:[#allocation7 + $0x1a8] sm:$0xff]   ;;  %v8000_v32 = vld [vmem:[#allocation2 + $0x50] sm:$0xff] }
 0x133   : > { %v1721_v30 = vpack.c.bf16 %v7897_v6, %v7895_v63  ;;  %v1722_v54 = vpack.c.bf16 %v7905_v36, %v7899_v18  ;;  %v1723_v6 = vpack.c.bf16 %v7909_v19, %v7907_v40  ;;  %v8015_v36 = vld [vmem:[#allocation2 + $0xc9] sm:$0xff]  ;;  %v8017_v18 = vld [vmem:[#allocation2 + $0x58] sm:$0xff]  ;;  %v7117_v19 = vld [vmem:[#allocation7 + $0x1c0] sm:$0xff]  }
 0x134   : > { %5833 = vmatpush3.bf16.msra.mxu1 %v7133_v56  ;;  %v8021_v40 = vld [vmem:[#allocation2 + $0x68] sm:$0xff]  ;;  %v8049_v56 = vld [vmem:[#allocation2 + $0x90] sm:$0xff] }
 0x135   : > { %v8035_v49 = vpack.c.bf16 %v8023_v42, %v8021_v40 }
 0x139   : > { %5983 = vmatmul.mubr.bf16.gmra.mrb[20].mxu0 %v1218_v0  ;;  %v7110_v0 = vld [vmem:[#allocation7 + $0x188] sm:$0xff]  }
 0x13a   : > { %6002 = vmatprep.mubr.bf16.mxu0 %v7089_v1  ;;  %v7137_v1 = vld [vmem:[#allocation7 + $0x68] sm:$0xff]  }
 0x141   : > { %6003 = vmatmul.mubr.bf16.vlgmr.msra.gmra.mrb[0].mxu0 %v7090_v3  ;;  %v8803_v3 = vpack.c.bf16 %v7865_v8, %v7860_v53  ;;  %v7142_v53 = vld [vmem:[#allocation7 + $0x78] sm:$0xff]   ;;  %v522_v8 = vld [vmem:[#allocation2 + $0x8] sm:$0xff] }
 0x142   : > { %6027 = vmatpush3.bf16.msra.mxu0 %v7091_v58  ;;  %6006 = vmatprep.mubr.bf16.mxu0 %v7093_v9  ;;  %v7134_v58 = vld [vmem:[#allocation7 + $0x60] sm:$0xff]   ;;  %v546_v9 = vpack.c.bf16 %v523_v20, %v522_v8  ;;  %v7120_v20 = vld [vmem:[#allocation7 + $0x1d8] sm:$0xff]  }
 0x143   : > { %6028 = vmatprep.subr.bf16.mxu0 %v7092_v10  ;;  %5834 = vmatprep.subr.bf16.mxu1 %v7134_v58 }
 0x144   : > { %5835 = vmatpush3.bf16.msra.mxu1 %v7134_v58  ;;  %5842 = vmatprep.mubr.bf16.mxu1 %v546_v9  ;;  %v7121_v9 = vld [vmem:[#allocation7 + $0x1e0] sm:$0xff]  }
 0x145   : > { %5836 = vmatprep.subr.bf16.mxu1 %v7137_v1 }
 0x146   : > { %6029 = vmatpush3.bf16.msra.mxu0 %v7092_v10  ;;  %v524_v10 = vld [vmem:[#allocation2 + $0x18] sm:$0xff] }
 0x147   : > { %6030 = vmatprep.subr.bf16.mxu0 %v7095_v11 }
 0x148   : > { %5837 = vmatpush3.bf16.msra.mxu1 %v7137_v1  ;;  %v8066_v1 = vld [vmem:[#allocation2 + $0xa0] sm:$0xff] }
 0x149   : > { %6007 = vmatmul.mubr.bf16.gmra.mrb[4].mxu0 %v7094_v12  ;;  %5838 = vmatprep.subr.bf16.mxu1 %v7139_v4  ;;  %v7113_v12 = vld [vmem:[#allocation7 + $0x1a0] sm:$0xff]  }
 0x14a   : > { %6031 = vmatpush3.bf16.msra.mxu0 %v7095_v11  ;;  %6010 = vmatprep.mubr.bf16.mxu0 %v7096_v16  ;;  %v525_v11 = vld [vmem:[#allocation2 + $0x20] sm:$0xff]  ;;  %v526_v16 = vld [vmem:[#allocation2 + $0x28] sm:$0xff] }
 0x14b   : > { %6032 = vmatprep.subr.bf16.mxu0 %v7098_v17  ;;  %v547_v21 = vpack.c.bf16 %v525_v11, %v524_v10  ;;  %v7443_v10 = vmov 0   ;;  %v5476_v11 = vld [vmem:[%s8104_s12 + $0x10] sm:$0xff]  }
 0x14c   : > { %5839 = vmatpush3.bf16.msra.mxu1 %v7139_v4  ;;  %v8070_v4 = vld [vmem:[#allocation2 + $0xb0] sm:$0xff]  ;;  %7005 = vset.pattern.permute.xlu0 %v7443_v10 }
 0x14d   : > { %5840 = vmatprep.subr.bf16.mxu1 %v7142_v53  ;;  %7016 = vset.pattern.permute.xlu1 %v7443_v10 }
 0x14e   : > { %6033 = vmatpush3.bf16.msra.mxu0 %v7098_v17  ;;  %v527_v17 = vld [vmem:[#allocation2 + $0x30] sm:$0xff] }
 0x14f   : > { %6034 = vmatprep.subr.bf16.mxu0 %v7101_v41 }
 0x150   : > { %5841 = vmatpush3.bf16.msra.mxu1 %v7142_v53  ;;  %v2216_v53 = vld [vmem:[#allocation2 + $0xc0] sm:$0xff] }
 0x151   : > { %6011 = vmatmul.mubr.bf16.gmra.mrb[8].mxu0 %v7097_v28  ;;  %v7996_v28 = vld [vmem:[#allocation2 + $0x40] sm:$0xff] }
 0x152   : > { %6014 = vmatprep.mubr.bf16.mxu0 %v7099_v35  ;;  %6035 = vmatpush3.bf16.msra.mxu0 %v7101_v41  ;;  %v2199_v41 = vld [vmem:[#allocation2 + $0x38] sm:$0xff]  ;;  %v548_v35 = vpack.c.bf16 %v527_v17, %v526_v16  ;;  %v5422_v16 = vunpack.c.l.bf16 %v5476_v11  ;;  %v5423_v17 = vunpack.c.h.bf16 %v5476_v11  ;;  %v5482_v11 = vld [vmem:[%s8104_s12 + $0x40] sm:$0xff]  }
 0x153   : > { %6036 = vmatprep.subr.bf16.mxu0 %v7102_v45  ;;  %5843 = vmatmul.mubr.bf16.vlgmr.msra.gmra.mrb[0].mxu1 %v547_v21  ;;  %v8005_v63 = vpack.c.bf16 %v7996_v28, %v2199_v41  ;;  %v5477_v41 = vld [vmem:[%s8104_s12 + $0x18] sm:$0xff]  }
 0x154   : > { %5846 = vmatprep.mubr.bf16.mxu1 %v548_v35  ;;  %2837 = vperm.xlu1 %7016, %v5422_v16  }
 0x156   : > { %6037 = vmatpush3.bf16.msra.mxu0 %v7102_v45  ;;  %v7115_v45 = vld [vmem:[#allocation7 + $0x1b0] sm:$0xff]  }
 0x157   : > { %6038 = vmatprep.subr.bf16.mxu0 %v7105_v39 }
 0x159   : > { %6015 = vmatmul.mubr.bf16.gmra.mrb[12].mxu0 %v7100_v24 }
 0x15a   : > { %6018 = vmatprep.mubr.bf16.mxu0 %v7103_v14  ;;  %6039 = vmatpush3.bf16.msra.mxu0 %v7105_v39  ;;  %v7998_v39 = vld [vmem:[#allocation2 + $0x48] sm:$0xff]  ;;  %v7116_v14 = vld [vmem:[#allocation7 + $0x1b8] sm:$0xff]  }
 0x15b   : > { %6040 = vmatprep.subr.bf16.mxu0 %v7108_v7  ;;  %v8011_v24 = vpack.c.bf16 %v8000_v32, %v7998_v39  ;;  %5847 = vmatmul.mubr.bf16.gmra.mrb[4].mxu1 %v8005_v63 }
 0x15d   : > { %5850 = vmatprep.mubr.bf16.mxu1 %v8011_v24 }
 0x15e   : > { %6041 = vmatpush3.bf16.msra.mxu0 %v7108_v7  ;;  %v8019_v7 = vld [vmem:[#allocation2 + $0x60] sm:$0xff] }
 0x15f   : > { %6066 = vmatprep.subr.bf16.mxu0 %v7109_v43 }
 0x161   : > { %6019 = vmatmul.mubr.bf16.gmra.mrb[16].mxu0 %v7104_v47  ;;  %v8029_v47 = vpack.c.bf16 %v8019_v7, %v8017_v18 }
 0x162   : > { %6022 = vmatprep.mubr.bf16.mxu0 %v7106_v48  ;;  %v1725_v48 = vpack.c.bf16 %v8015_v36, %v7919_v25  ;;  %v8047_v25 = vld [vmem:[#allocation2 + $0x88] sm:$0xff] }
 0x163   : > { %5851 = vmatmul.mubr.bf16.gmra.mrb[8].mxu1 %v8029_v47 }
 0x164   : > { %5854 = vmatprep.mubr.bf16.mxu1 %v8035_v49 }
 0x169   : > { %6023 = vmatmul.mubr.bf16.gmra.mrb[20].mxu0 %v7107_v55  ;;  %v8045_v55 = vld [vmem:[#allocation2 + $0x80] sm:$0xff] }
 0x16a   : > { %6042 = vmatprep.mubr.bf16.mxu0 %v8802_v59 }
 0x171   : > { %6043 = vmatmul.mubr.bf16.vlgmr.msra.gmra.mrb[0].mxu0 %v8803_v3  ;;  %v8068_v3 = vld [vmem:[#allocation2 + $0xa8] sm:$0xff] }
 0x172   : > { %6067 = vmatpush3.bf16.msra.mxu0 %v7109_v43  ;;  %6046 = vmatprep.mubr.bf16.mxu0 %v1717_v60  ;;  %v1724_v43 = vpack.c.bf16 %v7917_v13, %v7911_v46  ;;  %v8041_v13 = vld [vmem:[#allocation2 + $0xd9] sm:$0xff]  ;;  %v8059_v60 = vpack.c.bf16 %v8049_v56, %v8047_v25 }
 0x173   : > { %6068 = vmatprep.subr.bf16.mxu0 %v7110_v0  ;;  %v8043_v46 = vld [vmem:[#allocation2 + $0x78] sm:$0xff]  ;;  %v1726_v58 = vpack.c.bf16 %v8041_v13, %v8039_v50 }
 0x174   : > { %v8055_v59 = vpack.c.bf16 %v8045_v55, %v8043_v46 }
 0x176   : > { %6069 = vmatpush3.bf16.msra.mxu0 %v7110_v0  ;;  %5855 = vmatmul.mubr.bf16.gmra.mrb[12].mxu1 %v8055_v59  ;;  %v8064_v0 = vld [vmem:[#allocation2 + $0x98] sm:$0xff] }
 0x177   : > { %6070 = vmatprep.subr.bf16.mxu0 %v7111_v5  ;;  %5858 = vmatprep.mubr.bf16.mxu1 %v8059_v60 }
 0x179   : > { %6047 = vmatmul.mubr.bf16.gmra.mrb[4].mxu0 %v1718_v51  ;;  %v5411_v51 = vunpack.c.h.bf16 %v7966_v2  ;;  %v7119_v2 = vld [vmem:[#allocation7 + $0x1d0] sm:$0xff]  }
 0x17a   : > { %6071 = vmatpush3.bf16.msra.mxu0 %v7111_v5  ;;  %6050 = vmatprep.mubr.bf16.mxu0 %v1719_v52  ;;  %v8074_v5 = vpack.c.bf16 %v8066_v1, %v8064_v0  ;;  %v8079_v52 = vpack.c.bf16 %v8070_v4, %v8068_v3 }
 0x17b   : > { %6072 = vmatprep.subr.bf16.mxu0 %v7112_v15  ;;  %469 = vst [vmem:[#allocation2 + $0xf8] sm:$0xff] %v5411_v51 }
 0x17e   : > { %6073 = vmatpush3.bf16.msra.mxu0 %v7112_v15  ;;  %v7118_v15 = vld [vmem:[#allocation7 + $0x1c8] sm:$0xff]   ;;  %5859 = vmatmul.mubr.bf16.gmra.mrb[16].mxu1 %v8074_v5 }
 0x17f   : > { %6074 = vmatprep.subr.bf16.mxu0 %v7113_v12  ;;  %5862 = vmatprep.mubr.bf16.mxu1 %v8079_v52 }
 0x181   : > { %6051 = vmatmul.mubr.bf16.gmra.mrb[8].mxu0 %v1720_v29  ;;  %v7122_v29 = vld [vmem:[#allocation7 + $0x1e8] sm:$0xff]  }
 0x182   : > { %6054 = vmatprep.mubr.bf16.mxu0 %v1721_v30  ;;  %6075 = vmatpush3.bf16.msra.mxu0 %v7113_v12 }
 0x183   : > { %6076 = vmatprep.subr.bf16.mxu0 %v7114_v31 }
 0x186   : > { %6077 = vmatpush3.bf16.msra.mxu0 %v7114_v31 }
 0x187   : > { %6078 = vmatprep.subr.bf16.mxu0 %v7115_v45 }
 0x189   : > { %6055 = vmatmul.mubr.bf16.gmra.mrb[12].mxu0 %v1722_v54  ;;  %v5426_v54 = vunpack.c.l.bf16 %v5477_v41 }
 0x18a   : > { %6058 = vmatprep.mubr.bf16.mxu0 %v1723_v6  ;;  %6079 = vmatpush3.bf16.msra.mxu0 %v7115_v45  ;;  %v5478_v45 = vld [vmem:[%s8104_s12 + $0x20] sm:$0xff]   ;;  %v5479_v6 = vld [vmem:[%s8104_s12 + $0x28] sm:$0xff]  }
 0x18b   : > { %6080 = vmatprep.subr.bf16.mxu0 %v7116_v14 }
 0x18e   : > { %6081 = vmatpush3.bf16.msra.mxu0 %v7116_v14  ;;  %v5431_v14 = vunpack.c.h.bf16 %v5478_v45 }
 0x18f   : > { %6106 = vmatprep.subr.bf16.mxu0 %v7117_v19 }
 0x191   : > { %6059 = vmatmul.mubr.bf16.gmra.mrb[16].mxu0 %v1724_v43  ;;  %v7146_v43 = vld [vmem:[%s8750_s5 + $0x10] sm:$0xff]  }
 0x192   : > { %6062 = vmatprep.mubr.bf16.mxu0 %v1725_v48  ;;  %v7017_v48 = vpack.i.bf16 %v5426_v54, %v5423_v17  ;;  %v5446_v17 = vunpack.c.l.bf16 %v5482_v11 }
 0x194   : > { %7018 = vperm.xlu1 %7016, %v7017_v48  }
 0x199   : > { %6063 = vmatmul.mubr.bf16.gmra.mrb[20].mxu0 %v1726_v58  ;;  %v7123_v58 = vld [vmem:[#allocation7 + $0x1f0] sm:$0xff]  }
 0x19a   : > { %6082 = vmatprep.mubr.bf16.mxu0 %v7810_v22  ;;  %v8085_v22 = vld [vmem:[#allocation2 + $0xb8] sm:$0xff] }
 0x19b   : > { %v8088_v8 = vpack.c.bf16 %v2216_v53, %v8085_v22  ;;  %v5430_v53 = vunpack.c.l.bf16 %v5478_v45 }
 0x19d   : > { %5863 = vmatmul.mubr.bf16.gmra.mrb[20].mxu1 %v8088_v8 }
 0x1a1   : > { %6083 = vmatmul.mubr.bf16.vlgmr.msra.gmra.mrb[0].mxu0 %v7814_v23  ;;  %v7144_v23 = vld [vmem:[%s8750_s5] sm:$0xff]  }
 0x1a2   : > { %6107 = vmatpush3.bf16.msra.mxu0 %v7117_v19  ;;  %6086 = vmatprep.mubr.bf16.mxu0 %v7820_v26  ;;  %v7145_v26 = vld [vmem:[%s8750_s5 + $0x8] sm:$0xff]   ;;  %v5434_v19 = vunpack.c.l.bf16 %v5479_v6 }
 0x1a3   : > { %6108 = vmatprep.subr.bf16.mxu0 %v7118_v15  ;;  %6186 = vmatprep.subr.bf16.mxu1 %v7144_v23 }
 0x1a4   : > { %6187 = vmatpush3.bf16.msra.mxu1 %v7144_v23 }
 0x1a5   : > { %6188 = vmatprep.subr.bf16.mxu1 %v7145_v26 }
 0x1a6   : > { %6109 = vmatpush3.bf16.msra.mxu0 %v7118_v15  ;;  %v5427_v15 = vunpack.c.h.bf16 %v5477_v41  ;;  %v5483_v41 = vld [vmem:[%s8104_s12 + $0x48] sm:$0xff]  }
 0x1a7   : > { %6110 = vmatprep.subr.bf16.mxu0 %v7119_v2 }
 0x1a8   : > { %6189 = vmatpush3.bf16.msra.mxu1 %v7145_v26 }
 0x1a9   : > { %6087 = vmatmul.mubr.bf16.gmra.mrb[4].mxu0 %v7824_v27  ;;  %v5413_v27 = vld [vmem:[%s8104_s12] sm:$0xff]   ;;  %6190 = vmatprep.subr.bf16.mxu1 %v7146_v43 }
 0x1aa   : > { %6111 = vmatpush3.bf16.msra.mxu0 %v7119_v2  ;;  %6090 = vmatprep.mubr.bf16.mxu0 %v7831_v33  ;;  %v5475_v33 = vld [vmem:[%s8104_s12 + $0x8] sm:$0xff]   ;;  %v5414_v12 = vunpack.c.l.bf16 %v5413_v27  ;;  %v5415_v21 = vunpack.c.h.bf16 %v5413_v27  ;;  %v5480_v2 = vld [vmem:[%s8104_s12 + $0x30] sm:$0xff]   ;;  %v5435_v27 = vunpack.c.h.bf16 %v5479_v6  ;;  %v5450_v6 = vunpack.c.l.bf16 %v5483_v41 }
 0x1ab   : > { %6112 = vmatprep.subr.bf16.mxu0 %v7120_v20  ;;  %v5418_v30 = vunpack.c.l.bf16 %v5475_v33  ;;  %v5419_v31 = vunpack.c.h.bf16 %v5475_v33  ;;  %v5439_v23 = vunpack.c.h.bf16 %v5480_v2  ;;  %v5438_v33 = vunpack.c.l.bf16 %v5480_v2 }
 0x1ac   : > { %v7006_v35 = vpack.i.bf16 %v5415_v21, %v5414_v12  ;;  %6191 = vmatpush3.bf16.msra.mxu1 %v7146_v43  ;;  %v7147_v12 = vld [vmem:[%s8750_s5 + $0x18] sm:$0xff]   ;;  %v7148_v21 = vld [vmem:[%s8750_s5 + $0x20] sm:$0xff]  }
 0x1ad   : > { %v7011_v51 = vpack.i.bf16 %v5419_v31, %v5418_v30  ;;  %v7125_v30 = vld [vmem:[#allocation7 + $0x200] sm:$0xff]   ;;  %v7032_v31 = vpack.i.bf16 %v5438_v33, %v5435_v27  ;;  %6192 = vmatprep.subr.bf16.mxu1 %v7147_v12  ;;  %v2455_v33 = vld [vmem:[#allocation2 + $0x49] sm:$0xff] }
 0x1ae   : > { %6113 = vmatpush3.bf16.msra.mxu0 %v7120_v20  ;;  %7007 = vperm.xlu0 %7005, %v7006_v35   ;;  %v7027_v20 = vpack.i.bf16 %v5434_v19, %v5431_v14  ;;  %v5447_v35 = vunpack.c.h.bf16 %v5482_v11  ;;  %v5451_v14 = vunpack.c.h.bf16 %v5483_v41  ;;  %v7149_v19 = vld [vmem:[%s8750_s5 + $0x28] sm:$0xff]   ;;  %v2456_v11 = vld [vmem:[#allocation2 + $0x51] sm:$0xff] }
 0x1af   : > { %6114 = vmatprep.subr.bf16.mxu0 %v7121_v9  ;;  %v2463_v41 = vld [vmem:[#allocation2 + $0x89] sm:$0xff] }
 0x1b0   : > { %7028 = vperm.xlu1 %7016, %v7027_v20   ;;  %6193 = vmatpush3.bf16.msra.mxu1 %v7147_v12  ;;  %v7047_v43 = vpack.i.bf16 %v5451_v14, %v5450_v6  ;;  %v7152_v20 = vld [vmem:[#allocation9] sm:$0xff]   ;;  %v2467_v6 = vld [vmem:[#allocation2 + $0xa9] sm:$0xff]  ;;  %v2468_v14 = vld [vmem:[#allocation2 + $0xb1] sm:$0xff] }
 0x1b1   : > { %6091 = vmatmul.mubr.bf16.gmra.mrb[8].mxu0 %v7835_v34  ;;  %v5481_v34 = vld [vmem:[%s8104_s12 + $0x38] sm:$0xff]   ;;  %6194 = vmatprep.subr.bf16.mxu1 %v7148_v21 }
 0x1b2   : > { %6094 = vmatprep.mubr.bf16.mxu0 %v7841_v37  ;;  %6115 = vmatpush3.bf16.msra.mxu0 %v7121_v9  ;;  %v5442_v10 = vunpack.c.l.bf16 %v5481_v34  ;;  %v7124_v37 = vld [vmem:[#allocation7 + $0x1f8] sm:$0xff]   ;;  %v7022_v9 = vpack.i.bf16 %v5430_v53, %v5427_v15  ;;  %v5443_v16 = vunpack.c.h.bf16 %v5481_v34 }
 0x1b3   : > { %6116 = vmatprep.subr.bf16.mxu0 %v7122_v29  ;;  %7012 = vperm.xlu0 %7005, %v7011_v51   ;;  %v7150_v51 = vld [vmem:[%s8750_s5 + $0x30] sm:$0xff]   ;;  %v7151_v34 = vld [vmem:[%s8750_s5 + $0x38] sm:$0xff]  }
 0x1b4   : > { %v7037_v26 = vpack.i.bf16 %v5442_v10, %v5439_v23  ;;  %v7042_v54 = vpack.i.bf16 %v5446_v17, %v5443_v16  ;;  %6195 = vmatpush3.bf16.msra.mxu1 %v7148_v21  ;;  %v3000_v23 = vpack.c.bf16 %v8017_v18, %v8000_v32  ;;  %v7126_v10 = vld [vmem:[#allocation7 + $0x208] sm:$0xff]   ;;  %v7132_v32 = vld [vmem:[#allocation7 + $0x220] sm:$0xff]   ;;  %v7138_v18 = vld [vmem:[#allocation7 + $0x230] sm:$0xff]  }
 0x1b5   : > { %6196 = vmatprep.subr.bf16.mxu1 %v7149_v19  ;;  %v2457_v12 = vld [vmem:[#allocation2 + $0x59] sm:$0xff] }
 0x1b6   : > { %6117 = vmatpush3.bf16.msra.mxu0 %v7122_v29  ;;  %v1966_v29 = vld [vmem:[#allocation2 + $0xdf] sm:$0xff]  ;;  %7038 = vperm.xlu1 %7016, %v7037_v26  }
 0x1b7   : > { %6118 = vmatprep.subr.bf16.mxu0 %v7123_v58  ;;  %7023 = vperm.xlu0 %7005, %v7022_v9   ;;  %v1979_v45 = vpack.c.bf16 %v1966_v29, %v7960_v62  ;;  %v1968_v62 = vld [vmem:[#allocation2 + $0xef] sm:$0xff]  ;;  %v2458_v26 = vld [vmem:[#allocation2 + $0x61] sm:$0xff] }
 0x1b8   : > { %6197 = vmatpush3.bf16.msra.mxu1 %v7149_v19  ;;  %v7141_v9 = vld [vmem:[%s7730_s20 + $0x74] ss:$4 sps:$4 sm:$0xff]   ;;  %v2479_v21 = vpack.c.bf16 %v2458_v26, %v2457_v12 }
 0x1b9   : > { %6095 = vmatmul.mubr.bf16.gmra.mrb[12].mxu0 %v7845_v38  ;;  %v2999_v38 = vpack.c.bf16 %v7998_v39, %v7996_v28  ;;  %v5484_v28 = vld [vmem:[%s8104_s12 + $0x50] sm:$0xff]   ;;  %v5485_v39 = vld [vmem:[%s8104_s12 + $0x58] sm:$0xff]   ;;  %6198 = vmatprep.subr.bf16.mxu1 %v7150_v51  ;;  %s8835_s12 = sld [smem:[#allocation25_spill]] }
 0x1ba   : > { %6098 = vmatprep.mubr.bf16.mxu0 %v7853_v44  ;;  %6119 = vmatpush3.bf16.msra.mxu0 %v7123_v58  ;;  %v1978_v44 = vpack.c.bf16 %v7958_v61, %v7951_v57  ;;  %v5454_v57 = vunpack.c.l.bf16 %v5484_v28  ;;  %v1967_v61 = vld [vmem:[#allocation2 + $0xe7] sm:$0xff]  ;;  %v5455_v48 = vunpack.c.h.bf16 %v5484_v28  ;;  %v5458_v58 = vunpack.c.l.bf16 %v5485_v39  ;;  %v2460_v29 = vld [vmem:[#allocation2 + $0x71] sm:$0xff]  ;;  %v2469_v19 = vld [vmem:[#allocation2 + $0xb9] sm:$0xff] }
 0x1bb   : > { %6120 = vmatprep.subr.bf16.mxu0 %v7124_v37  ;;  %7033 = vperm.xlu0 %7005, %v7032_v31   ;;  %v1980_v15 = vpack.c.bf16 %v1968_v62, %v1967_v61  ;;  %v5459_v53 = vunpack.c.h.bf16 %v5485_v39  ;;  %v2462_v31 = vld [vmem:[#allocation2 + $0x81] sm:$0xff]  ;;  %v2484_v39 = vpack.c.bf16 %v2468_v14, %v2467_v6  ;;  %v2486_v62 = vpack.c.bf16 %v8039_v50, %v8015_v36 }
 0x1bc   : > { %6202 = vmatprep.mubr.bf16.mxu1 %v2999_v38  ;;  %2902 = vperm.xlu1 %7016, %v5447_v35   ;;  %v7052_v2 = vpack.i.bf16 %v5458_v58, %v5455_v48  ;;  %v2464_v38 = vld [vmem:[#allocation2 + $0x91] sm:$0xff]  ;;  %v2466_v35 = vld [vmem:[#allocation2 + $0xa1] sm:$0xff]  ;;  %v2475_v48 = vld [vmem:[#allocation2 + $0xe9] sm:$0xff]  ;;  %v3001_v36 = vpack.c.bf16 %v8021_v40, %v8019_v7  ;;  %v3002_v50 = vpack.c.bf16 %v8043_v46, %v8023_v42 }
 0x1bd   : > { %6199 = vmatpush3.bf16.msra.mxu1 %v7150_v51  ;;  %v2470_v28 = vld [vmem:[#allocation2 + $0xc1] sm:$0xff]  ;;  %v2476_v58 = vld [vmem:[#allocation2 + $0xf1] sm:$0xff]  ;;  %v3003_v7 = vpack.c.bf16 %v8047_v25, %v8045_v55  ;;  %v3004_v40 = vpack.c.bf16 %v8064_v0, %v8049_v56  ;;  %v3005_v55 = vpack.c.bf16 %v8068_v3, %v8066_v1  ;;  %v3006_v25 = vpack.c.bf16 %v8085_v22, %v8070_v4 }
 0x1be   : > { %6121 = vmatpush3.bf16.msra.mxu0 %v7124_v37  ;;  %6200 = vmatprep.subr.bf16.mxu1 %v7151_v34  ;;  %v7127_v37 = vld [vmem:[#allocation7 + $0x210] sm:$0xff]   ;;  %v2474_v61 = vld [vmem:[#allocation2 + $0xe1] sm:$0xff]  ;;  %v2488_v51 = vpack.c.bf16 %v2476_v58, %v2475_v48 }
 0x1bf   : > { %6146 = vmatprep.subr.bf16.mxu0 %v7125_v30  ;;  %7043 = vperm.xlu0 %7005, %v7042_v54   ;;  %v7156_v42 = vld [vmem:[#allocation9 + $0x20] sm:$0xff]   ;;  %v7158_v56 = vld [vmem:[#allocation9 + $0x30] sm:$0xff]  }
 0x1c0   : > { %2917 = vperm.xlu1 %7016, %v5454_v57   ;;  %v2485_v57 = vpack.c.bf16 %v2470_v28, %v2469_v19  ;;  %v8204_v1 = vld [vmem:[#allocation9 + $0x40] sm:$0xff]  }
 0x1c1   : > { %6099 = vmatmul.mubr.bf16.gmra.mrb[16].mxu0 %v1978_v44  ;;  %6201 = vmatpush3.bf16.msra.mxu1 %v7151_v34  ;;  %v2465_v44 = vld [vmem:[#allocation2 + $0x99] sm:$0xff] }
 0x1c2   : > { %6102 = vmatprep.mubr.bf16.mxu0 %v1979_v45  ;;  %6218 = vmatprep.subr.bf16.mxu1 %v7152_v20  ;;  %v2482_v45 = vpack.c.bf16 %v2464_v38, %v2463_v41  ;;  %v2483_v54 = vpack.c.bf16 %v2466_v35, %v2465_v44 }
 0x1c3   : > { %7048 = vperm.xlu0 %7005, %v7047_v43   ;;  %v2487_v43 = vpack.c.bf16 %v2474_v61, %v8041_v13  ;;  %v7154_v13 = vld [vmem:[#allocation9 + $0x10] sm:$0xff]  }
 0x1c4   : > { %2932 = vperm.xlu1 %7016, %v5459_v53   ;;  %6203 = vmatmul.mubr.bf16.vlgmr.msra.gmra.mrb[24].mxu1 %v3000_v23  ;;  %v7153_v53 = vld [vmem:[#allocation9 + $0x8] sm:$0xff]  }
 0x1c5   : > { %6219 = vmatpush3.bf16.msra.mxu1 %v7152_v20  ;;  %6206 = vmatprep.mubr.bf16.mxu1 %v3001_v36 }
 0x1c6   : > { %6220 = vmatprep.subr.bf16.mxu1 %v7153_v53 }
 0x1c7   : > { %7053 = vperm.xlu0 %7005, %v7052_v2  }
 0x1c9   : > { %6103 = vmatmul.mubr.bf16.gmra.mrb[20].mxu0 %v1980_v15  ;;  %6221 = vmatpush3.bf16.msra.mxu1 %v7153_v53 }
 0x1ca   : > { %6122 = vmatprep.mubr.bf16.mxu0 %v8005_v63  ;;  %v7130_v63 = vld [vmem:[#allocation7 + $0x218] sm:$0xff]   ;;  %6222 = vmatprep.subr.bf16.mxu1 %v7154_v13 }
 0x1cc   : > { %6207 = vmatmul.mubr.bf16.gmra.mrb[28].mxu1 %v3002_v50 }
 0x1cd   : > { %6223 = vmatpush3.bf16.msra.mxu1 %v7154_v13  ;;  %6210 = vmatprep.mubr.bf16.mxu1 %v3003_v7 }
 0x1d1   : > { %6123 = vmatmul.mubr.bf16.vlgmr.msra.gmra.mrb[0].mxu0 %v8011_v24  ;;  %v7135_v24 = vld [vmem:[#allocation7 + $0x228] sm:$0xff]  }
 0x1d2   : > { %6147 = vmatpush3.bf16.msra.mxu0 %v7125_v30  ;;  %6126 = vmatprep.mubr.bf16.mxu0 %v8029_v47  ;;  %v7143_v47 = vld [vmem:[#allocation7 + $0x238] sm:$0xff]  }
 0x1d3   : > { %6148 = vmatprep.subr.bf16.mxu0 %v7126_v10  ;;  %v2461_v30 = vld [vmem:[#allocation2 + $0x79] sm:$0xff] }
 0x1d4   : > { %v2481_v17 = vpack.c.bf16 %v2462_v31, %v2461_v30  ;;  %6211 = vmatmul.mubr.bf16.gmra.mrb[32].mxu1 %v3004_v40 }
 0x1d5   : > { %6214 = vmatprep.mubr.bf16.mxu1 %v3005_v55 }
 0x1d6   : > { %6149 = vmatpush3.bf16.msra.mxu0 %v7126_v10  ;;  %v7155_v10 = vld [vmem:[#allocation9 + $0x18] sm:$0xff]  }
 0x1d7   : > { %6150 = vmatprep.subr.bf16.mxu0 %v7127_v37  ;;  %6224 = vmatprep.subr.bf16.mxu1 %v7155_v10 }
 0x1d8   : > { %6225 = vmatpush3.bf16.msra.mxu1 %v7155_v10 }
 0x1d9   : > { %6127 = vmatmul.mubr.bf16.gmra.mrb[4].mxu0 %v8035_v49  ;;  %v7136_v49 = vld [vmem:[%s7730_s20 + $0x64] ss:$4 sps:$4 sm:$0xff]   ;;  %6226 = vmatprep.subr.bf16.mxu1 %v7156_v42 }
 0x1da   : > { %6151 = vmatpush3.bf16.msra.mxu0 %v7127_v37  ;;  %6130 = vmatprep.mubr.bf16.mxu0 %v8055_v59  ;;  %v7140_v59 = vld [vmem:[%s7730_s20 + $0x6c] ss:$4 sps:$4 sm:$0xff]  }
 0x1db   : > { %6152 = vmatprep.subr.bf16.mxu0 %v7130_v63 }
 0x1dc   : > { %6227 = vmatpush3.bf16.msra.mxu1 %v7156_v42 }
 0x1dd   : > { %6215 = vmatmul.mubr.bf16.gmra.mrb[36].mxu1 %v3006_v25 }
 0x1de   : > { %6153 = vmatpush3.bf16.msra.mxu0 %v7130_v63 }
 0x1df   : > { %6154 = vmatprep.subr.bf16.mxu0 %v7132_v32 }
 0x1e1   : > { %6131 = vmatmul.mubr.bf16.gmra.mrb[8].mxu0 %v8059_v60  ;;  %v2453_v60 = vld [vmem:[#allocation2 + $0x39] sm:$0xff] }
 0x1e2   : > { %6134 = vmatprep.mubr.bf16.mxu0 %v8074_v5  ;;  %6155 = vmatpush3.bf16.msra.mxu0 %v7132_v32  ;;  %v2454_v5 = vld [vmem:[#allocation2 + $0x41] sm:$0xff] }
 0x1e3   : > { %6156 = vmatprep.subr.bf16.mxu0 %v7135_v24  ;;  %v2477_v27 = vpack.c.bf16 %v2454_v5, %v2453_v60 }
 0x1e6   : > { %6157 = vmatpush3.bf16.msra.mxu0 %v7135_v24  ;;  %v7157_v24 = vld [vmem:[#allocation9 + $0x28] sm:$0xff]  }
 0x1e7   : > { %6158 = vmatprep.subr.bf16.mxu0 %v7138_v18  ;;  %6228 = vmatprep.subr.bf16.mxu1 %v7157_v24 }
 0x1e8   : > { %6229 = vmatpush3.bf16.msra.mxu1 %v7157_v24 }
 0x1e9   : > { %6135 = vmatmul.mubr.bf16.gmra.mrb[12].mxu0 %v8079_v52  ;;  %v2478_v52 = vpack.c.bf16 %v2456_v11, %v2455_v33  ;;  %6230 = vmatprep.subr.bf16.mxu1 %v7158_v56 }
 0x1ea   : > { %6138 = vmatprep.mubr.bf16.mxu0 %v8088_v8  ;;  %6159 = vmatpush3.bf16.msra.mxu0 %v7138_v18  ;;  %v2459_v8 = vld [vmem:[#allocation2 + $0x69] sm:$0xff] }
 0x1eb   : > { %6160 = vmatprep.subr.bf16.mxu0 %v7143_v47  ;;  %v2480_v16 = vpack.c.bf16 %v2460_v29, %v2459_v8  ;;  %v8226_v8 = vld [vmem:[%s8747_s2] ss:$0 sm:$0xff] }
 0x1ec   : > { %6231 = vmatpush3.bf16.msra.mxu1 %v7158_v56 }
 0x1ee   : > { %6161 = vmatpush3.bf16.msra.mxu0 %v7143_v47 }
 0x1f1   : > { %6139 = vmatmul.mubr.bf16.gmra.mrb[16].mxu0 %v7136_v49 }
 0x1f2   : > { %6142 = vmatprep.mubr.bf16.mxu0 %v7140_v59  ;;  %v7159_v59 = vld [vmem:[#allocation9 + $0x38] sm:$0xff]  }
 0x1f3   : > { %6232 = vmatprep.subr.bf16.mxu1 %v7159_v59 }
 0x1f4   : > { %6233 = vmatpush3.bf16.msra.mxu1 %v7159_v59 }
 0x1f5   : > { %6250 = vmatprep.subr.bf16.mxu1 %v8204_v1 }
 0x1f9   : > { %6143 = vmatmul.mubr.bf16.gmra.mrb[20].mxu0 %v7141_v9 }
 0x1fa   : > { %6162 = vmatprep.mubr.bf16.mxu0 %v2477_v27 }
 0x201   : > { %6163 = vmatmul.mubr.bf16.vlgmr.msra.gmra.mrb[0].mxu0 %v2478_v52 }
 0x202   : > { %6166 = vmatprep.mubr.bf16.mxu0 %v2479_v21 }
 0x209   : > { %6167 = vmatmul.mubr.bf16.gmra.mrb[4].mxu0 %v2480_v16 }
 0x20a   : > { %6170 = vmatprep.mubr.bf16.mxu0 %v2481_v17 }
 0x211   : > { %6171 = vmatmul.mubr.bf16.gmra.mrb[8].mxu0 %v2482_v45 }
 0x212   : > { %6174 = vmatprep.mubr.bf16.mxu0 %v2483_v54  ;;  %v2838_v54 = vpop.permute.xlu1 %2837 }
 0x219   : > { %6175 = vmatmul.mubr.bf16.gmra.mrb[12].mxu0 %v2484_v39 }
 0x21a   : > { %6178 = vmatprep.mubr.bf16.mxu0 %v2485_v57 }
 0x221   : > { %6179 = vmatmul.mubr.bf16.gmra.mrb[16].mxu0 %v2486_v62 }
 0x222   : > { %6182 = vmatprep.mubr.bf16.mxu0 %v2487_v43 }
 0x226   : > { %v5844_v15 = vpop.f32.mrb[0].mxu1 }
 0x227   : > { %v8162_v2 = vpop.f32.mrb[1].mxu1 }
 0x228   : > { %v8164_v34 = vpop.f32.mrb[2].mxu1 }
 0x229   : > { %6183 = vmatmul.mubr.bf16.gmra.mrb[20].mxu0 %v2488_v51  ;;  %v8166_v20 = vpop.f32.mrb[3].mxu1 }
 0x22d   : > { %v7008_v52 = vpop.permute.xlu0 %7007 }
 0x22e   : > { %v8172_v23 = vpop.f32.mrb[4].mxu1  ;;  %v7009_v45 = vunpack.i.l.bf16 %v7008_v52  ;;  %v7010_v57 = vunpack.i.h.bf16 %v7008_v52 }
 0x22f   : > { %v8174_v37 = vpop.f32.mrb[5].mxu1 }
 0x230   : > { %v8176_v63 = vpop.f32.mrb[6].mxu1 }
 0x231   : > { %v8178_v32 = vpop.f32.mrb[7].mxu1 }
 0x232   : > { %v7013_v31 = vpop.permute.xlu0 %7012 }
 0x233   : > { %v7014_v41 = vunpack.i.l.bf16 %v7013_v31  ;;  %v7015_v19 = vunpack.i.h.bf16 %v7013_v31 }
 0x236   : > { %v8184_v46 = vpop.f32.mrb[8].mxu1  ;;  %v7024_v56 = vpop.permute.xlu0 %7023 }
 0x237   : > { %v8186_v18 = vpop.f32.mrb[9].mxu1 }
 0x238   : > { %v8188_v47 = vpop.f32.mrb[10].mxu1 }
 0x239   : > { %v8190_v49 = vpop.f32.mrb[11].mxu1 }
 0x249   : > { %v8196_v0 = vpop.f32.mrb[12].mxu1 }
 0x24a   : > { %v8198_v60 = vpop.f32.mrb[13].mxu1 }
 0x24b   : > { %v8200_v5 = vpop.f32.mrb[14].mxu1 }
 0x24c   : > { %v8202_v9 = vpop.f32.mrb[15].mxu1 }
 0x251   : > { %v8207_v3 = vpop.f32.mrb[16].mxu1 }
 0x252   : > { %v8209_v4 = vpop.f32.mrb[17].mxu1 }
 0x253   : > { %v8211_v22 = vpop.f32.mrb[18].mxu1 }
 0x254   : > { %v8213_v27 = vpop.f32.mrb[19].mxu1 }
 0x270   : > { %v8215_v33 = vpop.f32.mrb[20].mxu1 }
 0x271   : > { %v8217_v11 = vpop.f32.mrb[21].mxu1 }
 0x272   : > { %v8219_v12 = vpop.f32.mrb[22].mxu1 }
 0x273   : > { %v8221_v26 = vpop.f32.mrb[23].mxu1 }
 0x2d4   : > { %v6164_v21 = vpop.f32.mrb[0].mxu0 }
 0x2d5   : > { %v6506_v29 = vadd.f32 %v6164_v21, %v5844_v15  ;;  %v2588_v30 = vpop.f32.mrb[1].mxu0 }
 0x2d6   : > { %v6507_v16 = vadd.f32 %v2588_v30, %v8162_v2  ;;  %v6165_v17 = vpop.f32.mrb[2].mxu0 }
 0x2d7   : > { %v2716_v38 = vadd.f32 %v6506_v29, %v8226_v8  ;;  %v6508_v44 = vadd.f32 %v6165_v17, %v8164_v34  ;;  %v2591_v35 = vpop.f32.mrb[3].mxu0  ;;  %v7025_v29 = vunpack.i.l.bf16 %v7024_v56 }
 0x2d8   : > { %v2714_v6 = vadd.f32 %v6507_v16, %v8226_v8  ;;  %v6509_v14 = vadd.f32 %v2591_v35, %v8166_v20  ;;  %v7019_v20 = vpop.permute.xlu1 %7018 }
 0x2d9   : > { %v2740_v28 = vmax.f32 %v2716_v38, 0.0  ;;  %v2717_v39 = vadd.f32 %v6508_v44, %v8226_v8  ;;  %v7021_v10 = vunpack.i.h.bf16 %v7019_v20  ;;  %v7020_v59 = vunpack.i.l.bf16 %v7019_v20 }
 0x2da   : > { %v2738_v61 = vmax.f32 %v2714_v6, 0.0  ;;  %v2715_v62 = vadd.f32 %v6509_v14, %v8226_v8 }
 0x2db   : > { %v8235_v43 = vmul.f32 %v7014_v41, %v2740_v28  ;;  %v2741_v48 = vmax.f32 %v2717_v39, 0.0 }
 0x2dc   : > { %v2935_v58 = vmul.f32 %v7009_v45, %v2738_v61  ;;  %v2739_v51 = vmax.f32 %v2715_v62, 0.0  ;;  %v6168_v15 = vpop.f32.mrb[4].mxu0 }
 0x2dd   : > { %2961 = vst [vmem:[#allocation3 + $0x10] sm:$0xff] %v8235_v43  ;;  %v8238_v53 = vmul.f32 %v7015_v19, %v2741_v48  ;;  %v6510_v2 = vadd.f32 %v6168_v15, %v8172_v23  ;;  %v2604_v34 = vpop.f32.mrb[5].mxu0 }
 0x2de   : > { %2959 = vst [vmem:[#allocation3] sm:$0xff] %v2935_v58  ;;  %v8241_v36 = vmul.f32 %v7010_v57, %v2739_v51  ;;  %v6511_v50 = vadd.f32 %v2604_v34, %v8174_v37  ;;  %v6169_v13 = vpop.f32.mrb[6].mxu0  ;;  %v7029_v57 = vpop.permute.xlu1 %7028 }
 0x2df   : > { %2962 = vst [vmem:[#allocation3 + $0x18] sm:$0xff] %v8238_v53  ;;  %v2720_v7 = vadd.f32 %v6510_v2, %v8226_v8  ;;  %v6512_v40 = vadd.f32 %v6169_v13, %v8176_v63  ;;  %v2607_v42 = vpop.f32.mrb[7].mxu0  ;;  %v7031_v58 = vunpack.i.h.bf16 %v7029_v57  ;;  %v7026_v2 = vunpack.i.h.bf16 %v7024_v56  ;;  %v7034_v34 = vpop.permute.xlu0 %7033 }
 0x2e0   : > { %2960 = vst [vmem:[#allocation3 + $0x8] sm:$0xff] %v8241_v36  ;;  %v2718_v23 = vadd.f32 %v6511_v50, %v8226_v8  ;;  %v6513_v24 = vadd.f32 %v2607_v42, %v8178_v32  ;;  %v7035_v13 = vunpack.i.l.bf16 %v7034_v34 }
 0x2e1   : > { %v2744_v25 = vmax.f32 %v2720_v7, 0.0  ;;  %v2721_v37 = vadd.f32 %v6512_v40, %v8226_v8  ;;  %v7030_v7 = vunpack.i.l.bf16 %v7029_v57 }
 0x2e2   : > { %v2742_v52 = vmax.f32 %v2718_v23, 0.0  ;;  %v2719_v21 = vadd.f32 %v6513_v24, %v8226_v8 }
 0x2e3   : > { %v8254_v63 = vmul.f32 %v7021_v10, %v2744_v25  ;;  %v2745_v30 = vmax.f32 %v2721_v37, 0.0 }
 0x2e4   : > { %v8256_v31 = vmul.f32 %v2838_v54, %v2742_v52  ;;  %v2743_v16 = vmax.f32 %v2719_v21, 0.0  ;;  %v6172_v17 = vpop.f32.mrb[8].mxu0 }
 0x2e5   : > { %2965 = vst [vmem:[#allocation3 + $0x30] sm:$0xff] %v8254_v63  ;;  %v8259_v32 = vmul.f32 %v7025_v29, %v2745_v30  ;;  %v6514_v41 = vadd.f32 %v6172_v17, %v8184_v46  ;;  %v2620_v38 = vpop.f32.mrb[9].mxu0 }
 0x2e6   : > { %2963 = vst [vmem:[#allocation3 + $0x20] sm:$0xff] %v8256_v31  ;;  %v8263_v44 = vmul.f32 %v7020_v59, %v2743_v16  ;;  %v6515_v35 = vadd.f32 %v2620_v38, %v8186_v18  ;;  %v6173_v45 = vpop.f32.mrb[10].mxu0  ;;  %v3200_v56 = vld [vmem:[#allocation3 + $0x17] sm:$0xff]  ;;  %v7161_v16 = vld [vmem:[#allocation9 + $0x48] sm:$0xff]  }
 0x2e7   : > { %2966 = vst [vmem:[#allocation3 + $0x38] sm:$0xff] %v8259_v32  ;;  %v2724_v6 = vadd.f32 %v6514_v41, %v8226_v8  ;;  %v6516_v14 = vadd.f32 %v6173_v45, %v8188_v47  ;;  %v2623_v19 = vpop.f32.mrb[11].mxu0  ;;  %v3198_v28 = vld [vmem:[#allocation3 + $0x7] sm:$0xff]  ;;  %v3199_v46 = vld [vmem:[#allocation3 + $0xf] sm:$0xff]  ;;  %v7036_v41 = vunpack.i.h.bf16 %v7034_v34 }
 0x2e8   : > { %2964 = vst [vmem:[#allocation3 + $0x28] sm:$0xff] %v8263_v44  ;;  %v2722_v18 = vadd.f32 %v6515_v35, %v8226_v8  ;;  %v6517_v61 = vadd.f32 %v2623_v19, %v8190_v49  ;;  %v3214_v62 = vpack.c.bf16 %v3199_v46, %v3198_v28  ;;  %v8310_v19 = vpop.permute.xlu0 %7043  ;;  %v7039_v28 = vpop.permute.xlu1 %7038 }
 0x2e9   : > { %v2748_v51 = vmax.f32 %v2724_v6, 0.0  ;;  %v2725_v47 = vadd.f32 %v6516_v14, %v8226_v8  ;;  %v7164_v14 = vld [vmem:[#allocation9 + $0x60] sm:$0xff]  }
 0x2ea   : > { %v2746_v20 = vmax.f32 %v2722_v18, 0.0  ;;  %v2723_v50 = vadd.f32 %v6517_v61, %v8226_v8  ;;  %6234 = vmatprep.mubr.bf16.mxu1 %v3214_v62 }
 0x2eb   : > { %v8282_v10 = vmul.f32 %v7031_v58, %v2748_v51  ;;  %v2749_v49 = vmax.f32 %v2725_v47, 0.0  ;;  %v7045_v58 = vunpack.i.l.bf16 %v8310_v19  ;;  %v7041_v51 = vunpack.i.h.bf16 %v7039_v28 }
 0x2ec   : > { %v8284_v40 = vmul.f32 %v7026_v2, %v2746_v20  ;;  %v2747_v42 = vmax.f32 %v2723_v50, 0.0  ;;  %v6176_v23 = vpop.f32.mrb[12].mxu0  ;;  %v7162_v20 = vld [vmem:[#allocation9 + $0x50] sm:$0xff]  }
 0x2ed   : > { %2969 = vst [vmem:[#allocation3 + $0x50] sm:$0xff] %v8282_v10  ;;  %v8287_v24 = vmul.f32 %v7035_v13, %v2749_v49  ;;  %v6518_v25 = vadd.f32 %v6176_v23, %v8196_v0  ;;  %v2636_v37 = vpop.f32.mrb[13].mxu0  ;;  %v8290_v59 = vld [vmem:[#allocation3 + $0x1f] sm:$0xff]  ;;  %v7040_v23 = vunpack.i.l.bf16 %v7039_v28 }
 0x2ee   : > { %2967 = vst [vmem:[#allocation3 + $0x40] sm:$0xff] %v8284_v40  ;;  %v8293_v52 = vmul.f32 %v7030_v7, %v2747_v42  ;;  %v6519_v21 = vadd.f32 %v2636_v37, %v8198_v60  ;;  %v6177_v29 = vpop.f32.mrb[14].mxu0  ;;  %v3215_v30 = vpack.c.bf16 %v8290_v59, %v3200_v56  ;;  %v8306_v60 = vld [vmem:[#allocation3 + $0x37] sm:$0xff] }
 0x2ef   : > { %2970 = vst [vmem:[#allocation3 + $0x58] sm:$0xff] %v8287_v24  ;;  %v2728_v0 = vadd.f32 %v6518_v25, %v8226_v8  ;;  %v6520_v38 = vadd.f32 %v6177_v29, %v8200_v5  ;;  %v2639_v35 = vpop.f32.mrb[15].mxu0  ;;  %v8302_v45 = vld [vmem:[#allocation3 + $0x27] sm:$0xff]  ;;  %v8304_v6 = vld [vmem:[#allocation3 + $0x2f] sm:$0xff] }
 0x2f0   : > { %2968 = vst [vmem:[#allocation3 + $0x48] sm:$0xff] %v8293_v52  ;;  %v2726_v46 = vadd.f32 %v6519_v21, %v8226_v8  ;;  %v6521_v57 = vadd.f32 %v2639_v35, %v8202_v9  ;;  %6235 = vmatmul.mubr.bf16.vlgmr.msra.gmra.mrb[24].mxu1 %v3215_v30  ;;  %v3216_v5 = vpack.c.bf16 %v8304_v6, %v8302_v45  ;;  %v8319_v61 = vld [vmem:[#allocation3 + $0x21] sm:$0xff]  ;;  %v8321_v62 = vld [vmem:[#allocation3 + $0x29] sm:$0xff]  ;;  %v7046_v21 = vunpack.i.h.bf16 %v8310_v19 }
 0x2f1   : > { %v2752_v47 = vmax.f32 %v2728_v0, 0.0  ;;  %v2729_v2 = vadd.f32 %v6520_v38, %v8226_v8  ;;  %6251 = vmatpush3.bf16.msra.mxu1 %v8204_v1 }
 0x2f2   : > { %v2750_v9 = vmax.f32 %v2726_v46, 0.0  ;;  %v2727_v34 = vadd.f32 %v6521_v57, %v8226_v8  ;;  %6238 = vmatprep.mubr.bf16.mxu1 %v3216_v5  ;;  %6252 = vmatprep.subr.bf16.mxu1 %v7161_v16  ;;  %v7163_v57 = vld [vmem:[#allocation9 + $0x58] sm:$0xff]   ;;  %v7049_v5 = vpop.permute.xlu0 %7048 }
 0x2f3   : > { %v8331_v49 = vmul.f32 %v7041_v51, %v2752_v47  ;;  %v2753_v7 = vmax.f32 %v2729_v2, 0.0  ;;  %v7050_v1 = vunpack.i.l.bf16 %v7049_v5 }
 0x2f4   : > { %v8337_v25 = vmul.f32 %v7036_v41, %v2750_v9  ;;  %v2751_v37 = vmax.f32 %v2727_v34, 0.0  ;;  %v6180_v56 = vpop.f32.mrb[16].mxu0 }
 0x2f5   : > { %2973 = vst [vmem:[#allocation3 + $0x70] sm:$0xff] %v8331_v49  ;;  %v8341_v29 = vmul.f32 %v7045_v58, %v2753_v7  ;;  %v6522_v30 = vadd.f32 %v6180_v56, %v8207_v3  ;;  %v2652_v0 = vpop.f32.mrb[17].mxu0  ;;  %6253 = vmatpush3.bf16.msra.mxu1 %v7161_v16  ;;  %v8344_v38 = vld [vmem:[#allocation3 + $0x3f] sm:$0xff]  ;;  %v8358_v16 = vld [vmem:[#allocation3 + $0x31] sm:$0xff]  ;;  %v7051_v7 = vunpack.i.h.bf16 %v7049_v5 }
 0x2f6   : > { %v8346_v35 = vld [vmem:[#allocation3 + $0x39] sm:$0xff]  ;;  %2971 = vst [vmem:[#allocation3 + $0x60] sm:$0xff] %v8337_v25  ;;  %v8349_v41 = vmul.f32 %v7040_v23, %v2751_v37  ;;  %v6523_v28 = vadd.f32 %v2652_v0, %v8209_v4  ;;  %v6181_v46 = vpop.f32.mrb[18].mxu0  ;;  %v8354_v19 = vpack.c.bf16 %v8344_v38, %v8306_v60  ;;  %6254 = vmatprep.subr.bf16.mxu1 %v7162_v20  ;;  %v2903_v23 = vpop.permute.xlu1 %2902 }
 0x2f7   : > { %2974 = vst [vmem:[#allocation3 + $0x78] sm:$0xff] %v8341_v29  ;;  %v2732_v58 = vadd.f32 %v6522_v30, %v8226_v8  ;;  %v6524_v51 = vadd.f32 %v6181_v46, %v8211_v22  ;;  %v2655_v4 = vpop.f32.mrb[19].mxu0  ;;  %v8363_v47 = vld [vmem:[#allocation3 + $0x47] sm:$0xff]  ;;  %v8365_v2 = vld [vmem:[#allocation3 + $0x4f] sm:$0xff]  ;;  %v8367_v9 = vld [vmem:[#allocation3 + $0x57] sm:$0xff]  ;;  %v7054_v13 = vpop.permute.xlu0 %7053 }
 0x2f8   : > { %2972 = vst [vmem:[#allocation3 + $0x68] sm:$0xff] %v8349_v41  ;;  %v2730_v37 = vadd.f32 %v6523_v28, %v8226_v8  ;;  %v6525_v22 = vadd.f32 %v2655_v4, %v8213_v27  ;;  %6239 = vmatmul.mubr.bf16.gmra.mrb[28].mxu1 %v8354_v19  ;;  %v8379_v56 = vpack.c.bf16 %v8365_v2, %v8363_v47  ;;  %v8383_v0 = vld [vmem:[#allocation3 + $0x41] sm:$0xff]  ;;  %v8385_v46 = vld [vmem:[#allocation3 + $0x49] sm:$0xff]  ;;  %v7056_v50 = vunpack.i.h.bf16 %v7054_v13 }
 0x2f9   : > { %v2756_v34 = vmax.f32 %v2732_v58, 0.0  ;;  %v2733_v28 = vadd.f32 %v6524_v51, %v8226_v8  ;;  %6255 = vmatpush3.bf16.msra.mxu1 %v7162_v20 }
 0x2fa   : > { %v2754_v27 = vmax.f32 %v2730_v37, 0.0  ;;  %v2731_v4 = vadd.f32 %v6525_v22, %v8226_v8  ;;  %6242 = vmatprep.mubr.bf16.mxu1 %v8379_v56  ;;  %6256 = vmatprep.subr.bf16.mxu1 %v7163_v57  ;;  %v2918_v58 = vpop.permute.xlu1 %2917 }
 0x2fb   : > { %v8394_v15 = vmul.f32 %v7050_v1, %v2756_v34  ;;  %v2757_v5 = vmax.f32 %v2733_v28, 0.0 }
 0x2fc   : > { %v8400_v51 = vmul.f32 %v7046_v21, %v2754_v27  ;;  %v2755_v37 = vmax.f32 %v2731_v4, 0.0  ;;  %v6184_v22 = vpop.f32.mrb[20].mxu0 }
 0x2fd   : > { %2977 = vst [vmem:[#allocation3 + $0x90] sm:$0xff] %v8394_v15  ;;  %v8403_v42 = vmul.f32 %v7051_v7, %v2757_v5  ;;  %v6526_v39 = vadd.f32 %v6184_v22, %v8215_v33  ;;  %v2668_v1 = vpop.f32.mrb[21].mxu0  ;;  %6257 = vmatpush3.bf16.msra.mxu1 %v7163_v57  ;;  %v8406_v34 = vld [vmem:[#allocation3 + $0x5f] sm:$0xff]  ;;  %v7165_v33 = vld [vmem:[#allocation9 + $0x68] sm:$0xff]   ;;  %v8420_v5 = vld [vmem:[#allocation3 + $0x51] sm:$0xff] }
 0x2fe   : > { %v8408_v28 = vld [vmem:[#allocation3 + $0x59] sm:$0xff]  ;;  %2975 = vst [vmem:[#allocation3 + $0x80] sm:$0xff] %v8400_v51  ;;  %v8411_v21 = vmul.f32 %v2903_v23, %v2755_v37  ;;  %v6527_v27 = vadd.f32 %v2668_v1, %v8217_v11  ;;  %v6185_v4 = vpop.f32.mrb[22].mxu0  ;;  %v8416_v7 = vpack.c.bf16 %v8406_v34, %v8367_v9  ;;  %6258 = vmatprep.subr.bf16.mxu1 %v7164_v14 }
 0x2ff   : > { %2978 = vst [vmem:[#allocation3 + $0x98] sm:$0xff] %v8403_v42  ;;  %v2736_v22 = vadd.f32 %v6526_v39, %v8226_v8  ;;  %v6528_v23 = vadd.f32 %v6185_v4, %v8219_v12  ;;  %v2671_v37 = vpop.f32.mrb[23].mxu0  ;;  %v8425_v11 = vld [vmem:[#allocation3 + $0x67] sm:$0xff]  ;;  %v8427_v1 = vld [vmem:[#allocation3 + $0x6f] sm:$0xff]  ;;  %v8429_v20 = vld [vmem:[#allocation3 + $0x77] sm:$0xff] }
 0x300   : > { %8804 = vst [vmem:[#allocation20_spill] sm:$0xff] %v8416_v7  ;;  %2976 = vst [vmem:[#allocation3 + $0x88] sm:$0xff] %v8411_v21  ;;  %v2734_v30 = vadd.f32 %v6527_v27, %v8226_v8  ;;  %v6529_v39 = vadd.f32 %v2671_v37, %v8221_v26  ;;  %6243 = vmatmul.mubr.bf16.gmra.mrb[32].mxu1 %v8416_v7  ;;  %v8441_v12 = vpack.c.bf16 %v8427_v1, %v8425_v11  ;;  %v8443_v4 = vld [vmem:[#allocation3 + $0x61] sm:$0xff]  ;;  %v8445_v3 = vld [vmem:[#allocation3 + $0x69] sm:$0xff]  ;;  %v2933_v27 = vpop.permute.xlu1 %2932 }
 0x301   : > { %v2760_v18 = vmax.f32 %v2736_v22, 0.0  ;;  %v2737_v57 = vadd.f32 %v6528_v23, %v8226_v8  ;;  %6259 = vmatpush3.bf16.msra.mxu1 %v7164_v14  ;;  %v7166_v37 = vld [vmem:[#allocation9 + $0x70] sm:$0xff]   ;;  %v4227_v14 = vpack.c.bf16 %v8445_v3, %v8443_v4  ;;  %v7055_v23 = vunpack.i.l.bf16 %v7054_v13 }
 0x302   : > { %8805 = vst [vmem:[#allocation21_spill] sm:$0xff] %v8441_v12  ;;  %v2758_v17 = vmax.f32 %v2734_v30, 0.0  ;;  %v2735_v26 = vadd.f32 %v6529_v39, %v8226_v8  ;;  %6246 = vmatprep.mubr.bf16.mxu1 %v8441_v12  ;;  %6260 = vmatprep.subr.bf16.mxu1 %v7165_v33  ;;  %v8460_v12 = vld [vmem:[#allocation3 + $0x71] sm:$0xff] }
 0x303   : > { %v2957_v22 = vmul.f32 %v7056_v50, %v2760_v18  ;;  %v2761_v55 = vmax.f32 %v2737_v57, 0.0  ;;  %v7167_v50 = vld [vmem:[#allocation9 + $0x78] sm:$0xff]   ;;  %v8806_v57 = vpack.c.bf16 %v8235_v43, %v8241_v36  ;;  %v7170_v43 = vld [vmem:[#allocation9 + $0x90] sm:$0xff]  }
 0x304   : > { %v2955_v30 = vmul.f32 %v2918_v58, %v2758_v17  ;;  %v2759_v7 = vmax.f32 %v2735_v26, 0.0  ;;  %v7168_v26 = vld [vmem:[#allocation9 + $0x80] sm:$0xff]   ;;  %v7171_v36 = vld [vmem:[#allocation9 + $0x98] sm:$0xff]  }
 0x305   : > { %2981 = vst [vmem:[#allocation3 + $0xb0] sm:$0xff] %v2957_v22  ;;  %v2958_v8 = vmul.f32 %v2933_v27, %v2761_v55  ;;  %6261 = vmatpush3.bf16.msra.mxu1 %v7165_v33  ;;  %v8458_v39 = vld [vmem:[#allocation3 + $0x7f] sm:$0xff]  ;;  %v8807_v22 = vpack.c.bf16 %v8256_v31, %v8238_v53  ;;  %v8816_v27 = vpack.c.bf16 %v8363_v47, %v8344_v38 }
 0x306   : > { %v8462_v48 = vld [vmem:[#allocation3 + $0x79] sm:$0xff]  ;;  %2979 = vst [vmem:[#allocation3 + $0xa0] sm:$0xff] %v2955_v30  ;;  %v2956_v54 = vmul.f32 %v7055_v23, %v2759_v7  ;;  %v8466_v18 = vpack.c.bf16 %v8458_v39, %v8429_v20  ;;  %6262 = vmatprep.subr.bf16.mxu1 %v7166_v37  ;;  %v8470_v13 = vld [vmem:[#allocation3 + $0x91] sm:$0xff]  ;;  %v8808_v23 = vpack.c.bf16 %v8254_v63, %v8263_v44 }
 0x307   : > { %v4228_v17 = vpack.c.bf16 %v8462_v48, %v8460_v12  ;;  %2982 = vst [vmem:[#allocation3 + $0xb8] sm:$0xff] %v2958_v8  ;;  %v8472_v55 = vld [vmem:[#allocation3 + $0x87] sm:$0xff]  ;;  %v8474_v58 = vld [vmem:[#allocation3 + $0x8f] sm:$0xff]  ;;  %v8810_v30 = vpack.c.bf16 %v8282_v10, %v8293_v52  ;;  %v8819_v47 = vpack.c.bf16 %v8429_v20, %v8427_v1 }
 0x308   : > { %2980 = vst [vmem:[#allocation3 + $0xa8] sm:$0xff] %v2956_v54  ;;  %6247 = vmatmul.mubr.bf16.gmra.mrb[36].mxu1 %v8466_v18  ;;  %v8477_v7 = vld [vmem:[#allocation3 + $0x89] sm:$0xff]  ;;  %v4430_v33 = vpack.c.bf16 %v8474_v58, %v8472_v55  ;;  %v7172_v53 = vld [vmem:[#allocation9 + $0xa0] sm:$0xff]   ;;  %v3825_v38 = vpack.c.bf16 %v8472_v55, %v8458_v39  ;;  %v8820_v39 = vpack.c.bf16 %v8263_v44, %v8256_v31  ;;  %v7195_v31 = vld [vmem:[#allocation9 + $0x158] sm:$0xff]  }
 0x309   : > { %6263 = vmatpush3.bf16.msra.mxu1 %v7166_v37  ;;  %6266 = vmatprep.mubr.bf16.mxu1 %v8806_v57  ;;  %v7169_v54 = vld [vmem:[#allocation9 + $0x88] sm:$0xff]   ;;  %v8809_v37 = vpack.c.bf16 %v8284_v40, %v8259_v32  ;;  %v8812_v57 = vpack.c.bf16 %v8331_v49, %v8349_v41  ;;  %v7192_v20 = vld [vmem:[#allocation9 + $0x140] sm:$0xff]   ;;  %v8823_v44 = vpack.c.bf16 %v8287_v24, %v8282_v10  ;;  %v7198_v10 = vld [vmem:[#allocation9 + $0x170] sm:$0xff]  }
 0x30a   : > { %6264 = vmatprep.subr.bf16.mxu1 %v7167_v50  ;;  %v7173_v8 = vld [vmem:[#allocation9 + $0xa8] sm:$0xff]  }
 0x30b   : > { %v7193_v1 = vld [vmem:[#allocation9 + $0x148] sm:$0xff]  }
 0x30c   : > { %v4613_v55 = vld [vmem:[#allocation3 + $0x48] sm:$0xff] }
 0x30d   : > { %6265 = vmatpush3.bf16.msra.mxu1 %v7167_v50  ;;  %v8811_v50 = vpack.c.bf16 %v8337_v25, %v8287_v24  ;;  %v7199_v24 = vld [vmem:[#allocation9 + $0x178] sm:$0xff]  }
 0x30e   : > { %6282 = vmatprep.subr.bf16.mxu1 %v7168_v26 }
 0x310   : > { %6267 = vmatmul.mubr.bf16.vlgmr.msra.gmra.mrb[24].mxu1 %v8807_v22  ;;  %v3602_v22 = vld [vmem:[#allocation3 + $0x11] sm:$0xff] }
 0x311   : > { %6270 = vmatprep.mubr.bf16.mxu1 %v8808_v23  ;;  %6283 = vmatpush3.bf16.msra.mxu1 %v7168_v26  ;;  %v7174_v26 = vld [vmem:[#allocation9 + $0xb0] sm:$0xff]   ;;  %v7175_v23 = vld [vmem:[#allocation9 + $0xb8] sm:$0xff]  }
 0x312   : > { %6284 = vmatprep.subr.bf16.mxu1 %v7169_v54 }
 0x315   : > { %6285 = vmatpush3.bf16.msra.mxu1 %v7169_v54  ;;  %v3601_v54 = vld [vmem:[#allocation3 + $0x9] sm:$0xff] }
 0x316   : > { %6286 = vmatprep.subr.bf16.mxu1 %v7170_v43 }
 0x318   : > { %6271 = vmatmul.mubr.bf16.gmra.mrb[28].mxu1 %v8809_v37  ;;  %v7176_v37 = vld [vmem:[#allocation9 + $0xc0] sm:$0xff]  }
 0x319   : > { %6274 = vmatprep.mubr.bf16.mxu1 %v8810_v30  ;;  %6287 = vmatpush3.bf16.msra.mxu1 %v7170_v43  ;;  %v3617_v43 = vpack.c.bf16 %v3602_v22, %v3601_v54  ;;  %v3603_v30 = vld [vmem:[#allocation3 + $0x19] sm:$0xff]  ;;  %v8516_v22 = vpack.c.bf16 %v8420_v5, %v8385_v46 }
 0x31a   : > { %6288 = vmatprep.subr.bf16.mxu1 %v7171_v36  ;;  %v7179_v54 = vld [vmem:[#allocation9 + $0xd8] sm:$0xff]  }
 0x31d   : > { %6289 = vmatpush3.bf16.msra.mxu1 %v7171_v36  ;;  %v8813_v36 = vpack.c.bf16 %v8400_v51, %v8341_v29 }
 0x31e   : > { %6290 = vmatprep.subr.bf16.mxu1 %v7172_v53 }
 0x320   : > { %6275 = vmatmul.mubr.bf16.gmra.mrb[32].mxu1 %v8811_v50  ;;  %v7177_v50 = vld [vmem:[#allocation9 + $0xc8] sm:$0xff]  }
 0x321   : > { %6278 = vmatprep.mubr.bf16.mxu1 %v8812_v57  ;;  %6291 = vmatpush3.bf16.msra.mxu1 %v7172_v53  ;;  %v3618_v53 = vpack.c.bf16 %v8319_v61, %v3603_v30  ;;  %v7178_v57 = vld [vmem:[#allocation9 + $0xd0] sm:$0xff]  }
 0x322   : > { %6292 = vmatprep.subr.bf16.mxu1 %v7173_v8  ;;  %v7182_v30 = vld [vmem:[#allocation9 + $0xf0] sm:$0xff]  }
 0x325   : > { %6293 = vmatpush3.bf16.msra.mxu1 %v7173_v8  ;;  %v3619_v8 = vpack.c.bf16 %v8358_v16, %v8321_v62 }
 0x326   : > { %6294 = vmatprep.subr.bf16.mxu1 %v7174_v26 }
 0x328   : > { %6279 = vmatmul.mubr.bf16.gmra.mrb[36].mxu1 %v8813_v36  ;;  %v7181_v36 = vld [vmem:[#allocation9 + $0xe8] sm:$0xff]  }
 0x329   : > { %6295 = vmatpush3.bf16.msra.mxu1 %v7174_v26  ;;  %6298 = vmatprep.mubr.bf16.mxu1 %v3617_v43  ;;  %v8512_v26 = vpack.c.bf16 %v8383_v0, %v8346_v35  ;;  %v8522_v43 = vpack.c.bf16 %v8443_v4, %v8408_v28  ;;  %v7210_v4 = vld [vmem:[#allocation9 + $0x1d0] sm:$0xff]  }
 0x32a   : > { %6296 = vmatprep.subr.bf16.mxu1 %v7175_v23 }
 0x32d   : > { %6297 = vmatpush3.bf16.msra.mxu1 %v7175_v23  ;;  %v7180_v23 = vld [vmem:[#allocation9 + $0xe0] sm:$0xff]  }
 0x32e   : > { %6314 = vmatprep.subr.bf16.mxu1 %v7176_v37 }
 0x330   : > { %6299 = vmatmul.mubr.bf16.vlgmr.msra.gmra.mrb[24].mxu1 %v3618_v53  ;;  %v8530_v53 = vld [vmem:[#allocation3 + $0x81] sm:$0xff] }
 0x331   : > { %6302 = vmatprep.mubr.bf16.mxu1 %v3619_v8  ;;  %6315 = vmatpush3.bf16.msra.mxu1 %v7176_v37  ;;  %v8526_v37 = vpack.c.bf16 %v8460_v12, %v8445_v3  ;;  %v7183_v8 = vld [vmem:[#allocation9 + $0xf8] sm:$0xff]   ;;  %v8832_v12 = vld [vmem:[#allocation20_spill] sm:$0xff] }
 0x332   : > { %6316 = vmatprep.subr.bf16.mxu1 %v7177_v50 }
 0x335   : > { %6317 = vmatpush3.bf16.msra.mxu1 %v7177_v50  ;;  %v8534_v50 = vpack.c.bf16 %v8530_v53, %v8462_v48  ;;  %v7209_v48 = vld [vmem:[#allocation9 + $0x1c8] sm:$0xff]  }
 0x336   : > { %6318 = vmatprep.subr.bf16.mxu1 %v7178_v57 }
 0x338   : > { %6303 = vmatmul.mubr.bf16.gmra.mrb[28].mxu1 %v8512_v26 }
 0x339   : > { %6306 = vmatprep.mubr.bf16.mxu1 %v8516_v22  ;;  %6319 = vmatpush3.bf16.msra.mxu1 %v7178_v57  ;;  %v8814_v57 = vpack.c.bf16 %v8302_v45, %v8290_v59  ;;  %v7187_v59 = vld [vmem:[#allocation9 + $0x118] sm:$0xff]   ;;  %v8817_v45 = vpack.c.bf16 %v8367_v9, %v8365_v2  ;;  %v7190_v2 = vld [vmem:[#allocation9 + $0x130] sm:$0xff]  }
 0x33a   : > { %6320 = vmatprep.subr.bf16.mxu1 %v7179_v54  ;;  %v8557_v9 = vld [vmem:[#allocation3 + $0x97] sm:$0xff] }
 0x33d   : > { %6321 = vmatpush3.bf16.msra.mxu1 %v7179_v54  ;;  %v7184_v54 = vld [vmem:[#allocation9 + $0x100] sm:$0xff]  }
 0x33e   : > { %6322 = vmatprep.subr.bf16.mxu1 %v7180_v23 }
 0x340   : > { %6307 = vmatmul.mubr.bf16.gmra.mrb[32].mxu1 %v8522_v43 }
 0x341   : > { %6310 = vmatprep.mubr.bf16.mxu1 %v8526_v37  ;;  %6323 = vmatpush3.bf16.msra.mxu1 %v7180_v23  ;;  %v7185_v23 = vld [vmem:[#allocation9 + $0x108] sm:$0xff]  }
 0x342   : > { %6324 = vmatprep.subr.bf16.mxu1 %v7181_v36 }
 0x345   : > { %6325 = vmatpush3.bf16.msra.mxu1 %v7181_v36  ;;  %v8815_v36 = vpack.c.bf16 %v8306_v60, %v8304_v6  ;;  %v7188_v6 = vld [vmem:[#allocation9 + $0x120] sm:$0xff]   ;;  %v7189_v60 = vld [vmem:[#allocation9 + $0x128] sm:$0xff]  }
 0x346   : > { %6326 = vmatprep.subr.bf16.mxu1 %v7182_v30 }
 0x348   : > { %6311 = vmatmul.mubr.bf16.gmra.mrb[36].mxu1 %v8534_v50 }
 0x349   : > { %6327 = vmatpush3.bf16.msra.mxu1 %v7182_v30  ;;  %6330 = vmatprep.mubr.bf16.mxu1 %v8814_v57  ;;  %v7186_v30 = vld [vmem:[#allocation9 + $0x110] sm:$0xff]   ;;  %v8822_v57 = vpack.c.bf16 %v8293_v52, %v8284_v40  ;;  %v8825_v40 = vpack.c.bf16 %v8341_v29, %v8331_v49  ;;  %v8826_v52 = vpack.c.bf16 %v8411_v21, %v8400_v51  ;;  %v7200_v49 = vld [vmem:[#allocation9 + $0x180] sm:$0xff]   ;;  %v7201_v29 = vld [vmem:[#allocation9 + $0x188] sm:$0xff]  }
 0x34a   : > { %6328 = vmatprep.subr.bf16.mxu1 %v7183_v8  ;;  %v8829_v51 = vpack.c.bf16 %v8346_v35, %v8358_v16  ;;  %v8830_v21 = vpack.c.bf16 %v8385_v46, %v8383_v0  ;;  %v7205_v35 = vld [vmem:[#allocation9 + $0x1a8] sm:$0xff]   ;;  %v4229_v16 = vpack.c.bf16 %v8477_v7, %v8530_v53  ;;  %v7206_v0 = vld [vmem:[#allocation9 + $0x1b0] sm:$0xff]   ;;  %v8605_v46 = vld [vmem:[#allocation3 + $0x99] sm:$0xff] }
 0x34b   : > { %v4230_v3 = vpack.c.bf16 %v8605_v46, %v8470_v13  ;;  %v4422_v53 = vld [vmem:[#allocation3 + $0x9f] sm:$0xff] }
 0x34d   : > { %6329 = vmatpush3.bf16.msra.mxu1 %v7183_v8  ;;  %v8818_v8 = vpack.c.bf16 %v8425_v11, %v8406_v34  ;;  %v3826_v34 = vpack.c.bf16 %v8557_v9, %v8474_v58  ;;  %v7191_v11 = vld [vmem:[#allocation9 + $0x138] sm:$0xff]   ;;  %v4616_v58 = vld [vmem:[#allocation3 + $0x60] sm:$0xff] }
 0x34e   : > { %6346 = vmatprep.subr.bf16.mxu1 %v7184_v54 }
 0x350   : > { %6331 = vmatmul.mubr.bf16.vlgmr.msra.gmra.mrb[24].mxu1 %v8815_v36  ;;  %v7213_v36 = vld [vmem:[#allocation9 + $0x1e8] sm:$0xff]  }
 0x351   : > { %6334 = vmatprep.mubr.bf16.mxu1 %v8816_v27  ;;  %6347 = vmatpush3.bf16.msra.mxu1 %v7184_v54  ;;  %v8821_v27 = vpack.c.bf16 %v8259_v32, %v8254_v63  ;;  %v7194_v54 = vld [vmem:[#allocation9 + $0x150] sm:$0xff]   ;;  %v7196_v63 = vld [vmem:[#allocation9 + $0x160] sm:$0xff]   ;;  %v7197_v32 = vld [vmem:[#allocation9 + $0x168] sm:$0xff]  }
 0x352   : > { %6348 = vmatprep.subr.bf16.mxu1 %v7185_v23 }
 0x355   : > { %6349 = vmatpush3.bf16.msra.mxu1 %v7185_v23  ;;  %v8824_v23 = vpack.c.bf16 %v8349_v41, %v8337_v25  ;;  %v8827_v25 = vpack.c.bf16 %v8403_v42, %v8394_v15  ;;  %v8828_v41 = vpack.c.bf16 %v8321_v62, %v8319_v61  ;;  %v7202_v15 = vld [vmem:[#allocation9 + $0x190] sm:$0xff]   ;;  %v7203_v61 = vld [vmem:[#allocation9 + $0x198] sm:$0xff]   ;;  %v8831_v62 = vpack.c.bf16 %v8408_v28, %v8420_v5  ;;  %v7204_v42 = vld [vmem:[#allocation9 + $0x1a0] sm:$0xff]  }
 0x356   : > { %6350 = vmatprep.subr.bf16.mxu1 %v7186_v30  ;;  %v7207_v28 = vld [vmem:[#allocation9 + $0x1b8] sm:$0xff]   ;;  %v7208_v5 = vld [vmem:[#allocation9 + $0x1c0] sm:$0xff]  }
 0x358   : > { %6335 = vmatmul.mubr.bf16.gmra.mrb[28].mxu1 %v8817_v45  ;;  %v4424_v45 = vld [vmem:[#allocation3 + $0xaf] sm:$0xff] }
 0x359   : > { %6338 = vmatprep.mubr.bf16.mxu1 %v8818_v8  ;;  %6351 = vmatpush3.bf16.msra.mxu1 %v7186_v30  ;;  %v7214_v30 = vld [vmem:[#allocation9 + $0x1f0] sm:$0xff]  }
 0x35a   : > { %6352 = vmatprep.subr.bf16.mxu1 %v7187_v59 }
 0x35d   : > { %6353 = vmatpush3.bf16.msra.mxu1 %v7187_v59  ;;  %v4423_v59 = vld [vmem:[#allocation3 + $0xa7] sm:$0xff] }
 0x35e   : > { %6354 = vmatprep.subr.bf16.mxu1 %v7188_v6  ;;  %v4432_v8 = vpack.c.bf16 %v4424_v45, %v4423_v59 }
 0x360   : > { %6339 = vmatmul.mubr.bf16.gmra.mrb[32].mxu1 %v8819_v47  ;;  %v7216_v47 = vld [vmem:[#allocation9 + $0x200] sm:$0xff]  }
 0x361   : > { %6342 = vmatprep.mubr.bf16.mxu1 %v3825_v38  ;;  %6355 = vmatpush3.bf16.msra.mxu1 %v7188_v6  ;;  %v4611_v6 = vld [vmem:[#allocation3 + $0x38] sm:$0xff] }
 0x362   : > { %6356 = vmatprep.subr.bf16.mxu1 %v7189_v60 }
 0x365   : > { %6357 = vmatpush3.bf16.msra.mxu1 %v7189_v60  ;;  %v7215_v60 = vld [vmem:[#allocation9 + $0x1f8] sm:$0xff]  }
 0x366   : > { %6358 = vmatprep.subr.bf16.mxu1 %v7190_v2 }
 0x368   : > { %6343 = vmatmul.mubr.bf16.gmra.mrb[36].mxu1 %v3826_v34  ;;  %v7217_v34 = vld [vmem:[#allocation9 + $0x208] sm:$0xff]  }
 0x369   : > { %6359 = vmatpush3.bf16.msra.mxu1 %v7190_v2  ;;  %6362 = vmatprep.mubr.bf16.mxu1 %v8820_v39  ;;  %v7218_v39 = vld [vmem:[#allocation9 + $0x210] sm:$0xff]  }
 0x36a   : > { %6360 = vmatprep.subr.bf16.mxu1 %v7191_v11 }
 0x36d   : > { %6361 = vmatpush3.bf16.msra.mxu1 %v7191_v11 }
 0x36e   : > { %6378 = vmatprep.subr.bf16.mxu1 %v7192_v20 }
 0x370   : > { %6363 = vmatmul.mubr.bf16.vlgmr.msra.gmra.mrb[24].mxu1 %v8821_v27  ;;  %v4618_v27 = vld [vmem:[#allocation3 + $0x70] sm:$0xff] }
 0x371   : > { %6366 = vmatprep.mubr.bf16.mxu1 %v8822_v57  ;;  %6379 = vmatpush3.bf16.msra.mxu1 %v7192_v20  ;;  %v4617_v20 = vld [vmem:[#allocation3 + $0x68] sm:$0xff] }
 0x372   : > { %6380 = vmatprep.subr.bf16.mxu1 %v7193_v1  ;;  %v4630_v57 = vpack.c.bf16 %v4618_v27, %v4617_v20 }
 0x375   : > { %6381 = vmatpush3.bf16.msra.mxu1 %v7193_v1  ;;  %v4620_v1 = vld [vmem:[#allocation3 + $0x80] sm:$0xff] }
 0x376   : > { %6382 = vmatprep.subr.bf16.mxu1 %v7194_v54 }
 0x378   : > { %6367 = vmatmul.mubr.bf16.gmra.mrb[28].mxu1 %v8823_v44 }
 0x379   : > { %6370 = vmatprep.mubr.bf16.mxu1 %v8824_v23  ;;  %6383 = vmatpush3.bf16.msra.mxu1 %v7194_v54  ;;  %v4619_v54 = vld [vmem:[#allocation3 + $0x78] sm:$0xff]  ;;  %v7220_v23 = vld [vmem:[#allocation9 + $0x220] sm:$0xff]  }
 0x37a   : > { %6384 = vmatprep.subr.bf16.mxu1 %v7195_v31  ;;  %v4631_v44 = vpack.c.bf16 %v4620_v1, %v4619_v54 }
 0x37d   : > { %6385 = vmatpush3.bf16.msra.mxu1 %v7195_v31  ;;  %v7219_v31 = vld [vmem:[#allocation9 + $0x218] sm:$0xff]  }
 0x37e   : > { %6386 = vmatprep.subr.bf16.mxu1 %v7196_v63 }
 0x380   : > { %6371 = vmatmul.mubr.bf16.gmra.mrb[32].mxu1 %v8825_v40  ;;  %v4622_v40 = vld [vmem:[#allocation3 + $0x90] sm:$0xff] }
 0x381   : > { %6374 = vmatprep.mubr.bf16.mxu1 %v8826_v52  ;;  %6387 = vmatpush3.bf16.msra.mxu1 %v7196_v63  ;;  %v4621_v63 = vld [vmem:[#allocation3 + $0x88] sm:$0xff] }
 0x382   : > { %6388 = vmatprep.subr.bf16.mxu1 %v7197_v32  ;;  %v4632_v52 = vpack.c.bf16 %v4622_v40, %v4621_v63 }
 0x385   : > { %6389 = vmatpush3.bf16.msra.mxu1 %v7197_v32  ;;  %v4624_v32 = vld [vmem:[#allocation3 + $0xa0] sm:$0xff] }
 0x386   : > { %6390 = vmatprep.subr.bf16.mxu1 %v7198_v10 }
 0x388   : > { %6375 = vmatmul.mubr.bf16.gmra.mrb[36].mxu1 %v8827_v25 }
 0x389   : > { %6391 = vmatpush3.bf16.msra.mxu1 %v7198_v10  ;;  %6394 = vmatprep.mubr.bf16.mxu1 %v8828_v41  ;;  %v4623_v10 = vld [vmem:[#allocation3 + $0x98] sm:$0xff]  ;;  %v7222_v41 = vld [vmem:[#allocation9 + $0x230] sm:$0xff]  }
 0x38a   : > { %6392 = vmatprep.subr.bf16.mxu1 %v7199_v24  ;;  %v4633_v25 = vpack.c.bf16 %v4624_v32, %v4623_v10 }
 0x38d   : > { %6393 = vmatpush3.bf16.msra.mxu1 %v7199_v24  ;;  %v7221_v24 = vld [vmem:[#allocation9 + $0x228] sm:$0xff]  }
 0x38e   : > { %6410 = vmatprep.subr.bf16.mxu1 %v7200_v49 }
 0x390   : > { %6395 = vmatmul.mubr.bf16.vlgmr.msra.gmra.mrb[24].mxu1 %v8829_v51 }
 0x391   : > { %6398 = vmatprep.mubr.bf16.mxu1 %v8830_v21  ;;  %6411 = vmatpush3.bf16.msra.mxu1 %v7200_v49  ;;  %v4625_v49 = vld [vmem:[#allocation3 + $0xa8] sm:$0xff]  ;;  %v7223_v21 = vld [vmem:[#allocation9 + $0x238] sm:$0xff]  }
 0x392   : > { %6412 = vmatprep.subr.bf16.mxu1 %v7201_v29 }
 0x395   : > { %6413 = vmatpush3.bf16.msra.mxu1 %v7201_v29  ;;  %v4626_v29 = vld [vmem:[#allocation3 + $0xb0] sm:$0xff] }
 0x396   : > { %6414 = vmatprep.subr.bf16.mxu1 %v7202_v15  ;;  %v4634_v51 = vpack.c.bf16 %v4626_v29, %v4625_v49 }
 0x398   : > { %6399 = vmatmul.mubr.bf16.gmra.mrb[28].mxu1 %v8831_v62  ;;  %v8834_v62 = vpack.c.bf16 %v8470_v13, %v8477_v7 }
 0x399   : > { %6402 = vmatprep.mubr.bf16.mxu1 %v4227_v14  ;;  %6415 = vmatpush3.bf16.msra.mxu1 %v7202_v15  ;;  %v7211_v14 = vld [vmem:[#allocation9 + $0x1d8] sm:$0xff]   ;;  %v4826_v15 = vld [vmem:[#allocation3 + $0xa1] sm:$0xff] }
 0x39a   : > { %6416 = vmatprep.subr.bf16.mxu1 %v7203_v61 }
 0x39d   : > { %6417 = vmatpush3.bf16.msra.mxu1 %v7203_v61  ;;  %v4835_v61 = vpack.c.bf16 %v4826_v15, %v8605_v46 }
 0x39e   : > { %6418 = vmatprep.subr.bf16.mxu1 %v7204_v42 }
 0x3a0   : > { %6403 = vmatmul.mubr.bf16.gmra.mrb[32].mxu1 %v4228_v17  ;;  %v8833_v17 = vld [vmem:[#allocation21_spill] sm:$0xff] }
 0x3a1   : > { %6406 = vmatprep.mubr.bf16.mxu1 %v4229_v16  ;;  %6419 = vmatpush3.bf16.msra.mxu1 %v7204_v42  ;;  %v4828_v42 = vld [vmem:[#allocation3 + $0xb1] sm:$0xff] }
 0x3a2   : > { %6420 = vmatprep.subr.bf16.mxu1 %v7205_v35 }
 0x3a5   : > { %6421 = vmatpush3.bf16.msra.mxu1 %v7205_v35 }
 0x3a6   : > { %6422 = vmatprep.subr.bf16.mxu1 %v7206_v0 }
 0x3a8   : > { %6407 = vmatmul.mubr.bf16.gmra.mrb[36].mxu1 %v4230_v3 }
 0x3a9   : > { %6423 = vmatpush3.bf16.msra.mxu1 %v7206_v0  ;;  %6426 = vmatprep.mubr.bf16.mxu1 %v8354_v19  ;;  %v7212_v19 = vld [vmem:[#allocation9 + $0x1e0] sm:$0xff]  }
 0x3aa   : > { %6424 = vmatprep.subr.bf16.mxu1 %v7207_v28 }
 0x3ad   : > { %6425 = vmatpush3.bf16.msra.mxu1 %v7207_v28 }
 0x3ae   : > { %6442 = vmatprep.subr.bf16.mxu1 %v7208_v5 }
 0x3b0   : > { %6427 = vmatmul.mubr.bf16.vlgmr.msra.gmra.mrb[24].mxu1 %v8379_v56  ;;  %v4431_v56 = vpack.c.bf16 %v4422_v53, %v8557_v9  ;;  %v4615_v9 = vld [vmem:[#allocation3 + $0x58] sm:$0xff] }
 0x3b1   : > { %6430 = vmatprep.mubr.bf16.mxu1 %v8832_v12  ;;  %6443 = vmatpush3.bf16.msra.mxu1 %v7208_v5  ;;  %v4629_v11 = vpack.c.bf16 %v4616_v58, %v4615_v9 }
 0x3b2   : > { %6444 = vmatprep.subr.bf16.mxu1 %v7209_v48 }
 0x3b5   : > { %6445 = vmatpush3.bf16.msra.mxu1 %v7209_v48 }
 0x3b6   : > { %6446 = vmatprep.subr.bf16.mxu1 %v7210_v4 }
 0x3b8   : > { %6431 = vmatmul.mubr.bf16.gmra.mrb[28].mxu1 %v8833_v17 }
 0x3b9   : > { %6434 = vmatprep.mubr.bf16.mxu1 %v8466_v18  ;;  %6447 = vmatpush3.bf16.msra.mxu1 %v7210_v4  ;;  %v4612_v18 = vld [vmem:[#allocation3 + $0x40] sm:$0xff] }
 0x3ba   : > { %6448 = vmatprep.subr.bf16.mxu1 %v7211_v14  ;;  %v4627_v38 = vpack.c.bf16 %v4612_v18, %v4611_v6 }
 0x3bd   : > { %6449 = vmatpush3.bf16.msra.mxu1 %v7211_v14 }
 0x3be   : > { %6450 = vmatprep.subr.bf16.mxu1 %v7212_v19 }
 0x3c0   : > { %6435 = vmatmul.mubr.bf16.gmra.mrb[32].mxu1 %v4430_v33  ;;  %v4614_v33 = vld [vmem:[#allocation3 + $0x50] sm:$0xff] }
 0x3c1   : > { %6438 = vmatprep.mubr.bf16.mxu1 %v4431_v56  ;;  %6451 = vmatpush3.bf16.msra.mxu1 %v7212_v19  ;;  %v4628_v2 = vpack.c.bf16 %v4614_v33, %v4613_v55 }
 0x3c2   : > { %6452 = vmatprep.subr.bf16.mxu1 %v7213_v36 }
 0x3c5   : > { %6453 = vmatpush3.bf16.msra.mxu1 %v7213_v36 }
 0x3c6   : > { %6454 = vmatprep.subr.bf16.mxu1 %v7214_v30 }
 0x3c8   : > { %6439 = vmatmul.mubr.bf16.gmra.mrb[36].mxu1 %v4432_v8 }
 0x3c9   : > { %6455 = vmatpush3.bf16.msra.mxu1 %v7214_v30  ;;  %6458 = vmatprep.mubr.bf16.mxu1 %v4627_v38 }
 0x3ca   : > { %6456 = vmatprep.subr.bf16.mxu1 %v7215_v60 }
 0x3cd   : > { %6457 = vmatpush3.bf16.msra.mxu1 %v7215_v60 }
 0x3ce   : > { %6474 = vmatprep.subr.bf16.mxu1 %v7216_v47 }
 0x3d0   : > { %6459 = vmatmul.mubr.bf16.vlgmr.msra.gmra.mrb[24].mxu1 %v4628_v2 }
 0x3d1   : > { %6462 = vmatprep.mubr.bf16.mxu1 %v4629_v11  ;;  %6475 = vmatpush3.bf16.msra.mxu1 %v7216_v47 }
 0x3d2   : > { %6476 = vmatprep.subr.bf16.mxu1 %v7217_v34 }
 0x3d5   : > { %6477 = vmatpush3.bf16.msra.mxu1 %v7217_v34 }
 0x3d6   : > { %6478 = vmatprep.subr.bf16.mxu1 %v7218_v39 }
 0x3d8   : > { %6463 = vmatmul.mubr.bf16.gmra.mrb[28].mxu1 %v4630_v57 }
 0x3d9   : > { %6466 = vmatprep.mubr.bf16.mxu1 %v4631_v44  ;;  %6479 = vmatpush3.bf16.msra.mxu1 %v7218_v39 }
 0x3da   : > { %6480 = vmatprep.subr.bf16.mxu1 %v7219_v31 }
 0x3dd   : > { %6481 = vmatpush3.bf16.msra.mxu1 %v7219_v31 }
 0x3de   : > { %6482 = vmatprep.subr.bf16.mxu1 %v7220_v23 }
 0x3e0   : > { %6467 = vmatmul.mubr.bf16.gmra.mrb[32].mxu1 %v4632_v52 }
 0x3e1   : > { %6470 = vmatprep.mubr.bf16.mxu1 %v4633_v25  ;;  %6483 = vmatpush3.bf16.msra.mxu1 %v7220_v23 }
 0x3e2   : > { %6484 = vmatprep.subr.bf16.mxu1 %v7221_v24 }
 0x3e5   : > { %6485 = vmatpush3.bf16.msra.mxu1 %v7221_v24 }
 0x3e6   : > { %6486 = vmatprep.subr.bf16.mxu1 %v7222_v41 }
 0x3e8   : > { %6471 = vmatmul.mubr.bf16.gmra.mrb[36].mxu1 %v4634_v51 }
 0x3e9   : > { %6487 = vmatpush3.bf16.msra.mxu1 %v7222_v41  ;;  %6490 = vmatprep.mubr.bf16.mxu1 %v8512_v26  ;;  %v4827_v26 = vld [vmem:[#allocation3 + $0xa9] sm:$0xff] }
 0x3ea   : > { %6488 = vmatprep.subr.bf16.mxu1 %v7223_v21  ;;  %v4836_v35 = vpack.c.bf16 %v4828_v42, %v4827_v26 }
 0x3ed   : > { %6489 = vmatpush3.bf16.msra.mxu1 %v7223_v21 }
 0x3f0   : > { %6491 = vmatmul.mubr.bf16.vlgmr.msra.gmra.mrb[24].mxu1 %v8516_v22  ;;  %v5260_v22 = vld [vmem:[%s8835_s12] ss:$0 sm:$0xff]  ;;  %s8675_s12 = scalar_lea.hbm %s8839_s27, %s5345_s11 }
 0x3f1   : > { %6494 = vmatprep.mubr.bf16.mxu1 %v8522_v43  ;;  %v5269_v43 = vld [vmem:[%s8836_s17] ss:$0 sm:$0xff]  ;;  %s7444_s17 = smov [#allocation10]  }
 0x3f2   : > { %s7314_s23 = sshll.u32 %s7444_s17, 4  ;;  %s7315_s23 = int_to_ptr.vmem [resolvable:$false] %s7314_s23 }
 0x3f3   : > { %s7316_s18 = scalar_lea.vmem %s7315_s23, 4096  ;;  %p7317_p9 = scmp.lt.s32.totalorder %s8677_s24, %s7315_s23 }
 0x3f4   : > { %p7318_p11 = scmp.lt.s32.totalorder %s7316_s18, %s7310_s21 }
 0x3f6   : > { %p7319_p0 = por %p7318_p11, %p7317_p9 }
 0x3f8   : > { %6495 = vmatmul.mubr.bf16.gmra.mrb[28].mxu1 %v8526_v37  ;;  %v8634_v37 = vadd.f32 %v5269_v43, %v5260_v22  ;;  %p7320_p5 = pnand %p7319_p0, %p7313_p13 }
 0x3f9   : > { %6498 = vmatprep.mubr.bf16.mxu1 %v8534_v50 }
 0x400   : > { %6499 = vmatmul.mubr.bf16.gmra.mrb[32].mxu1 %v8834_v62 }
 0x401   : > { %6502 = vmatprep.mubr.bf16.mxu1 %v4835_v61 }
 0x408   : > { %6503 = vmatmul.mubr.bf16.gmra.mrb[36].mxu1 %v4836_v35 }
 0x4c3   : > { %v6492_v13 = vpop.f32.mrb[24].mxu1 }
 0x4c4   : > { %v6531_v7 = vadd.f32 %v8634_v37, %v6492_v13  ;;  %v4936_v50 = vpop.f32.mrb[25].mxu1 }
 0x4c5   : > { %v6533_v16 = vadd.f32 %v8634_v37, %v4936_v50  ;;  %v6493_v0 = vpop.f32.mrb[26].mxu1 }
 0x4c6   : > { %v5017_v46 = vmax.f32 %v6531_v7, 0.0  ;;  %v6535_v3 = vadd.f32 %v8634_v37, %v6493_v0  ;;  %v4939_v28 = vpop.f32.mrb[27].mxu1 }
 0x4c7   : > { %v5015_v5 = vmax.f32 %v6533_v16, 0.0  ;;  %v6537_v48 = vadd.f32 %v8634_v37, %v4939_v28 }
 0x4c8   : > { %5033 = vst [vmem:[%s8642_s6 + $0x10] sm:$0xff] %v5017_v46  ;;  %v5018_v12 = vmax.f32 %v6535_v3, 0.0 }
 0x4c9   : > { %5031 = vst [vmem:[%s8642_s6] sm:$0xff] %v5015_v5  ;;  %v5016_v4 = vmax.f32 %v6537_v48, 0.0 }
 0x4ca   : > { %5034 = vst [vmem:[%s8642_s6 + $0x18] sm:$0xff] %v5018_v12 }
 0x4cb   : > { %5032 = vst [vmem:[%s8642_s6 + $0x8] sm:$0xff] %v5016_v4  ;;  %v6496_v14 = vpop.f32.mrb[28].mxu1 }
 0x4cc   : > { %v6539_v17 = vadd.f32 %v8634_v37, %v6496_v14  ;;  %v4952_v19 = vpop.f32.mrb[29].mxu1 }
 0x4cd   : > { %v6541_v53 = vadd.f32 %v8634_v37, %v4952_v19  ;;  %v6497_v36 = vpop.f32.mrb[30].mxu1 }
 0x4ce   : > { %v5021_v56 = vmax.f32 %v6539_v17, 0.0  ;;  %v6543_v30 = vadd.f32 %v8634_v37, %v6497_v36  ;;  %v4955_v59 = vpop.f32.mrb[31].mxu1 }
 0x4cf   : > { %v5019_v45 = vmax.f32 %v6541_v53, 0.0  ;;  %v6545_v18 = vadd.f32 %v8634_v37, %v4955_v59 }
 0x4d0   : > { %5037 = vst [vmem:[%s8642_s6 + $0x30] sm:$0xff] %v5021_v56  ;;  %v5022_v8 = vmax.f32 %v6543_v30, 0.0 }
 0x4d1   : > { %5035 = vst [vmem:[%s8642_s6 + $0x20] sm:$0xff] %v5019_v45  ;;  %v5020_v6 = vmax.f32 %v6545_v18, 0.0 }
 0x4d2   : > { %5038 = vst [vmem:[%s8642_s6 + $0x38] sm:$0xff] %v5022_v8 }
 0x4d3   : > { %5036 = vst [vmem:[%s8642_s6 + $0x28] sm:$0xff] %v5020_v6  ;;  %v6500_v60 = vpop.f32.mrb[32].mxu1 }
 0x4d4   : > { %v6547_v38 = vadd.f32 %v8634_v37, %v6500_v60  ;;  %v4968_v47 = vpop.f32.mrb[33].mxu1 }
 0x4d5   : > { %v6549_v55 = vadd.f32 %v8634_v37, %v4968_v47  ;;  %v6501_v58 = vpop.f32.mrb[34].mxu1 }
 0x4d6   : > { %v5025_v33 = vmax.f32 %v6547_v38, 0.0  ;;  %v6551_v2 = vadd.f32 %v8634_v37, %v6501_v58  ;;  %v4971_v9 = vpop.f32.mrb[35].mxu1 }
 0x4d7   : > { %v5023_v34 = vmax.f32 %v6549_v55, 0.0  ;;  %v6553_v11 = vadd.f32 %v8634_v37, %v4971_v9 }
 0x4d8   : > { %5041 = vst [vmem:[%s8642_s6 + $0x50] sm:$0xff] %v5025_v33  ;;  %v5026_v39 = vmax.f32 %v6551_v2, 0.0 }
 0x4d9   : > { %5039 = vst [vmem:[%s8642_s6 + $0x40] sm:$0xff] %v5023_v34  ;;  %v5024_v20 = vmax.f32 %v6553_v11, 0.0 }
 0x4da   : > { %5042 = vst [vmem:[%s8642_s6 + $0x58] sm:$0xff] %v5026_v39 }
 0x4db   : > { %5040 = vst [vmem:[%s8642_s6 + $0x48] sm:$0xff] %v5024_v20  ;;  %v6504_v1 = vpop.f32.mrb[36].mxu1 }
 0x4dc   : > { %v6555_v27 = vadd.f32 %v8634_v37, %v6504_v1  ;;  %v4984_v57 = vpop.f32.mrb[37].mxu1 }
 0x4dd   : > { %v6557_v54 = vadd.f32 %v8634_v37, %v4984_v57  ;;  %v6505_v31 = vpop.f32.mrb[38].mxu1 }
 0x4de   : > { %v5029_v44 = vmax.f32 %v6555_v27, 0.0  ;;  %v6559_v23 = vadd.f32 %v8634_v37, %v6505_v31  ;;  %v4987_v63 = vpop.f32.mrb[39].mxu1 }
 0x4df   : > { %v5027_v32 = vmax.f32 %v6557_v54, 0.0  ;;  %v6561_v40 = vadd.f32 %v8634_v37, %v4987_v63 }
 0x4e0   : > { %5045 = vst [vmem:[%s8642_s6 + $0x70] sm:$0xff] %v5029_v44  ;;  %v5030_v52 = vmax.f32 %v6559_v23, 0.0 }
 0x4e1   : > { %5043 = vst [vmem:[%s8642_s6 + $0x60] sm:$0xff] %v5027_v32  ;;  %v5028_v10 = vmax.f32 %v6561_v40, 0.0 }
 0x4e2   : > { %5046 = vst [vmem:[%s8642_s6 + $0x78] sm:$0xff] %v5030_v52 }
 0x4e3   : > { %5044 = vst [vmem:[%s8642_s6 + $0x68] sm:$0xff] %v5028_v10 }
 0x4e4   : > { %7323 = shalt.err (!%p7320_p5)
}
 0x4e5   : > { %s7324_s13 = scalar_lea.hbm %s8675_s12, 2048  ;;  %s7328_s22 = scalar_lea.hbm %s8840_s1, 16384 }
 0x4e6   : > { %p7325_p8 = scmp.ne.s32.totalorder %s8675_s12, %s7324_s13  ;;  %p7329_p6 = scmp.lt.u32.totalorder %s8675_s12, %s8840_s1 }
 0x4e7   : > { %p7330_p10 = scmp.lt.u32.totalorder %s7328_s22, %s7324_s13  ;;  %p7332_p4 = scmp.lt.u32.totalorder %s7324_s13, %s8675_s12 }
 0x4e8   : > { %p7326_p12 = pnand %p7325_p8, %p8841_p3 }
 0x4e9   : > { %p7331_p1 = por %p7330_p10, %p7329_p6 }
 0x4ea   : > { %p7327_p2 = pneg %p7326_p12 }
 0x4eb   : > { %p7333_p7 = por %p7332_p4, %p7331_p1 }
 0x4ed   : > { %p7334_p13 = pnand %p7333_p7, %p7327_p2 }
 0x4ef   : > { %7337 = shalt.err (!%p7334_p13)
}
 0x4f0   : > { %s7445_s20 = smov 128   ;;  %s7446_s4 = smov 8  }
 0x4f1   : > { %6887 = dma.vmem_to_hbm [thread:$0]  (%p8841_p3), %s8677_s24, 2048, %s8675_s12, %s8684_s8, %s7445_s20, %s7445_s20, %s7446_s4  }
 0x4f2 PF: > { %s8842_s27 = sld [smem:[#allocation14_spill]]  ;;  %s8843_s21 = sld [smem:[#allocation18_spill]] }
 0x4f3   : > { %p6909_p9 = scmp.ge.s32.totalorder %s7436_s15, 2 }
 0x4f8   : > { %s5078_s17 = sand.u32 1, %s8842_s27   ;;  %p8844_p11 = scmp.ne.s32.totalorder %s8843_s21, 0 }
 0x4f9   : > { %s5079_s23 = scalar_lea.sflag [#allocation6], %s5078_s17 }
 0x4fa   : > { %p6901_p0 = pnand %p6909_p9, %p8844_p11 }
 0x4fc   : > { %7391 = dma.done.wait (!%p6901_p0), %s5079_s23, 2048  }
 0x4fd   : > { %7393 = vsyncadd (!%p6901_p0), %s5079_s23, 4294965248  ;;  %s25_s15 = sadd.s32 1, %s7436_s15   ;;  %s8845_s11 = sld [smem:[#allocation16_spill]] }
 0x4fe   : > { %p22_p5 = scmp.ge.s32.totalorder %s25_s15, 10   ;;  %s8846_s13 = sld [smem:[#allocation19_spill]] }
 0x4ff   : > { %s8847_s27 = smov %s7400_s28  ;;  %s8848_s28 = smov %s7404_s29 }
 0x500   : > { %s8849_s29 = smov %s7673_s3  ;;  %s8850_s30 = smov %s7412_s9 }
 0x501   : > { %s8851_s9 = smov %s7416_s10  ;;  %s8852_s10 = smov %s7668_s19 }
 0x502   : > { %s8853_s12 = smov %s7432_s14  ;;  %s8854_s14 = smov %s8860_s26 }
 0x503   :  { %24 = sbr.rel (!%p22_p5) target bundleno = 16 (0x10), region = 123 }
 0x50a   :  { %5084 = vsyncpa [#allocation5], 1 }
 0x50b   :  { %5086 = vsyncpa [#allocation5 + $0x1], 1 }
 0x50c   :  { %5087 = vsyncpa [#allocation8], 1 }
 0x50d   :  { %5088 = vsyncpa [#allocation6], 1 }
 0x50e   :  { %5090 = vsyncpa [#allocation6 + $0x1], 1 }

</bundles_post_ra>
